<compile_context>
chip_gen: v6e
topology: v6e:2x2x1
jax: 0.10.0
libtpu: 0.0.40
codegen_flags: <defaults>
</compile_context>

<pallas_src>
import numpy as np
import jax
import jax.numpy as jnp
from jax.experimental import pallas as pl
from jax.experimental.pallas import tpu as pltpu

EPS = 1e-6
_INV_SQRT2 = 0.7071067811865476

# Abramowitz & Stegun 7.1.26 erf approximation (|err| <= 1.5e-7).
_ERF_P = 0.3275911
_ERF_A = (0.254829592, -0.284496736, 1.421413741, -1.453152027, 1.061405429)


def _erf(x):
    # TODO(synk): swap for jax.lax.erf once an erf lowering is guaranteed in Mosaic.
    a = jnp.abs(x)
    t = 1.0 / (1.0 + _ERF_P * a)
    a1, a2, a3, a4, a5 = _ERF_A
    poly = t * (a1 + t * (a2 + t * (a3 + t * (a4 + t * a5))))
    y = 1.0 - poly * jnp.exp(-a * a)
    return jnp.where(x >= 0.0, y, -y)


def _gelu_exact(x):
    # PyTorch nn.GELU default (erf form).
    return 0.5 * x * (1.0 + _erf(x * _INV_SQRT2))


def _ln2d(x, w, b):
    """LayerNorm over both axes of a 2-D (H, W) block (eps=1e-6, affine)."""
    n = x.shape[0] * x.shape[1]
    mean = jnp.sum(jnp.sum(x, axis=-1, keepdims=True), axis=-2, keepdims=True) / n
    xc = x - mean
    var = jnp.sum(jnp.sum(xc * xc, axis=-1, keepdims=True), axis=-2, keepdims=True) / n
    return xc * jax.lax.rsqrt(var + EPS) * w + b


def _dft_bases(H, W):
    """Real/imag DFT bases implementing rfft2 / irfft2 with norm='ortho'."""
    Wm = W // 2 + 1
    w = np.arange(W)
    k = np.arange(Wm)
    h = np.arange(H)
    # forward real DFT over W:  X1[h,k] = sum_w x[h,w] e^{-2 pi i w k / W} / sqrt(W)
    ang_wk = 2.0 * np.pi * np.outer(w, k) / W                        # (W, Wm)
    fw = np.stack([np.cos(ang_wk), -np.sin(ang_wk)]) / np.sqrt(W)
    # forward complex DFT over H:  X[m,k] = sum_h e^{-2 pi i m h / H} X1[h,k] / sqrt(H)
    ang_mh = 2.0 * np.pi * np.outer(h, h) / H                        # (H, H), symmetric
    eh = np.stack([np.cos(ang_mh), -np.sin(ang_mh)]) / np.sqrt(H)
    # inverse complex DFT over H:  Z[h,k] = sum_m e^{+2 pi i h m / H} Y[m,k] / sqrt(H)
    gh = np.stack([np.cos(ang_mh), np.sin(ang_mh)]) / np.sqrt(H)
    # Hermitian c2r over W with half-spectrum multiplicity (ignores imag of DC/Nyquist,
    # matching irfft semantics):
    #   x[h,w] = sum_k mult[k] (Zr[h,k] cos - Zi[h,k] sin) / sqrt(W)
    mult = np.full((Wm,), 2.0)
    mult[0] = 1.0
    if W % 2 == 0:
        mult[-1] = 1.0
    ang_kw = 2.0 * np.pi * np.outer(k, w) / W                        # (Wm, W)
    cs = np.stack([mult[:, None] * np.cos(ang_kw),
                   -mult[:, None] * np.sin(ang_kw)]) / np.sqrt(W)
    return (jnp.asarray(fw, jnp.float32), jnp.asarray(eh, jnp.float32),
            jnp.asarray(gh, jnp.float32), jnp.asarray(cs, jnp.float32))


# ---------------------------------------------------------------------------
# Fused kernel: one grid step = one batch element.
# ---------------------------------------------------------------------------
def _fno_block_kernel(x_ref, fw_ref, eh_ref, gh_ref, cs_ref, ws_ref,
                      n0w_ref, n0b_ref, n1w_ref, n1b_ref,
                      skw_ref, skb_ref, gamma_ref, beta_ref, scale_ref,
                      o_ref):
    b = pl.program_id(0)
    C = x_ref.shape[1]
    scale = scale_ref[0]
    f32 = jnp.float32

    fw_r, fw_i = fw_ref[0], fw_ref[1]            # (W, Wm)   rfft over W
    eh_r, eh_i = eh_ref[0], eh_ref[1]            # (H, H)    fft over H
    gh_r, gh_i = gh_ref[0], gh_ref[1]            # (H, H)    ifft over H
    cw, sw = cs_ref[0], cs_ref[1]                # (Wm, W)   Hermitian c2r over W
    n0w, n0b = n0w_ref[...], n0b_ref[...]
    n1w, n1b = n1w_ref[...], n1b_ref[...]

    # ---- norm0 + forward real DFT (== rfft2, ortho), per channel -----------
    res, xr, xi = [], [], []
    for c in range(C):                           # static unroll, C is tiny
        xc = x_ref[0, c]                         # (H, W)
        res.append(xc)
        xn = _ln2d(xc, n0w, n0b)
        t_r = jnp.dot(xn, fw_r, preferred_element_type=f32)       # (H, Wm)
        t_i = jnp.dot(xn, fw_i, preferred_element_type=f32)
        xr.append(jnp.dot(eh_r, t_r, preferred_element_type=f32)
                  - jnp.dot(eh_i, t_i, preferred_element_type=f32))
        xi.append(jnp.dot(eh_r, t_i, preferred_element_type=f32)
                  + jnp.dot(eh_i, t_r, preferred_element_type=f32))

    # ---- per-mode complex channel mixing + irfft2 + skip/GELU/norm1/FiLM ---
    for o in range(C):
        yr = None
        yi = None
        for i in range(C):
            wre = ws_ref[0, i * C + o].astype(f32)   # (H, Wm)
            wim = ws_ref[1, i * C + o].astype(f32)
            # plain 4-mul / 2-add complex product (VPU-friendly; no Karatsuba)
            tr = xr[i] * wre - xi[i] * wim
            ti = xr[i] * wim + xi[i] * wre
            yr = tr if yr is None else yr + tr
            yi = ti if yi is None else yi + ti

        # irfft2 (ortho): complex iDFT over H, then Hermitian c2r over W
        zr = (jnp.dot(gh_r, yr, preferred_element_type=f32)
              - jnp.dot(gh_i, yi, preferred_element_type=f32))
        zi = (jnp.dot(gh_r, yi, preferred_element_type=f32)
              + jnp.dot(gh_i, yr, preferred_element_type=f32))
        x_filt = (jnp.dot(zr, cw, preferred_element_type=f32)
                  + jnp.dot(zi, sw, preferred_element_type=f32))   # (H, W)

        # inner_skip: 1x1 conv on the *residual*, unrolled VPU FMA (tiny C)
        acc = x_filt + skb_ref[o]
        for i in range(C):
            acc = acc + skw_ref[o, i] * res[i]

        z = _gelu_exact(acc)
        z = _ln2d(z, n1w, n1b)

        # FiLM: (1 + gamma*scale) * x + beta*scale
        g = gamma_ref[b, o]
        bt = beta_ref[b, o]
        o_ref[0, o] = (1.0 + g * scale) * z + bt * scale


# ---------------------------------------------------------------------------
# Wrapper
# ---------------------------------------------------------------------------
def fno_block_filmed(x, gamma, beta, params, scale=1.0):
    B, C, H, W = x.shape
    Wm = W // 2 + 1
    fw, eh, gh, cs = _dft_bases(H, W)
    ws = params["spec_ws"].reshape(2, C * C, H, Wm)   # rank-4 for the BlockSpec
    scale_arr = jnp.asarray(scale, jnp.float32).reshape(1)
    smem = pltpu.MemorySpace.SMEM

    return pl.pallas_call(
        _fno_block_kernel,
        out_shape=jax.ShapeDtypeStruct((B, C, H, W), jnp.float32),
        grid=(B,),
        in_specs=[
            pl.BlockSpec((1, C, H, W), lambda b: (b, 0, 0, 0)),        # x
            pl.BlockSpec((2, W, Wm), lambda b: (0, 0, 0)),             # fwd W-DFT bases
            pl.BlockSpec((2, H, H), lambda b: (0, 0, 0)),              # fwd H-DFT bases
            pl.BlockSpec((2, H, H), lambda b: (0, 0, 0)),              # inv H-DFT bases
            pl.BlockSpec((2, Wm, W), lambda b: (0, 0, 0)),             # inv W c2r bases
            pl.BlockSpec((2, C * C, H, Wm), lambda b: (0, 0, 0, 0)),   # spectral weights
            pl.BlockSpec((H, W), lambda b: (0, 0)),                    # norm0 weight
            pl.BlockSpec((H, W), lambda b: (0, 0)),                    # norm0 bias
            pl.BlockSpec((H, W), lambda b: (0, 0)),                    # norm1 weight
            pl.BlockSpec((H, W), lambda b: (0, 0)),                    # norm1 bias
            pl.BlockSpec(memory_space=smem),                           # skip_w (C, C)
            pl.BlockSpec(memory_space=smem),                           # skip_b (C,)
            pl.BlockSpec(memory_space=smem),                           # gamma  (B, C)
            pl.BlockSpec(memory_space=smem),                           # beta   (B, C)
            pl.BlockSpec(memory_space=smem),                           # scale  (1,)
        ],
        out_specs=pl.BlockSpec((1, C, H, W), lambda b: (b, 0, 0, 0)),
        compiler_params=pltpu.CompilerParams(
            dimension_semantics=("parallel",)),                        # >=2 steps -> v7x megacore
    )(x.astype(jnp.float32), fw, eh, gh, cs, ws,
      params["norm0_w"], params["norm0_b"], params["norm1_w"], params["norm1_b"],
      params["skip_w"], params["skip_b"],
      gamma.astype(jnp.float32), beta.astype(jnp.float32), scale_arr)


# ---------------------------------------------------------------------------
# Parameter construction (deterministic, synthetic)
# ---------------------------------------------------------------------------
def init_params(key, C, H, W, weights_dtype=jnp.float32):
    # weights_dtype=jnp.bfloat16 halves the spectral-weight HBM stream
    # (v5e/v6e bandwidth win); the kernel always accumulates in f32.
    Wm = W // 2 + 1
    k1, k2, k3 = jax.random.split(key, 3)
    spec_ws = (0.02 * jax.random.normal(k1, (2, C, C, H, Wm), jnp.float32)
               ).astype(weights_dtype)
    skip_w = 0.1 * jax.random.normal(k2, (C, C), jnp.float32)   # (Cout, Cin)
    skip_b = 0.1 * jax.random.normal(k3, (C,), jnp.float32)
    return {
        "norm0_w": jnp.ones((H, W), jnp.float32),
        "norm0_b": jnp.zeros((H, W), jnp.float32),
        "spec_ws": spec_ws,                     # (2, Cin, Cout, H, Wm) re/im
        "skip_w": skip_w,
        "skip_b": skip_b,
        "norm1_w": jnp.ones((H, W), jnp.float32),
        "norm1_b": jnp.zeros((H, W), jnp.float32),
    }


# ---------------------------------------------------------------------------
# Pure-JAX (XLA FFT) reference of the module forward, for validation only.
# ---------------------------------------------------------------------------
def reference_forward(x, gamma, beta, params, scale=1.0):
    B, C, H, W = x.shape

    def ln(v, w, b):
        mean = v.mean(axis=(-2, -1), keepdims=True)
        var = ((v - mean) ** 2).mean(axis=(-2, -1), keepdims=True)
        return (v - mean) / jnp.sqrt(var + EPS) * w + b

    residual = x
    xn = ln(x, params["norm0_w"], params["norm0_b"])
    xc = jnp.fft.rfft2(xn, axes=(-2, -1), norm="ortho")
    wr = params["spec_ws"][0].astype(jnp.float32)
    wi = params["spec_ws"][1].astype(jnp.float32)
    xr_, xi_ = jnp.real(xc), jnp.imag(xc)
    yr_ = (jnp.einsum("bihk,iohk->bohk", xr_, wr)
           - jnp.einsum("bihk,iohk->bohk", xi_, wi))
    yi_ = (jnp.einsum("bihk,iohk->bohk", xr_, wi)
           + jnp.einsum("bihk,iohk->bohk", xi_, wr))
    yc = jax.lax.complex(yr_, yi_)
    x_filt = jnp.fft.irfft2(yc, s=(H, W), axes=(-2, -1), norm="ortho")
    sk = (jnp.einsum("oi,bihw->bohw", params["skip_w"], residual)
          + params["skip_b"][None, :, None, None])
    z = x_filt + sk
    z = 0.5 * z * (1.0 + jax.lax.erf(z * _INV_SQRT2))
    z = ln(z, params["norm1_w"], params["norm1_b"])
    g = gamma[:, :, None, None]
    bt = beta[:, :, None, None]
    return (1.0 + g * scale) * z + bt * scale


if __name__ == "__main__":
    B, C, H, W = 2, 4, 16, 16
    key = jax.random.PRNGKey(0)
    kx, kg, kb, kp = jax.random.split(key, 4)

    x = jax.random.normal(kx, (B, C, H, W), jnp.float32)
    gamma = 0.1 * jax.random.normal(kg, (B, C), jnp.float32)
    beta = 0.1 * jax.random.normal(kb, (B, C), jnp.float32)
    params = init_params(kp, C, H, W)

    fwd = jax.jit(fno_block_filmed)
    out = jax.block_until_ready(fwd(x, gamma, beta, params, jnp.float32(1.0)))

    assert out.shape == (B, C, H, W) and out.dtype == jnp.float32
    assert bool(jnp.all(jnp.isfinite(out)))

    ref = reference_forward(x, gamma, beta, params, 1.0)
    assert bool(jnp.allclose(out, ref, atol=5e-2, rtol=5e-2))

    print("KERNEL_OK")
</pallas_src>

<mosaic_0001>
module attributes {stable_mosaic.version = 11 : i64} {
  func.func @_fno_block_kernel(%arg0: i32, %arg1: memref<1x4x16x16xf32, #tpu.memory_space<vmem>>, %arg2: memref<2x16x9xf32, #tpu.memory_space<vmem>>, %arg3: memref<2x16x16xf32, #tpu.memory_space<vmem>>, %arg4: memref<2x16x16xf32, #tpu.memory_space<vmem>>, %arg5: memref<2x9x16xf32, #tpu.memory_space<vmem>>, %arg6: memref<2x16x16x9xf32, #tpu.memory_space<vmem>>, %arg7: memref<16x16xf32, #tpu.memory_space<vmem>>, %arg8: memref<16x16xf32, #tpu.memory_space<vmem>>, %arg9: memref<16x16xf32, #tpu.memory_space<vmem>>, %arg10: memref<16x16xf32, #tpu.memory_space<vmem>>, %arg11: memref<4x4xf32, #tpu.memory_space<smem>>, %arg12: memref<4xf32, #tpu.memory_space<smem>>, %arg13: memref<2x4xf32, #tpu.memory_space<smem>>, %arg14: memref<2x4xf32, #tpu.memory_space<smem>>, %arg15: memref<1xf32, #tpu.memory_space<smem>>, %arg16: memref<1x4x16x16xf32, #tpu.memory_space<vmem>>) attributes {dimension_semantics = [#tpu.dimension_semantics<parallel>], iteration_bounds = array<i64: 2>, scalar_prefetch = 0 : i64, scratch_operands = 0 : i64, tpu.core_type = #tpu.core_type<tc>, window_params = [{transform_indices = @transform_0, window_bounds = array<i64: 1, 4, 16, 16>}, {pipeline_mode = #tpu.pipeline_mode<synchronous>, transform_indices = @transform_1, window_bounds = array<i64: 2, 16, 9>}, {pipeline_mode = #tpu.pipeline_mode<synchronous>, transform_indices = @transform_2, window_bounds = array<i64: 2, 16, 16>}, {pipeline_mode = #tpu.pipeline_mode<synchronous>, transform_indices = @transform_3, window_bounds = array<i64: 2, 16, 16>}, {pipeline_mode = #tpu.pipeline_mode<synchronous>, transform_indices = @transform_4, window_bounds = array<i64: 2, 9, 16>}, {pipeline_mode = #tpu.pipeline_mode<synchronous>, transform_indices = @transform_5, window_bounds = array<i64: 2, 16, 16, 9>}, {pipeline_mode = #tpu.pipeline_mode<synchronous>, transform_indices = @transform_6, window_bounds = array<i64: 16, 16>}, {pipeline_mode = #tpu.pipeline_mode<synchronous>, transform_indices = @transform_7, window_bounds = array<i64: 16, 16>}, {pipeline_mode = #tpu.pipeline_mode<synchronous>, transform_indices = @transform_8, window_bounds = array<i64: 16, 16>}, {pipeline_mode = #tpu.pipeline_mode<synchronous>, transform_indices = @transform_9, window_bounds = array<i64: 16, 16>}, {transform_indices = @transform_10, window_bounds = array<i64: 4, 4>}, {transform_indices = @transform_11, window_bounds = array<i64: 4>}, {transform_indices = @transform_12, window_bounds = array<i64: 2, 4>}, {transform_indices = @transform_13, window_bounds = array<i64: 2, 4>}, {transform_indices = @transform_14, window_bounds = array<i64: 1>}, {transform_indices = @transform_15, window_bounds = array<i64: 1, 4, 16, 16>}]} {
    %c0 = arith.constant 0 : index
    %0 = memref.load %arg15[%c0] : memref<1xf32, #tpu.memory_space<smem>>
    %c0_0 = arith.constant 0 : index
    %c0_1 = arith.constant 0 : index
    %c0_2 = arith.constant 0 : index
    %1 = vector.load %arg2[%c0_0, %c0_1, %c0_2] : memref<2x16x9xf32, #tpu.memory_space<vmem>>, vector<1x16x9xf32>
    %2 = vector.shape_cast %1 : vector<1x16x9xf32> to vector<16x9xf32>
    %c1 = arith.constant 1 : index
    %c0_3 = arith.constant 0 : index
    %c0_4 = arith.constant 0 : index
    %3 = vector.load %arg2[%c1, %c0_3, %c0_4] : memref<2x16x9xf32, #tpu.memory_space<vmem>>, vector<1x16x9xf32>
    %4 = vector.shape_cast %3 : vector<1x16x9xf32> to vector<16x9xf32>
    %c0_5 = arith.constant 0 : index
    %c0_6 = arith.constant 0 : index
    %c0_7 = arith.constant 0 : index
    %5 = vector.load %arg3[%c0_5, %c0_6, %c0_7] : memref<2x16x16xf32, #tpu.memory_space<vmem>>, vector<1x16x16xf32>
    %6 = vector.shape_cast %5 : vector<1x16x16xf32> to vector<16x16xf32>
    %c1_8 = arith.constant 1 : index
    %c0_9 = arith.constant 0 : index
    %c0_10 = arith.constant 0 : index
    %7 = vector.load %arg3[%c1_8, %c0_9, %c0_10] : memref<2x16x16xf32, #tpu.memory_space<vmem>>, vector<1x16x16xf32>
    %8 = vector.shape_cast %7 : vector<1x16x16xf32> to vector<16x16xf32>
    %c0_11 = arith.constant 0 : index
    %c0_12 = arith.constant 0 : index
    %c0_13 = arith.constant 0 : index
    %9 = vector.load %arg4[%c0_11, %c0_12, %c0_13] : memref<2x16x16xf32, #tpu.memory_space<vmem>>, vector<1x16x16xf32>
    %10 = vector.shape_cast %9 : vector<1x16x16xf32> to vector<16x16xf32>
    %c1_14 = arith.constant 1 : index
    %c0_15 = arith.constant 0 : index
    %c0_16 = arith.constant 0 : index
    %11 = vector.load %arg4[%c1_14, %c0_15, %c0_16] : memref<2x16x16xf32, #tpu.memory_space<vmem>>, vector<1x16x16xf32>
    %12 = vector.shape_cast %11 : vector<1x16x16xf32> to vector<16x16xf32>
    %c0_17 = arith.constant 0 : index
    %c0_18 = arith.constant 0 : index
    %c0_19 = arith.constant 0 : index
    %13 = vector.load %arg5[%c0_17, %c0_18, %c0_19] : memref<2x9x16xf32, #tpu.memory_space<vmem>>, vector<1x9x16xf32>
    %14 = vector.shape_cast %13 : vector<1x9x16xf32> to vector<9x16xf32>
    %c1_20 = arith.constant 1 : index
    %c0_21 = arith.constant 0 : index
    %c0_22 = arith.constant 0 : index
    %15 = vector.load %arg5[%c1_20, %c0_21, %c0_22] : memref<2x9x16xf32, #tpu.memory_space<vmem>>, vector<1x9x16xf32>
    %16 = vector.shape_cast %15 : vector<1x9x16xf32> to vector<9x16xf32>
    %c0_23 = arith.constant 0 : index
    %c0_24 = arith.constant 0 : index
    %17 = vector.load %arg7[%c0_23, %c0_24] : memref<16x16xf32, #tpu.memory_space<vmem>>, vector<16x16xf32>
    %c0_25 = arith.constant 0 : index
    %c0_26 = arith.constant 0 : index
    %18 = vector.load %arg8[%c0_25, %c0_26] : memref<16x16xf32, #tpu.memory_space<vmem>>, vector<16x16xf32>
    %c0_27 = arith.constant 0 : index
    %c0_28 = arith.constant 0 : index
    %19 = vector.load %arg9[%c0_27, %c0_28] : memref<16x16xf32, #tpu.memory_space<vmem>>, vector<16x16xf32>
    %c0_29 = arith.constant 0 : index
    %c0_30 = arith.constant 0 : index
    %20 = vector.load %arg10[%c0_29, %c0_30] : memref<16x16xf32, #tpu.memory_space<vmem>>, vector<16x16xf32>
    %c0_31 = arith.constant 0 : index
    %c0_32 = arith.constant 0 : index
    %c0_33 = arith.constant 0 : index
    %c0_34 = arith.constant 0 : index
    %21 = vector.load %arg1[%c0_31, %c0_32, %c0_33, %c0_34] : memref<1x4x16x16xf32, #tpu.memory_space<vmem>>, vector<1x1x16x16xf32>
    %22 = vector.shape_cast %21 : vector<1x1x16x16xf32> to vector<16x16xf32>
    %cst = arith.constant dense<0.000000e+00> : vector<16xf32>
    %23 = vector.multi_reduction <add>, %22, %cst [1] : vector<16x16xf32> to vector<16xf32>
    %24 = vector.shape_cast %23 : vector<16xf32> to vector<16x1xf32>
    %cst_35 = arith.constant dense<0.000000e+00> : vector<1xf32>
    %25 = vector.multi_reduction <add>, %24, %cst_35 [0] : vector<16x1xf32> to vector<1xf32>
    %26 = vector.shape_cast %25 : vector<1xf32> to vector<1x1xf32>
    %cst_36 = arith.constant 2.560000e+02 : f32
    %27 = vector.broadcast %cst_36 : f32 to vector<1x1xf32>
    %28 = arith.divf %26, %27 : vector<1x1xf32>
    %29 = vector.broadcast %28 : vector<1x1xf32> to vector<16x16xf32>
    %30 = arith.subf %22, %29 : vector<16x16xf32>
    %31 = arith.mulf %30, %30 : vector<16x16xf32>
    %cst_37 = arith.constant dense<0.000000e+00> : vector<16xf32>
    %32 = vector.multi_reduction <add>, %31, %cst_37 [1] : vector<16x16xf32> to vector<16xf32>
    %33 = vector.shape_cast %32 : vector<16xf32> to vector<16x1xf32>
    %cst_38 = arith.constant dense<0.000000e+00> : vector<1xf32>
    %34 = vector.multi_reduction <add>, %33, %cst_38 [0] : vector<16x1xf32> to vector<1xf32>
    %35 = vector.shape_cast %34 : vector<1xf32> to vector<1x1xf32>
    %cst_39 = arith.constant 2.560000e+02 : f32
    %36 = vector.broadcast %cst_39 : f32 to vector<1x1xf32>
    %37 = arith.divf %35, %36 : vector<1x1xf32>
    %cst_40 = arith.constant 9.99999997E-7 : f32
    %38 = vector.broadcast %cst_40 : f32 to vector<1x1xf32>
    %39 = arith.addf %37, %38 : vector<1x1xf32>
    %40 = math.rsqrt %39 : vector<1x1xf32>
    %41 = vector.broadcast %40 : vector<1x1xf32> to vector<16x16xf32>
    %42 = arith.mulf %30, %41 : vector<16x16xf32>
    %43 = arith.mulf %42, %17 : vector<16x16xf32>
    %44 = arith.addf %43, %18 : vector<16x16xf32>
    %cst_41 = arith.constant dense<0.000000e+00> : vector<16x9xf32>
    %45 = tpu.matmul %44, %2, %cst_41 {dimension_numbers = #tpu.dot_dimension_numbers<[1], [0], [0], [1], [0, 0, 1, 1], [], []>} : vector<16x16xf32>, vector<16x9xf32>, vector<16x9xf32> -> vector<16x9xf32>
    %cst_42 = arith.constant dense<0.000000e+00> : vector<16x9xf32>
    %46 = tpu.matmul %44, %4, %cst_42 {dimension_numbers = #tpu.dot_dimension_numbers<[1], [0], [0], [1], [0, 0, 1, 1], [], []>} : vector<16x16xf32>, vector<16x9xf32>, vector<16x9xf32> -> vector<16x9xf32>
    %cst_43 = arith.constant dense<0.000000e+00> : vector<16x9xf32>
    %47 = tpu.matmul %6, %45, %cst_43 {dimension_numbers = #tpu.dot_dimension_numbers<[1], [0], [0], [1], [0, 0, 1, 1], [], []>} : vector<16x16xf32>, vector<16x9xf32>, vector<16x9xf32> -> vector<16x9xf32>
    %cst_44 = arith.constant dense<0.000000e+00> : vector<16x9xf32>
    %48 = tpu.matmul %8, %46, %cst_44 {dimension_numbers = #tpu.dot_dimension_numbers<[1], [0], [0], [1], [0, 0, 1, 1], [], []>} : vector<16x16xf32>, vector<16x9xf32>, vector<16x9xf32> -> vector<16x9xf32>
    %49 = arith.subf %47, %48 : vector<16x9xf32>
    %cst_45 = arith.constant dense<0.000000e+00> : vector<16x9xf32>
    %50 = tpu.matmul %6, %46, %cst_45 {dimension_numbers = #tpu.dot_dimension_numbers<[1], [0], [0], [1], [0, 0, 1, 1], [], []>} : vector<16x16xf32>, vector<16x9xf32>, vector<16x9xf32> -> vector<16x9xf32>
    %cst_46 = arith.constant dense<0.000000e+00> : vector<16x9xf32>
    %51 = tpu.matmul %8, %45, %cst_46 {dimension_numbers = #tpu.dot_dimension_numbers<[1], [0], [0], [1], [0, 0, 1, 1], [], []>} : vector<16x16xf32>, vector<16x9xf32>, vector<16x9xf32> -> vector<16x9xf32>
    %52 = arith.addf %50, %51 : vector<16x9xf32>
    %c0_47 = arith.constant 0 : index
    %c1_48 = arith.constant 1 : index
    %c0_49 = arith.constant 0 : index
    %c0_50 = arith.constant 0 : index
    %53 = vector.load %arg1[%c0_47, %c1_48, %c0_49, %c0_50] : memref<1x4x16x16xf32, #tpu.memory_space<vmem>>, vector<1x1x16x16xf32>
    %54 = vector.shape_cast %53 : vector<1x1x16x16xf32> to vector<16x16xf32>
    %cst_51 = arith.constant dense<0.000000e+00> : vector<16xf32>
    %55 = vector.multi_reduction <add>, %54, %cst_51 [1] : vector<16x16xf32> to vector<16xf32>
    %56 = vector.shape_cast %55 : vector<16xf32> to vector<16x1xf32>
    %cst_52 = arith.constant dense<0.000000e+00> : vector<1xf32>
    %57 = vector.multi_reduction <add>, %56, %cst_52 [0] : vector<16x1xf32> to vector<1xf32>
    %58 = vector.shape_cast %57 : vector<1xf32> to vector<1x1xf32>
    %cst_53 = arith.constant 2.560000e+02 : f32
    %59 = vector.broadcast %cst_53 : f32 to vector<1x1xf32>
    %60 = arith.divf %58, %59 : vector<1x1xf32>
    %61 = vector.broadcast %60 : vector<1x1xf32> to vector<16x16xf32>
    %62 = arith.subf %54, %61 : vector<16x16xf32>
    %63 = arith.mulf %62, %62 : vector<16x16xf32>
    %cst_54 = arith.constant dense<0.000000e+00> : vector<16xf32>
    %64 = vector.multi_reduction <add>, %63, %cst_54 [1] : vector<16x16xf32> to vector<16xf32>
    %65 = vector.shape_cast %64 : vector<16xf32> to vector<16x1xf32>
    %cst_55 = arith.constant dense<0.000000e+00> : vector<1xf32>
    %66 = vector.multi_reduction <add>, %65, %cst_55 [0] : vector<16x1xf32> to vector<1xf32>
    %67 = vector.shape_cast %66 : vector<1xf32> to vector<1x1xf32>
    %cst_56 = arith.constant 2.560000e+02 : f32
    %68 = vector.broadcast %cst_56 : f32 to vector<1x1xf32>
    %69 = arith.divf %67, %68 : vector<1x1xf32>
    %cst_57 = arith.constant 9.99999997E-7 : f32
    %70 = vector.broadcast %cst_57 : f32 to vector<1x1xf32>
    %71 = arith.addf %69, %70 : vector<1x1xf32>
    %72 = math.rsqrt %71 : vector<1x1xf32>
    %73 = vector.broadcast %72 : vector<1x1xf32> to vector<16x16xf32>
    %74 = arith.mulf %62, %73 : vector<16x16xf32>
    %75 = arith.mulf %74, %17 : vector<16x16xf32>
    %76 = arith.addf %75, %18 : vector<16x16xf32>
    %cst_58 = arith.constant dense<0.000000e+00> : vector<16x9xf32>
    %77 = tpu.matmul %76, %2, %cst_58 {dimension_numbers = #tpu.dot_dimension_numbers<[1], [0], [0], [1], [0, 0, 1, 1], [], []>} : vector<16x16xf32>, vector<16x9xf32>, vector<16x9xf32> -> vector<16x9xf32>
    %cst_59 = arith.constant dense<0.000000e+00> : vector<16x9xf32>
    %78 = tpu.matmul %76, %4, %cst_59 {dimension_numbers = #tpu.dot_dimension_numbers<[1], [0], [0], [1], [0, 0, 1, 1], [], []>} : vector<16x16xf32>, vector<16x9xf32>, vector<16x9xf32> -> vector<16x9xf32>
    %cst_60 = arith.constant dense<0.000000e+00> : vector<16x9xf32>
    %79 = tpu.matmul %6, %77, %cst_60 {dimension_numbers = #tpu.dot_dimension_numbers<[1], [0], [0], [1], [0, 0, 1, 1], [], []>} : vector<16x16xf32>, vector<16x9xf32>, vector<16x9xf32> -> vector<16x9xf32>
    %cst_61 = arith.constant dense<0.000000e+00> : vector<16x9xf32>
    %80 = tpu.matmul %8, %78, %cst_61 {dimension_numbers = #tpu.dot_dimension_numbers<[1], [0], [0], [1], [0, 0, 1, 1], [], []>} : vector<16x16xf32>, vector<16x9xf32>, vector<16x9xf32> -> vector<16x9xf32>
    %81 = arith.subf %79, %80 : vector<16x9xf32>
    %cst_62 = arith.constant dense<0.000000e+00> : vector<16x9xf32>
    %82 = tpu.matmul %6, %78, %cst_62 {dimension_numbers = #tpu.dot_dimension_numbers<[1], [0], [0], [1], [0, 0, 1, 1], [], []>} : vector<16x16xf32>, vector<16x9xf32>, vector<16x9xf32> -> vector<16x9xf32>
    %cst_63 = arith.constant dense<0.000000e+00> : vector<16x9xf32>
    %83 = tpu.matmul %8, %77, %cst_63 {dimension_numbers = #tpu.dot_dimension_numbers<[1], [0], [0], [1], [0, 0, 1, 1], [], []>} : vector<16x16xf32>, vector<16x9xf32>, vector<16x9xf32> -> vector<16x9xf32>
    %84 = arith.addf %82, %83 : vector<16x9xf32>
    %c0_64 = arith.constant 0 : index
    %c2 = arith.constant 2 : index
    %c0_65 = arith.constant 0 : index
    %c0_66 = arith.constant 0 : index
    %85 = vector.load %arg1[%c0_64, %c2, %c0_65, %c0_66] : memref<1x4x16x16xf32, #tpu.memory_space<vmem>>, vector<1x1x16x16xf32>
    %86 = vector.shape_cast %85 : vector<1x1x16x16xf32> to vector<16x16xf32>
    %cst_67 = arith.constant dense<0.000000e+00> : vector<16xf32>
    %87 = vector.multi_reduction <add>, %86, %cst_67 [1] : vector<16x16xf32> to vector<16xf32>
    %88 = vector.shape_cast %87 : vector<16xf32> to vector<16x1xf32>
    %cst_68 = arith.constant dense<0.000000e+00> : vector<1xf32>
    %89 = vector.multi_reduction <add>, %88, %cst_68 [0] : vector<16x1xf32> to vector<1xf32>
    %90 = vector.shape_cast %89 : vector<1xf32> to vector<1x1xf32>
    %cst_69 = arith.constant 2.560000e+02 : f32
    %91 = vector.broadcast %cst_69 : f32 to vector<1x1xf32>
    %92 = arith.divf %90, %91 : vector<1x1xf32>
    %93 = vector.broadcast %92 : vector<1x1xf32> to vector<16x16xf32>
    %94 = arith.subf %86, %93 : vector<16x16xf32>
    %95 = arith.mulf %94, %94 : vector<16x16xf32>
    %cst_70 = arith.constant dense<0.000000e+00> : vector<16xf32>
    %96 = vector.multi_reduction <add>, %95, %cst_70 [1] : vector<16x16xf32> to vector<16xf32>
    %97 = vector.shape_cast %96 : vector<16xf32> to vector<16x1xf32>
    %cst_71 = arith.constant dense<0.000000e+00> : vector<1xf32>
    %98 = vector.multi_reduction <add>, %97, %cst_71 [0] : vector<16x1xf32> to vector<1xf32>
    %99 = vector.shape_cast %98 : vector<1xf32> to vector<1x1xf32>
    %cst_72 = arith.constant 2.560000e+02 : f32
    %100 = vector.broadcast %cst_72 : f32 to vector<1x1xf32>
    %101 = arith.divf %99, %100 : vector<1x1xf32>
    %cst_73 = arith.constant 9.99999997E-7 : f32
    %102 = vector.broadcast %cst_73 : f32 to vector<1x1xf32>
    %103 = arith.addf %101, %102 : vector<1x1xf32>
    %104 = math.rsqrt %103 : vector<1x1xf32>
    %105 = vector.broadcast %104 : vector<1x1xf32> to vector<16x16xf32>
    %106 = arith.mulf %94, %105 : vector<16x16xf32>
    %107 = arith.mulf %106, %17 : vector<16x16xf32>
    %108 = arith.addf %107, %18 : vector<16x16xf32>
    %cst_74 = arith.constant dense<0.000000e+00> : vector<16x9xf32>
    %109 = tpu.matmul %108, %2, %cst_74 {dimension_numbers = #tpu.dot_dimension_numbers<[1], [0], [0], [1], [0, 0, 1, 1], [], []>} : vector<16x16xf32>, vector<16x9xf32>, vector<16x9xf32> -> vector<16x9xf32>
    %cst_75 = arith.constant dense<0.000000e+00> : vector<16x9xf32>
    %110 = tpu.matmul %108, %4, %cst_75 {dimension_numbers = #tpu.dot_dimension_numbers<[1], [0], [0], [1], [0, 0, 1, 1], [], []>} : vector<16x16xf32>, vector<16x9xf32>, vector<16x9xf32> -> vector<16x9xf32>
    %cst_76 = arith.constant dense<0.000000e+00> : vector<16x9xf32>
    %111 = tpu.matmul %6, %109, %cst_76 {dimension_numbers = #tpu.dot_dimension_numbers<[1], [0], [0], [1], [0, 0, 1, 1], [], []>} : vector<16x16xf32>, vector<16x9xf32>, vector<16x9xf32> -> vector<16x9xf32>
    %cst_77 = arith.constant dense<0.000000e+00> : vector<16x9xf32>
    %112 = tpu.matmul %8, %110, %cst_77 {dimension_numbers = #tpu.dot_dimension_numbers<[1], [0], [0], [1], [0, 0, 1, 1], [], []>} : vector<16x16xf32>, vector<16x9xf32>, vector<16x9xf32> -> vector<16x9xf32>
    %113 = arith.subf %111, %112 : vector<16x9xf32>
    %cst_78 = arith.constant dense<0.000000e+00> : vector<16x9xf32>
    %114 = tpu.matmul %6, %110, %cst_78 {dimension_numbers = #tpu.dot_dimension_numbers<[1], [0], [0], [1], [0, 0, 1, 1], [], []>} : vector<16x16xf32>, vector<16x9xf32>, vector<16x9xf32> -> vector<16x9xf32>
    %cst_79 = arith.constant dense<0.000000e+00> : vector<16x9xf32>
    %115 = tpu.matmul %8, %109, %cst_79 {dimension_numbers = #tpu.dot_dimension_numbers<[1], [0], [0], [1], [0, 0, 1, 1], [], []>} : vector<16x16xf32>, vector<16x9xf32>, vector<16x9xf32> -> vector<16x9xf32>
    %116 = arith.addf %114, %115 : vector<16x9xf32>
    %c0_80 = arith.constant 0 : index
    %c3 = arith.constant 3 : index
    %c0_81 = arith.constant 0 : index
    %c0_82 = arith.constant 0 : index
    %117 = vector.load %arg1[%c0_80, %c3, %c0_81, %c0_82] : memref<1x4x16x16xf32, #tpu.memory_space<vmem>>, vector<1x1x16x16xf32>
    %118 = vector.shape_cast %117 : vector<1x1x16x16xf32> to vector<16x16xf32>
    %cst_83 = arith.constant dense<0.000000e+00> : vector<16xf32>
    %119 = vector.multi_reduction <add>, %118, %cst_83 [1] : vector<16x16xf32> to vector<16xf32>
    %120 = vector.shape_cast %119 : vector<16xf32> to vector<16x1xf32>
    %cst_84 = arith.constant dense<0.000000e+00> : vector<1xf32>
    %121 = vector.multi_reduction <add>, %120, %cst_84 [0] : vector<16x1xf32> to vector<1xf32>
    %122 = vector.shape_cast %121 : vector<1xf32> to vector<1x1xf32>
    %cst_85 = arith.constant 2.560000e+02 : f32
    %123 = vector.broadcast %cst_85 : f32 to vector<1x1xf32>
    %124 = arith.divf %122, %123 : vector<1x1xf32>
    %125 = vector.broadcast %124 : vector<1x1xf32> to vector<16x16xf32>
    %126 = arith.subf %118, %125 : vector<16x16xf32>
    %127 = arith.mulf %126, %126 : vector<16x16xf32>
    %cst_86 = arith.constant dense<0.000000e+00> : vector<16xf32>
    %128 = vector.multi_reduction <add>, %127, %cst_86 [1] : vector<16x16xf32> to vector<16xf32>
    %129 = vector.shape_cast %128 : vector<16xf32> to vector<16x1xf32>
    %cst_87 = arith.constant dense<0.000000e+00> : vector<1xf32>
    %130 = vector.multi_reduction <add>, %129, %cst_87 [0] : vector<16x1xf32> to vector<1xf32>
    %131 = vector.shape_cast %130 : vector<1xf32> to vector<1x1xf32>
    %cst_88 = arith.constant 2.560000e+02 : f32
    %132 = vector.broadcast %cst_88 : f32 to vector<1x1xf32>
    %133 = arith.divf %131, %132 : vector<1x1xf32>
    %cst_89 = arith.constant 9.99999997E-7 : f32
    %134 = vector.broadcast %cst_89 : f32 to vector<1x1xf32>
    %135 = arith.addf %133, %134 : vector<1x1xf32>
    %136 = math.rsqrt %135 : vector<1x1xf32>
    %137 = vector.broadcast %136 : vector<1x1xf32> to vector<16x16xf32>
    %138 = arith.mulf %126, %137 : vector<16x16xf32>
    %139 = arith.mulf %138, %17 : vector<16x16xf32>
    %140 = arith.addf %139, %18 : vector<16x16xf32>
    %cst_90 = arith.constant dense<0.000000e+00> : vector<16x9xf32>
    %141 = tpu.matmul %140, %2, %cst_90 {dimension_numbers = #tpu.dot_dimension_numbers<[1], [0], [0], [1], [0, 0, 1, 1], [], []>} : vector<16x16xf32>, vector<16x9xf32>, vector<16x9xf32> -> vector<16x9xf32>
    %cst_91 = arith.constant dense<0.000000e+00> : vector<16x9xf32>
    %142 = tpu.matmul %140, %4, %cst_91 {dimension_numbers = #tpu.dot_dimension_numbers<[1], [0], [0], [1], [0, 0, 1, 1], [], []>} : vector<16x16xf32>, vector<16x9xf32>, vector<16x9xf32> -> vector<16x9xf32>
    %cst_92 = arith.constant dense<0.000000e+00> : vector<16x9xf32>
    %143 = tpu.matmul %6, %141, %cst_92 {dimension_numbers = #tpu.dot_dimension_numbers<[1], [0], [0], [1], [0, 0, 1, 1], [], []>} : vector<16x16xf32>, vector<16x9xf32>, vector<16x9xf32> -> vector<16x9xf32>
    %cst_93 = arith.constant dense<0.000000e+00> : vector<16x9xf32>
    %144 = tpu.matmul %8, %142, %cst_93 {dimension_numbers = #tpu.dot_dimension_numbers<[1], [0], [0], [1], [0, 0, 1, 1], [], []>} : vector<16x16xf32>, vector<16x9xf32>, vector<16x9xf32> -> vector<16x9xf32>
    %145 = arith.subf %143, %144 : vector<16x9xf32>
    %cst_94 = arith.constant dense<0.000000e+00> : vector<16x9xf32>
    %146 = tpu.matmul %6, %142, %cst_94 {dimension_numbers = #tpu.dot_dimension_numbers<[1], [0], [0], [1], [0, 0, 1, 1], [], []>} : vector<16x16xf32>, vector<16x9xf32>, vector<16x9xf32> -> vector<16x9xf32>
    %cst_95 = arith.constant dense<0.000000e+00> : vector<16x9xf32>
    %147 = tpu.matmul %8, %141, %cst_95 {dimension_numbers = #tpu.dot_dimension_numbers<[1], [0], [0], [1], [0, 0, 1, 1], [], []>} : vector<16x16xf32>, vector<16x9xf32>, vector<16x9xf32> -> vector<16x9xf32>
    %148 = arith.addf %146, %147 : vector<16x9xf32>
    %c0_96 = arith.constant 0 : index
    %c0_97 = arith.constant 0 : index
    %c0_98 = arith.constant 0 : index
    %c0_99 = arith.constant 0 : index
    %149 = vector.load %arg6[%c0_96, %c0_97, %c0_98, %c0_99] : memref<2x16x16x9xf32, #tpu.memory_space<vmem>>, vector<1x1x16x9xf32>
    %150 = vector.shape_cast %149 : vector<1x1x16x9xf32> to vector<16x9xf32>
    %c1_100 = arith.constant 1 : index
    %c0_101 = arith.constant 0 : index
    %c0_102 = arith.constant 0 : index
    %c0_103 = arith.constant 0 : index
    %151 = vector.load %arg6[%c1_100, %c0_101, %c0_102, %c0_103] : memref<2x16x16x9xf32, #tpu.memory_space<vmem>>, vector<1x1x16x9xf32>
    %152 = vector.shape_cast %151 : vector<1x1x16x9xf32> to vector<16x9xf32>
    %153 = arith.mulf %49, %150 : vector<16x9xf32>
    %154 = arith.mulf %52, %152 : vector<16x9xf32>
    %155 = arith.subf %153, %154 : vector<16x9xf32>
    %156 = arith.mulf %49, %152 : vector<16x9xf32>
    %157 = arith.mulf %52, %150 : vector<16x9xf32>
    %158 = arith.addf %156, %157 : vector<16x9xf32>
    %c0_104 = arith.constant 0 : index
    %c4 = arith.constant 4 : index
    %c0_105 = arith.constant 0 : index
    %c0_106 = arith.constant 0 : index
    %159 = vector.load %arg6[%c0_104, %c4, %c0_105, %c0_106] : memref<2x16x16x9xf32, #tpu.memory_space<vmem>>, vector<1x1x16x9xf32>
    %160 = vector.shape_cast %159 : vector<1x1x16x9xf32> to vector<16x9xf32>
    %c1_107 = arith.constant 1 : index
    %c4_108 = arith.constant 4 : index
    %c0_109 = arith.constant 0 : index
    %c0_110 = arith.constant 0 : index
    %161 = vector.load %arg6[%c1_107, %c4_108, %c0_109, %c0_110] : memref<2x16x16x9xf32, #tpu.memory_space<vmem>>, vector<1x1x16x9xf32>
    %162 = vector.shape_cast %161 : vector<1x1x16x9xf32> to vector<16x9xf32>
    %163 = arith.mulf %81, %160 : vector<16x9xf32>
    %164 = arith.mulf %84, %162 : vector<16x9xf32>
    %165 = arith.subf %163, %164 : vector<16x9xf32>
    %166 = arith.mulf %81, %162 : vector<16x9xf32>
    %167 = arith.mulf %84, %160 : vector<16x9xf32>
    %168 = arith.addf %166, %167 : vector<16x9xf32>
    %169 = arith.addf %155, %165 : vector<16x9xf32>
    %170 = arith.addf %158, %168 : vector<16x9xf32>
    %c0_111 = arith.constant 0 : index
    %c8 = arith.constant 8 : index
    %c0_112 = arith.constant 0 : index
    %c0_113 = arith.constant 0 : index
    %171 = vector.load %arg6[%c0_111, %c8, %c0_112, %c0_113] : memref<2x16x16x9xf32, #tpu.memory_space<vmem>>, vector<1x1x16x9xf32>
    %172 = vector.shape_cast %171 : vector<1x1x16x9xf32> to vector<16x9xf32>
    %c1_114 = arith.constant 1 : index
    %c8_115 = arith.constant 8 : index
    %c0_116 = arith.constant 0 : index
    %c0_117 = arith.constant 0 : index
    %173 = vector.load %arg6[%c1_114, %c8_115, %c0_116, %c0_117] : memref<2x16x16x9xf32, #tpu.memory_space<vmem>>, vector<1x1x16x9xf32>
    %174 = vector.shape_cast %173 : vector<1x1x16x9xf32> to vector<16x9xf32>
    %175 = arith.mulf %113, %172 : vector<16x9xf32>
    %176 = arith.mulf %116, %174 : vector<16x9xf32>
    %177 = arith.subf %175, %176 : vector<16x9xf32>
    %178 = arith.mulf %113, %174 : vector<16x9xf32>
    %179 = arith.mulf %116, %172 : vector<16x9xf32>
    %180 = arith.addf %178, %179 : vector<16x9xf32>
    %181 = arith.addf %169, %177 : vector<16x9xf32>
    %182 = arith.addf %170, %180 : vector<16x9xf32>
    %c0_118 = arith.constant 0 : index
    %c12 = arith.constant 12 : index
    %c0_119 = arith.constant 0 : index
    %c0_120 = arith.constant 0 : index
    %183 = vector.load %arg6[%c0_118, %c12, %c0_119, %c0_120] : memref<2x16x16x9xf32, #tpu.memory_space<vmem>>, vector<1x1x16x9xf32>
    %184 = vector.shape_cast %183 : vector<1x1x16x9xf32> to vector<16x9xf32>
    %c1_121 = arith.constant 1 : index
    %c12_122 = arith.constant 12 : index
    %c0_123 = arith.constant 0 : index
    %c0_124 = arith.constant 0 : index
    %185 = vector.load %arg6[%c1_121, %c12_122, %c0_123, %c0_124] : memref<2x16x16x9xf32, #tpu.memory_space<vmem>>, vector<1x1x16x9xf32>
    %186 = vector.shape_cast %185 : vector<1x1x16x9xf32> to vector<16x9xf32>
    %187 = arith.mulf %145, %184 : vector<16x9xf32>
    %188 = arith.mulf %148, %186 : vector<16x9xf32>
    %189 = arith.subf %187, %188 : vector<16x9xf32>
    %190 = arith.mulf %145, %186 : vector<16x9xf32>
    %191 = arith.mulf %148, %184 : vector<16x9xf32>
    %192 = arith.addf %190, %191 : vector<16x9xf32>
    %193 = arith.addf %181, %189 : vector<16x9xf32>
    %194 = arith.addf %182, %192 : vector<16x9xf32>
    %cst_125 = arith.constant dense<0.000000e+00> : vector<16x9xf32>
    %195 = tpu.matmul %10, %193, %cst_125 {dimension_numbers = #tpu.dot_dimension_numbers<[1], [0], [0], [1], [0, 0, 1, 1], [], []>} : vector<16x16xf32>, vector<16x9xf32>, vector<16x9xf32> -> vector<16x9xf32>
    %cst_126 = arith.constant dense<0.000000e+00> : vector<16x9xf32>
    %196 = tpu.matmul %12, %194, %cst_126 {dimension_numbers = #tpu.dot_dimension_numbers<[1], [0], [0], [1], [0, 0, 1, 1], [], []>} : vector<16x16xf32>, vector<16x9xf32>, vector<16x9xf32> -> vector<16x9xf32>
    %197 = arith.subf %195, %196 : vector<16x9xf32>
    %cst_127 = arith.constant dense<0.000000e+00> : vector<16x9xf32>
    %198 = tpu.matmul %10, %194, %cst_127 {dimension_numbers = #tpu.dot_dimension_numbers<[1], [0], [0], [1], [0, 0, 1, 1], [], []>} : vector<16x16xf32>, vector<16x9xf32>, vector<16x9xf32> -> vector<16x9xf32>
    %cst_128 = arith.constant dense<0.000000e+00> : vector<16x9xf32>
    %199 = tpu.matmul %12, %193, %cst_128 {dimension_numbers = #tpu.dot_dimension_numbers<[1], [0], [0], [1], [0, 0, 1, 1], [], []>} : vector<16x16xf32>, vector<16x9xf32>, vector<16x9xf32> -> vector<16x9xf32>
    %200 = arith.addf %198, %199 : vector<16x9xf32>
    %cst_129 = arith.constant dense<0.000000e+00> : vector<16x16xf32>
    %201 = tpu.matmul %197, %14, %cst_129 {dimension_numbers = #tpu.dot_dimension_numbers<[1], [0], [0], [1], [0, 0, 1, 1], [], []>} : vector<16x9xf32>, vector<9x16xf32>, vector<16x16xf32> -> vector<16x16xf32>
    %cst_130 = arith.constant dense<0.000000e+00> : vector<16x16xf32>
    %202 = tpu.matmul %200, %16, %cst_130 {dimension_numbers = #tpu.dot_dimension_numbers<[1], [0], [0], [1], [0, 0, 1, 1], [], []>} : vector<16x9xf32>, vector<9x16xf32>, vector<16x16xf32> -> vector<16x16xf32>
    %203 = arith.addf %201, %202 : vector<16x16xf32>
    %c0_131 = arith.constant 0 : index
    %204 = memref.load %arg12[%c0_131] : memref<4xf32, #tpu.memory_space<smem>>
    %205 = vector.broadcast %204 : f32 to vector<16x16xf32>
    %206 = arith.addf %203, %205 : vector<16x16xf32>
    %c0_132 = arith.constant 0 : index
    %c0_133 = arith.constant 0 : index
    %207 = memref.load %arg11[%c0_132, %c0_133] : memref<4x4xf32, #tpu.memory_space<smem>>
    %208 = vector.broadcast %207 : f32 to vector<16x16xf32>
    %209 = arith.mulf %208, %22 : vector<16x16xf32>
    %210 = arith.addf %206, %209 : vector<16x16xf32>
    %c0_134 = arith.constant 0 : index
    %c1_135 = arith.constant 1 : index
    %211 = memref.load %arg11[%c0_134, %c1_135] : memref<4x4xf32, #tpu.memory_space<smem>>
    %212 = vector.broadcast %211 : f32 to vector<16x16xf32>
    %213 = arith.mulf %212, %54 : vector<16x16xf32>
    %214 = arith.addf %210, %213 : vector<16x16xf32>
    %c0_136 = arith.constant 0 : index
    %c2_137 = arith.constant 2 : index
    %215 = memref.load %arg11[%c0_136, %c2_137] : memref<4x4xf32, #tpu.memory_space<smem>>
    %216 = vector.broadcast %215 : f32 to vector<16x16xf32>
    %217 = arith.mulf %216, %86 : vector<16x16xf32>
    %218 = arith.addf %214, %217 : vector<16x16xf32>
    %c0_138 = arith.constant 0 : index
    %c3_139 = arith.constant 3 : index
    %219 = memref.load %arg11[%c0_138, %c3_139] : memref<4x4xf32, #tpu.memory_space<smem>>
    %220 = vector.broadcast %219 : f32 to vector<16x16xf32>
    %221 = arith.mulf %220, %118 : vector<16x16xf32>
    %222 = arith.addf %218, %221 : vector<16x16xf32>
    %cst_140 = arith.constant 5.000000e-01 : f32
    %223 = vector.broadcast %cst_140 : f32 to vector<16x16xf32>
    %224 = arith.mulf %223, %222 : vector<16x16xf32>
    %cst_141 = arith.constant 0.707106769 : f32
    %225 = vector.broadcast %cst_141 : f32 to vector<16x16xf32>
    %226 = arith.mulf %222, %225 : vector<16x16xf32>
    %227 = math.absf %226 : vector<16x16xf32>
    %cst_142 = arith.constant 0.327591091 : f32
    %228 = vector.broadcast %cst_142 : f32 to vector<16x16xf32>
    %229 = arith.mulf %228, %227 : vector<16x16xf32>
    %cst_143 = arith.constant 1.000000e+00 : f32
    %230 = vector.broadcast %cst_143 : f32 to vector<16x16xf32>
    %231 = arith.addf %230, %229 : vector<16x16xf32>
    %cst_144 = arith.constant 1.000000e+00 : f32
    %232 = vector.broadcast %cst_144 : f32 to vector<16x16xf32>
    %233 = arith.divf %232, %231 : vector<16x16xf32>
    %cst_145 = arith.constant 1.06140542 : f32
    %234 = vector.broadcast %cst_145 : f32 to vector<16x16xf32>
    %235 = arith.mulf %233, %234 : vector<16x16xf32>
    %cst_146 = arith.constant -1.45315206 : f32
    %236 = vector.broadcast %cst_146 : f32 to vector<16x16xf32>
    %237 = arith.addf %236, %235 : vector<16x16xf32>
    %238 = arith.mulf %233, %237 : vector<16x16xf32>
    %cst_147 = arith.constant 1.42141378 : f32
    %239 = vector.broadcast %cst_147 : f32 to vector<16x16xf32>
    %240 = arith.addf %239, %238 : vector<16x16xf32>
    %241 = arith.mulf %233, %240 : vector<16x16xf32>
    %cst_148 = arith.constant -0.284496725 : f32
    %242 = vector.broadcast %cst_148 : f32 to vector<16x16xf32>
    %243 = arith.addf %242, %241 : vector<16x16xf32>
    %244 = arith.mulf %233, %243 : vector<16x16xf32>
    %cst_149 = arith.constant 0.254829586 : f32
    %245 = vector.broadcast %cst_149 : f32 to vector<16x16xf32>
    %246 = arith.addf %245, %244 : vector<16x16xf32>
    %247 = arith.mulf %233, %246 : vector<16x16xf32>
    %cst_150 = arith.constant 0.000000e+00 : f32
    %248 = vector.broadcast %cst_150 : f32 to vector<16x16xf32>
    %249 = arith.subf %248, %227 : vector<16x16xf32>
    %250 = arith.mulf %249, %227 : vector<16x16xf32>
    %251 = math.exp %250 : vector<16x16xf32>
    %252 = arith.mulf %247, %251 : vector<16x16xf32>
    %cst_151 = arith.constant 1.000000e+00 : f32
    %253 = vector.broadcast %cst_151 : f32 to vector<16x16xf32>
    %254 = arith.subf %253, %252 : vector<16x16xf32>
    %cst_152 = arith.constant 0.000000e+00 : f32
    %255 = vector.broadcast %cst_152 : f32 to vector<16x16xf32>
    %256 = arith.cmpf oge, %226, %255 : vector<16x16xf32>
    %cst_153 = arith.constant 0.000000e+00 : f32
    %257 = vector.broadcast %cst_153 : f32 to vector<16x16xf32>
    %258 = arith.subf %257, %254 : vector<16x16xf32>
    %259 = arith.select %256, %254, %258 : vector<16x16xi1>, vector<16x16xf32>
    %cst_154 = arith.constant 1.000000e+00 : f32
    %260 = vector.broadcast %cst_154 : f32 to vector<16x16xf32>
    %261 = arith.addf %260, %259 : vector<16x16xf32>
    %262 = arith.mulf %224, %261 : vector<16x16xf32>
    %cst_155 = arith.constant dense<0.000000e+00> : vector<16xf32>
    %263 = vector.multi_reduction <add>, %262, %cst_155 [1] : vector<16x16xf32> to vector<16xf32>
    %264 = vector.shape_cast %263 : vector<16xf32> to vector<16x1xf32>
    %cst_156 = arith.constant dense<0.000000e+00> : vector<1xf32>
    %265 = vector.multi_reduction <add>, %264, %cst_156 [0] : vector<16x1xf32> to vector<1xf32>
    %266 = vector.shape_cast %265 : vector<1xf32> to vector<1x1xf32>
    %cst_157 = arith.constant 2.560000e+02 : f32
    %267 = vector.broadcast %cst_157 : f32 to vector<1x1xf32>
    %268 = arith.divf %266, %267 : vector<1x1xf32>
    %269 = vector.broadcast %268 : vector<1x1xf32> to vector<16x16xf32>
    %270 = arith.subf %262, %269 : vector<16x16xf32>
    %271 = arith.mulf %270, %270 : vector<16x16xf32>
    %cst_158 = arith.constant dense<0.000000e+00> : vector<16xf32>
    %272 = vector.multi_reduction <add>, %271, %cst_158 [1] : vector<16x16xf32> to vector<16xf32>
    %273 = vector.shape_cast %272 : vector<16xf32> to vector<16x1xf32>
    %cst_159 = arith.constant dense<0.000000e+00> : vector<1xf32>
    %274 = vector.multi_reduction <add>, %273, %cst_159 [0] : vector<16x1xf32> to vector<1xf32>
    %275 = vector.shape_cast %274 : vector<1xf32> to vector<1x1xf32>
    %cst_160 = arith.constant 2.560000e+02 : f32
    %276 = vector.broadcast %cst_160 : f32 to vector<1x1xf32>
    %277 = arith.divf %275, %276 : vector<1x1xf32>
    %cst_161 = arith.constant 9.99999997E-7 : f32
    %278 = vector.broadcast %cst_161 : f32 to vector<1x1xf32>
    %279 = arith.addf %277, %278 : vector<1x1xf32>
    %280 = math.rsqrt %279 : vector<1x1xf32>
    %281 = vector.broadcast %280 : vector<1x1xf32> to vector<16x16xf32>
    %282 = arith.mulf %270, %281 : vector<16x16xf32>
    %283 = arith.mulf %282, %19 : vector<16x16xf32>
    %284 = arith.addf %283, %20 : vector<16x16xf32>
    %285 = arith.index_cast %arg0 : i32 to index
    %c0_162 = arith.constant 0 : index
    %286 = memref.load %arg13[%285, %c0_162] : memref<2x4xf32, #tpu.memory_space<smem>>
    %287 = arith.index_cast %arg0 : i32 to index
    %c0_163 = arith.constant 0 : index
    %288 = memref.load %arg14[%287, %c0_163] : memref<2x4xf32, #tpu.memory_space<smem>>
    %289 = arith.mulf %286, %0 : f32
    %cst_164 = arith.constant 1.000000e+00 : f32
    %290 = arith.addf %cst_164, %289 : f32
    %291 = vector.broadcast %290 : f32 to vector<16x16xf32>
    %292 = arith.mulf %291, %284 : vector<16x16xf32>
    %293 = arith.mulf %288, %0 : f32
    %294 = vector.broadcast %293 : f32 to vector<16x16xf32>
    %295 = arith.addf %292, %294 : vector<16x16xf32>
    %c0_165 = arith.constant 0 : index
    %c0_166 = arith.constant 0 : index
    %c0_167 = arith.constant 0 : index
    %c0_168 = arith.constant 0 : index
    %296 = vector.load %arg16[%c0_165, %c0_166, %c0_167, %c0_168] : memref<1x4x16x16xf32, #tpu.memory_space<vmem>>, vector<1x1x16x16xf32>
    %297 = vector.shape_cast %296 : vector<1x1x16x16xf32> to vector<16x16xf32>
    %298 = vector.shape_cast %295 : vector<16x16xf32> to vector<1x1x16x16xf32>
    tpu.vector_store %arg16[%c0_165, %c0_166, %c0_167, %c0_168], %298 {strides = array<i32>} : memref<1x4x16x16xf32, #tpu.memory_space<vmem>>, vector<1x1x16x16xf32>,
    %c0_169 = arith.constant 0 : index
    %c1_170 = arith.constant 1 : index
    %c0_171 = arith.constant 0 : index
    %c0_172 = arith.constant 0 : index
    %299 = vector.load %arg6[%c0_169, %c1_170, %c0_171, %c0_172] : memref<2x16x16x9xf32, #tpu.memory_space<vmem>>, vector<1x1x16x9xf32>
    %300 = vector.shape_cast %299 : vector<1x1x16x9xf32> to vector<16x9xf32>
    %c1_173 = arith.constant 1 : index
    %c1_174 = arith.constant 1 : index
    %c0_175 = arith.constant 0 : index
    %c0_176 = arith.constant 0 : index
    %301 = vector.load %arg6[%c1_173, %c1_174, %c0_175, %c0_176] : memref<2x16x16x9xf32, #tpu.memory_space<vmem>>, vector<1x1x16x9xf32>
    %302 = vector.shape_cast %301 : vector<1x1x16x9xf32> to vector<16x9xf32>
    %303 = arith.mulf %49, %300 : vector<16x9xf32>
    %304 = arith.mulf %52, %302 : vector<16x9xf32>
    %305 = arith.subf %303, %304 : vector<16x9xf32>
    %306 = arith.mulf %49, %302 : vector<16x9xf32>
    %307 = arith.mulf %52, %300 : vector<16x9xf32>
    %308 = arith.addf %306, %307 : vector<16x9xf32>
    %c0_177 = arith.constant 0 : index
    %c5 = arith.constant 5 : index
    %c0_178 = arith.constant 0 : index
    %c0_179 = arith.constant 0 : index
    %309 = vector.load %arg6[%c0_177, %c5, %c0_178, %c0_179] : memref<2x16x16x9xf32, #tpu.memory_space<vmem>>, vector<1x1x16x9xf32>
    %310 = vector.shape_cast %309 : vector<1x1x16x9xf32> to vector<16x9xf32>
    %c1_180 = arith.constant 1 : index
    %c5_181 = arith.constant 5 : index
    %c0_182 = arith.constant 0 : index
    %c0_183 = arith.constant 0 : index
    %311 = vector.load %arg6[%c1_180, %c5_181, %c0_182, %c0_183] : memref<2x16x16x9xf32, #tpu.memory_space<vmem>>, vector<1x1x16x9xf32>
    %312 = vector.shape_cast %311 : vector<1x1x16x9xf32> to vector<16x9xf32>
    %313 = arith.mulf %81, %310 : vector<16x9xf32>
    %314 = arith.mulf %84, %312 : vector<16x9xf32>
    %315 = arith.subf %313, %314 : vector<16x9xf32>
    %316 = arith.mulf %81, %312 : vector<16x9xf32>
    %317 = arith.mulf %84, %310 : vector<16x9xf32>
    %318 = arith.addf %316, %317 : vector<16x9xf32>
    %319 = arith.addf %305, %315 : vector<16x9xf32>
    %320 = arith.addf %308, %318 : vector<16x9xf32>
    %c0_184 = arith.constant 0 : index
    %c9 = arith.constant 9 : index
    %c0_185 = arith.constant 0 : index
    %c0_186 = arith.constant 0 : index
    %321 = vector.load %arg6[%c0_184, %c9, %c0_185, %c0_186] : memref<2x16x16x9xf32, #tpu.memory_space<vmem>>, vector<1x1x16x9xf32>
    %322 = vector.shape_cast %321 : vector<1x1x16x9xf32> to vector<16x9xf32>
    %c1_187 = arith.constant 1 : index
    %c9_188 = arith.constant 9 : index
    %c0_189 = arith.constant 0 : index
    %c0_190 = arith.constant 0 : index
    %323 = vector.load %arg6[%c1_187, %c9_188, %c0_189, %c0_190] : memref<2x16x16x9xf32, #tpu.memory_space<vmem>>, vector<1x1x16x9xf32>
    %324 = vector.shape_cast %323 : vector<1x1x16x9xf32> to vector<16x9xf32>
    %325 = arith.mulf %113, %322 : vector<16x9xf32>
    %326 = arith.mulf %116, %324 : vector<16x9xf32>
    %327 = arith.subf %325, %326 : vector<16x9xf32>
    %328 = arith.mulf %113, %324 : vector<16x9xf32>
    %329 = arith.mulf %116, %322 : vector<16x9xf32>
    %330 = arith.addf %328, %329 : vector<16x9xf32>
    %331 = arith.addf %319, %327 : vector<16x9xf32>
    %332 = arith.addf %320, %330 : vector<16x9xf32>
    %c0_191 = arith.constant 0 : index
    %c13 = arith.constant 13 : index
    %c0_192 = arith.constant 0 : index
    %c0_193 = arith.constant 0 : index
    %333 = vector.load %arg6[%c0_191, %c13, %c0_192, %c0_193] : memref<2x16x16x9xf32, #tpu.memory_space<vmem>>, vector<1x1x16x9xf32>
    %334 = vector.shape_cast %333 : vector<1x1x16x9xf32> to vector<16x9xf32>
    %c1_194 = arith.constant 1 : index
    %c13_195 = arith.constant 13 : index
    %c0_196 = arith.constant 0 : index
    %c0_197 = arith.constant 0 : index
    %335 = vector.load %arg6[%c1_194, %c13_195, %c0_196, %c0_197] : memref<2x16x16x9xf32, #tpu.memory_space<vmem>>, vector<1x1x16x9xf32>
    %336 = vector.shape_cast %335 : vector<1x1x16x9xf32> to vector<16x9xf32>
    %337 = arith.mulf %145, %334 : vector<16x9xf32>
    %338 = arith.mulf %148, %336 : vector<16x9xf32>
    %339 = arith.subf %337, %338 : vector<16x9xf32>
    %340 = arith.mulf %145, %336 : vector<16x9xf32>
    %341 = arith.mulf %148, %334 : vector<16x9xf32>
    %342 = arith.addf %340, %341 : vector<16x9xf32>
    %343 = arith.addf %331, %339 : vector<16x9xf32>
    %344 = arith.addf %332, %342 : vector<16x9xf32>
    %cst_198 = arith.constant dense<0.000000e+00> : vector<16x9xf32>
    %345 = tpu.matmul %10, %343, %cst_198 {dimension_numbers = #tpu.dot_dimension_numbers<[1], [0], [0], [1], [0, 0, 1, 1], [], []>} : vector<16x16xf32>, vector<16x9xf32>, vector<16x9xf32> -> vector<16x9xf32>
    %cst_199 = arith.constant dense<0.000000e+00> : vector<16x9xf32>
    %346 = tpu.matmul %12, %344, %cst_199 {dimension_numbers = #tpu.dot_dimension_numbers<[1], [0], [0], [1], [0, 0, 1, 1], [], []>} : vector<16x16xf32>, vector<16x9xf32>, vector<16x9xf32> -> vector<16x9xf32>
    %347 = arith.subf %345, %346 : vector<16x9xf32>
    %cst_200 = arith.constant dense<0.000000e+00> : vector<16x9xf32>
    %348 = tpu.matmul %10, %344, %cst_200 {dimension_numbers = #tpu.dot_dimension_numbers<[1], [0], [0], [1], [0, 0, 1, 1], [], []>} : vector<16x16xf32>, vector<16x9xf32>, vector<16x9xf32> -> vector<16x9xf32>
    %cst_201 = arith.constant dense<0.000000e+00> : vector<16x9xf32>
    %349 = tpu.matmul %12, %343, %cst_201 {dimension_numbers = #tpu.dot_dimension_numbers<[1], [0], [0], [1], [0, 0, 1, 1], [], []>} : vector<16x16xf32>, vector<16x9xf32>, vector<16x9xf32> -> vector<16x9xf32>
    %350 = arith.addf %348, %349 : vector<16x9xf32>
    %cst_202 = arith.constant dense<0.000000e+00> : vector<16x16xf32>
    %351 = tpu.matmul %347, %14, %cst_202 {dimension_numbers = #tpu.dot_dimension_numbers<[1], [0], [0], [1], [0, 0, 1, 1], [], []>} : vector<16x9xf32>, vector<9x16xf32>, vector<16x16xf32> -> vector<16x16xf32>
    %cst_203 = arith.constant dense<0.000000e+00> : vector<16x16xf32>
    %352 = tpu.matmul %350, %16, %cst_203 {dimension_numbers = #tpu.dot_dimension_numbers<[1], [0], [0], [1], [0, 0, 1, 1], [], []>} : vector<16x9xf32>, vector<9x16xf32>, vector<16x16xf32> -> vector<16x16xf32>
    %353 = arith.addf %351, %352 : vector<16x16xf32>
    %c1_204 = arith.constant 1 : index
    %354 = memref.load %arg12[%c1_204] : memref<4xf32, #tpu.memory_space<smem>>
    %355 = vector.broadcast %354 : f32 to vector<16x16xf32>
    %356 = arith.addf %353, %355 : vector<16x16xf32>
    %c1_205 = arith.constant 1 : index
    %c0_206 = arith.constant 0 : index
    %357 = memref.load %arg11[%c1_205, %c0_206] : memref<4x4xf32, #tpu.memory_space<smem>>
    %358 = vector.broadcast %357 : f32 to vector<16x16xf32>
    %359 = arith.mulf %358, %22 : vector<16x16xf32>
    %360 = arith.addf %356, %359 : vector<16x16xf32>
    %c1_207 = arith.constant 1 : index
    %c1_208 = arith.constant 1 : index
    %361 = memref.load %arg11[%c1_207, %c1_208] : memref<4x4xf32, #tpu.memory_space<smem>>
    %362 = vector.broadcast %361 : f32 to vector<16x16xf32>
    %363 = arith.mulf %362, %54 : vector<16x16xf32>
    %364 = arith.addf %360, %363 : vector<16x16xf32>
    %c1_209 = arith.constant 1 : index
    %c2_210 = arith.constant 2 : index
    %365 = memref.load %arg11[%c1_209, %c2_210] : memref<4x4xf32, #tpu.memory_space<smem>>
    %366 = vector.broadcast %365 : f32 to vector<16x16xf32>
    %367 = arith.mulf %366, %86 : vector<16x16xf32>
    %368 = arith.addf %364, %367 : vector<16x16xf32>
    %c1_211 = arith.constant 1 : index
    %c3_212 = arith.constant 3 : index
    %369 = memref.load %arg11[%c1_211, %c3_212] : memref<4x4xf32, #tpu.memory_space<smem>>
    %370 = vector.broadcast %369 : f32 to vector<16x16xf32>
    %371 = arith.mulf %370, %118 : vector<16x16xf32>
    %372 = arith.addf %368, %371 : vector<16x16xf32>
    %cst_213 = arith.constant 5.000000e-01 : f32
    %373 = vector.broadcast %cst_213 : f32 to vector<16x16xf32>
    %374 = arith.mulf %373, %372 : vector<16x16xf32>
    %cst_214 = arith.constant 0.707106769 : f32
    %375 = vector.broadcast %cst_214 : f32 to vector<16x16xf32>
    %376 = arith.mulf %372, %375 : vector<16x16xf32>
    %377 = math.absf %376 : vector<16x16xf32>
    %cst_215 = arith.constant 0.327591091 : f32
    %378 = vector.broadcast %cst_215 : f32 to vector<16x16xf32>
    %379 = arith.mulf %378, %377 : vector<16x16xf32>
    %cst_216 = arith.constant 1.000000e+00 : f32
    %380 = vector.broadcast %cst_216 : f32 to vector<16x16xf32>
    %381 = arith.addf %380, %379 : vector<16x16xf32>
    %cst_217 = arith.constant 1.000000e+00 : f32
    %382 = vector.broadcast %cst_217 : f32 to vector<16x16xf32>
    %383 = arith.divf %382, %381 : vector<16x16xf32>
    %cst_218 = arith.constant 1.06140542 : f32
    %384 = vector.broadcast %cst_218 : f32 to vector<16x16xf32>
    %385 = arith.mulf %383, %384 : vector<16x16xf32>
    %cst_219 = arith.constant -1.45315206 : f32
    %386 = vector.broadcast %cst_219 : f32 to vector<16x16xf32>
    %387 = arith.addf %386, %385 : vector<16x16xf32>
    %388 = arith.mulf %383, %387 : vector<16x16xf32>
    %cst_220 = arith.constant 1.42141378 : f32
    %389 = vector.broadcast %cst_220 : f32 to vector<16x16xf32>
    %390 = arith.addf %389, %388 : vector<16x16xf32>
    %391 = arith.mulf %383, %390 : vector<16x16xf32>
    %cst_221 = arith.constant -0.284496725 : f32
    %392 = vector.broadcast %cst_221 : f32 to vector<16x16xf32>
    %393 = arith.addf %392, %391 : vector<16x16xf32>
    %394 = arith.mulf %383, %393 : vector<16x16xf32>
    %cst_222 = arith.constant 0.254829586 : f32
    %395 = vector.broadcast %cst_222 : f32 to vector<16x16xf32>
    %396 = arith.addf %395, %394 : vector<16x16xf32>
    %397 = arith.mulf %383, %396 : vector<16x16xf32>
    %cst_223 = arith.constant 0.000000e+00 : f32
    %398 = vector.broadcast %cst_223 : f32 to vector<16x16xf32>
    %399 = arith.subf %398, %377 : vector<16x16xf32>
    %400 = arith.mulf %399, %377 : vector<16x16xf32>
    %401 = math.exp %400 : vector<16x16xf32>
    %402 = arith.mulf %397, %401 : vector<16x16xf32>
    %cst_224 = arith.constant 1.000000e+00 : f32
    %403 = vector.broadcast %cst_224 : f32 to vector<16x16xf32>
    %404 = arith.subf %403, %402 : vector<16x16xf32>
    %cst_225 = arith.constant 0.000000e+00 : f32
    %405 = vector.broadcast %cst_225 : f32 to vector<16x16xf32>
    %406 = arith.cmpf oge, %376, %405 : vector<16x16xf32>
    %cst_226 = arith.constant 0.000000e+00 : f32
    %407 = vector.broadcast %cst_226 : f32 to vector<16x16xf32>
    %408 = arith.subf %407, %404 : vector<16x16xf32>
    %409 = arith.select %406, %404, %408 : vector<16x16xi1>, vector<16x16xf32>
    %cst_227 = arith.constant 1.000000e+00 : f32
    %410 = vector.broadcast %cst_227 : f32 to vector<16x16xf32>
    %411 = arith.addf %410, %409 : vector<16x16xf32>
    %412 = arith.mulf %374, %411 : vector<16x16xf32>
    %cst_228 = arith.constant dense<0.000000e+00> : vector<16xf32>
    %413 = vector.multi_reduction <add>, %412, %cst_228 [1] : vector<16x16xf32> to vector<16xf32>
    %414 = vector.shape_cast %413 : vector<16xf32> to vector<16x1xf32>
    %cst_229 = arith.constant dense<0.000000e+00> : vector<1xf32>
    %415 = vector.multi_reduction <add>, %414, %cst_229 [0] : vector<16x1xf32> to vector<1xf32>
    %416 = vector.shape_cast %415 : vector<1xf32> to vector<1x1xf32>
    %cst_230 = arith.constant 2.560000e+02 : f32
    %417 = vector.broadcast %cst_230 : f32 to vector<1x1xf32>
    %418 = arith.divf %416, %417 : vector<1x1xf32>
    %419 = vector.broadcast %418 : vector<1x1xf32> to vector<16x16xf32>
    %420 = arith.subf %412, %419 : vector<16x16xf32>
    %421 = arith.mulf %420, %420 : vector<16x16xf32>
    %cst_231 = arith.constant dense<0.000000e+00> : vector<16xf32>
    %422 = vector.multi_reduction <add>, %421, %cst_231 [1] : vector<16x16xf32> to vector<16xf32>
    %423 = vector.shape_cast %422 : vector<16xf32> to vector<16x1xf32>
    %cst_232 = arith.constant dense<0.000000e+00> : vector<1xf32>
    %424 = vector.multi_reduction <add>, %423, %cst_232 [0] : vector<16x1xf32> to vector<1xf32>
    %425 = vector.shape_cast %424 : vector<1xf32> to vector<1x1xf32>
    %cst_233 = arith.constant 2.560000e+02 : f32
    %426 = vector.broadcast %cst_233 : f32 to vector<1x1xf32>
    %427 = arith.divf %425, %426 : vector<1x1xf32>
    %cst_234 = arith.constant 9.99999997E-7 : f32
    %428 = vector.broadcast %cst_234 : f32 to vector<1x1xf32>
    %429 = arith.addf %427, %428 : vector<1x1xf32>
    %430 = math.rsqrt %429 : vector<1x1xf32>
    %431 = vector.broadcast %430 : vector<1x1xf32> to vector<16x16xf32>
    %432 = arith.mulf %420, %431 : vector<16x16xf32>
    %433 = arith.mulf %432, %19 : vector<16x16xf32>
    %434 = arith.addf %433, %20 : vector<16x16xf32>
    %435 = arith.index_cast %arg0 : i32 to index
    %c1_235 = arith.constant 1 : index
    %436 = memref.load %arg13[%435, %c1_235] : memref<2x4xf32, #tpu.memory_space<smem>>
    %437 = arith.index_cast %arg0 : i32 to index
    %c1_236 = arith.constant 1 : index
    %438 = memref.load %arg14[%437, %c1_236] : memref<2x4xf32, #tpu.memory_space<smem>>
    %439 = arith.mulf %436, %0 : f32
    %cst_237 = arith.constant 1.000000e+00 : f32
    %440 = arith.addf %cst_237, %439 : f32
    %441 = vector.broadcast %440 : f32 to vector<16x16xf32>
    %442 = arith.mulf %441, %434 : vector<16x16xf32>
    %443 = arith.mulf %438, %0 : f32
    %444 = vector.broadcast %443 : f32 to vector<16x16xf32>
    %445 = arith.addf %442, %444 : vector<16x16xf32>
    %c0_238 = arith.constant 0 : index
    %c1_239 = arith.constant 1 : index
    %c0_240 = arith.constant 0 : index
    %c0_241 = arith.constant 0 : index
    %446 = vector.load %arg16[%c0_238, %c1_239, %c0_240, %c0_241] : memref<1x4x16x16xf32, #tpu.memory_space<vmem>>, vector<1x1x16x16xf32>
    %447 = vector.shape_cast %446 : vector<1x1x16x16xf32> to vector<16x16xf32>
    %448 = vector.shape_cast %445 : vector<16x16xf32> to vector<1x1x16x16xf32>
    tpu.vector_store %arg16[%c0_238, %c1_239, %c0_240, %c0_241], %448 {strides = array<i32>} : memref<1x4x16x16xf32, #tpu.memory_space<vmem>>, vector<1x1x16x16xf32>,
    %c0_242 = arith.constant 0 : index
    %c2_243 = arith.constant 2 : index
    %c0_244 = arith.constant 0 : index
    %c0_245 = arith.constant 0 : index
    %449 = vector.load %arg6[%c0_242, %c2_243, %c0_244, %c0_245] : memref<2x16x16x9xf32, #tpu.memory_space<vmem>>, vector<1x1x16x9xf32>
    %450 = vector.shape_cast %449 : vector<1x1x16x9xf32> to vector<16x9xf32>
    %c1_246 = arith.constant 1 : index
    %c2_247 = arith.constant 2 : index
    %c0_248 = arith.constant 0 : index
    %c0_249 = arith.constant 0 : index
    %451 = vector.load %arg6[%c1_246, %c2_247, %c0_248, %c0_249] : memref<2x16x16x9xf32, #tpu.memory_space<vmem>>, vector<1x1x16x9xf32>
    %452 = vector.shape_cast %451 : vector<1x1x16x9xf32> to vector<16x9xf32>
    %453 = arith.mulf %49, %450 : vector<16x9xf32>
    %454 = arith.mulf %52, %452 : vector<16x9xf32>
    %455 = arith.subf %453, %454 : vector<16x9xf32>
    %456 = arith.mulf %49, %452 : vector<16x9xf32>
    %457 = arith.mulf %52, %450 : vector<16x9xf32>
    %458 = arith.addf %456, %457 : vector<16x9xf32>
    %c0_250 = arith.constant 0 : index
    %c6 = arith.constant 6 : index
    %c0_251 = arith.constant 0 : index
    %c0_252 = arith.constant 0 : index
    %459 = vector.load %arg6[%c0_250, %c6, %c0_251, %c0_252] : memref<2x16x16x9xf32, #tpu.memory_space<vmem>>, vector<1x1x16x9xf32>
    %460 = vector.shape_cast %459 : vector<1x1x16x9xf32> to vector<16x9xf32>
    %c1_253 = arith.constant 1 : index
    %c6_254 = arith.constant 6 : index
    %c0_255 = arith.constant 0 : index
    %c0_256 = arith.constant 0 : index
    %461 = vector.load %arg6[%c1_253, %c6_254, %c0_255, %c0_256] : memref<2x16x16x9xf32, #tpu.memory_space<vmem>>, vector<1x1x16x9xf32>
    %462 = vector.shape_cast %461 : vector<1x1x16x9xf32> to vector<16x9xf32>
    %463 = arith.mulf %81, %460 : vector<16x9xf32>
    %464 = arith.mulf %84, %462 : vector<16x9xf32>
    %465 = arith.subf %463, %464 : vector<16x9xf32>
    %466 = arith.mulf %81, %462 : vector<16x9xf32>
    %467 = arith.mulf %84, %460 : vector<16x9xf32>
    %468 = arith.addf %466, %467 : vector<16x9xf32>
    %469 = arith.addf %455, %465 : vector<16x9xf32>
    %470 = arith.addf %458, %468 : vector<16x9xf32>
    %c0_257 = arith.constant 0 : index
    %c10 = arith.constant 10 : index
    %c0_258 = arith.constant 0 : index
    %c0_259 = arith.constant 0 : index
    %471 = vector.load %arg6[%c0_257, %c10, %c0_258, %c0_259] : memref<2x16x16x9xf32, #tpu.memory_space<vmem>>, vector<1x1x16x9xf32>
    %472 = vector.shape_cast %471 : vector<1x1x16x9xf32> to vector<16x9xf32>
    %c1_260 = arith.constant 1 : index
    %c10_261 = arith.constant 10 : index
    %c0_262 = arith.constant 0 : index
    %c0_263 = arith.constant 0 : index
    %473 = vector.load %arg6[%c1_260, %c10_261, %c0_262, %c0_263] : memref<2x16x16x9xf32, #tpu.memory_space<vmem>>, vector<1x1x16x9xf32>
    %474 = vector.shape_cast %473 : vector<1x1x16x9xf32> to vector<16x9xf32>
    %475 = arith.mulf %113, %472 : vector<16x9xf32>
    %476 = arith.mulf %116, %474 : vector<16x9xf32>
    %477 = arith.subf %475, %476 : vector<16x9xf32>
    %478 = arith.mulf %113, %474 : vector<16x9xf32>
    %479 = arith.mulf %116, %472 : vector<16x9xf32>
    %480 = arith.addf %478, %479 : vector<16x9xf32>
    %481 = arith.addf %469, %477 : vector<16x9xf32>
    %482 = arith.addf %470, %480 : vector<16x9xf32>
    %c0_264 = arith.constant 0 : index
    %c14 = arith.constant 14 : index
    %c0_265 = arith.constant 0 : index
    %c0_266 = arith.constant 0 : index
    %483 = vector.load %arg6[%c0_264, %c14, %c0_265, %c0_266] : memref<2x16x16x9xf32, #tpu.memory_space<vmem>>, vector<1x1x16x9xf32>
    %484 = vector.shape_cast %483 : vector<1x1x16x9xf32> to vector<16x9xf32>
    %c1_267 = arith.constant 1 : index
    %c14_268 = arith.constant 14 : index
    %c0_269 = arith.constant 0 : index
    %c0_270 = arith.constant 0 : index
    %485 = vector.load %arg6[%c1_267, %c14_268, %c0_269, %c0_270] : memref<2x16x16x9xf32, #tpu.memory_space<vmem>>, vector<1x1x16x9xf32>
    %486 = vector.shape_cast %485 : vector<1x1x16x9xf32> to vector<16x9xf32>
    %487 = arith.mulf %145, %484 : vector<16x9xf32>
    %488 = arith.mulf %148, %486 : vector<16x9xf32>
    %489 = arith.subf %487, %488 : vector<16x9xf32>
    %490 = arith.mulf %145, %486 : vector<16x9xf32>
    %491 = arith.mulf %148, %484 : vector<16x9xf32>
    %492 = arith.addf %490, %491 : vector<16x9xf32>
    %493 = arith.addf %481, %489 : vector<16x9xf32>
    %494 = arith.addf %482, %492 : vector<16x9xf32>
    %cst_271 = arith.constant dense<0.000000e+00> : vector<16x9xf32>
    %495 = tpu.matmul %10, %493, %cst_271 {dimension_numbers = #tpu.dot_dimension_numbers<[1], [0], [0], [1], [0, 0, 1, 1], [], []>} : vector<16x16xf32>, vector<16x9xf32>, vector<16x9xf32> -> vector<16x9xf32>
    %cst_272 = arith.constant dense<0.000000e+00> : vector<16x9xf32>
    %496 = tpu.matmul %12, %494, %cst_272 {dimension_numbers = #tpu.dot_dimension_numbers<[1], [0], [0], [1], [0, 0, 1, 1], [], []>} : vector<16x16xf32>, vector<16x9xf32>, vector<16x9xf32> -> vector<16x9xf32>
    %497 = arith.subf %495, %496 : vector<16x9xf32>
    %cst_273 = arith.constant dense<0.000000e+00> : vector<16x9xf32>
    %498 = tpu.matmul %10, %494, %cst_273 {dimension_numbers = #tpu.dot_dimension_numbers<[1], [0], [0], [1], [0, 0, 1, 1], [], []>} : vector<16x16xf32>, vector<16x9xf32>, vector<16x9xf32> -> vector<16x9xf32>
    %cst_274 = arith.constant dense<0.000000e+00> : vector<16x9xf32>
    %499 = tpu.matmul %12, %493, %cst_274 {dimension_numbers = #tpu.dot_dimension_numbers<[1], [0], [0], [1], [0, 0, 1, 1], [], []>} : vector<16x16xf32>, vector<16x9xf32>, vector<16x9xf32> -> vector<16x9xf32>
    %500 = arith.addf %498, %499 : vector<16x9xf32>
    %cst_275 = arith.constant dense<0.000000e+00> : vector<16x16xf32>
    %501 = tpu.matmul %497, %14, %cst_275 {dimension_numbers = #tpu.dot_dimension_numbers<[1], [0], [0], [1], [0, 0, 1, 1], [], []>} : vector<16x9xf32>, vector<9x16xf32>, vector<16x16xf32> -> vector<16x16xf32>
    %cst_276 = arith.constant dense<0.000000e+00> : vector<16x16xf32>
    %502 = tpu.matmul %500, %16, %cst_276 {dimension_numbers = #tpu.dot_dimension_numbers<[1], [0], [0], [1], [0, 0, 1, 1], [], []>} : vector<16x9xf32>, vector<9x16xf32>, vector<16x16xf32> -> vector<16x16xf32>
    %503 = arith.addf %501, %502 : vector<16x16xf32>
    %c2_277 = arith.constant 2 : index
    %504 = memref.load %arg12[%c2_277] : memref<4xf32, #tpu.memory_space<smem>>
    %505 = vector.broadcast %504 : f32 to vector<16x16xf32>
    %506 = arith.addf %503, %505 : vector<16x16xf32>
    %c2_278 = arith.constant 2 : index
    %c0_279 = arith.constant 0 : index
    %507 = memref.load %arg11[%c2_278, %c0_279] : memref<4x4xf32, #tpu.memory_space<smem>>
    %508 = vector.broadcast %507 : f32 to vector<16x16xf32>
    %509 = arith.mulf %508, %22 : vector<16x16xf32>
    %510 = arith.addf %506, %509 : vector<16x16xf32>
    %c2_280 = arith.constant 2 : index
    %c1_281 = arith.constant 1 : index
    %511 = memref.load %arg11[%c2_280, %c1_281] : memref<4x4xf32, #tpu.memory_space<smem>>
    %512 = vector.broadcast %511 : f32 to vector<16x16xf32>
    %513 = arith.mulf %512, %54 : vector<16x16xf32>
    %514 = arith.addf %510, %513 : vector<16x16xf32>
    %c2_282 = arith.constant 2 : index
    %c2_283 = arith.constant 2 : index
    %515 = memref.load %arg11[%c2_282, %c2_283] : memref<4x4xf32, #tpu.memory_space<smem>>
    %516 = vector.broadcast %515 : f32 to vector<16x16xf32>
    %517 = arith.mulf %516, %86 : vector<16x16xf32>
    %518 = arith.addf %514, %517 : vector<16x16xf32>
    %c2_284 = arith.constant 2 : index
    %c3_285 = arith.constant 3 : index
    %519 = memref.load %arg11[%c2_284, %c3_285] : memref<4x4xf32, #tpu.memory_space<smem>>
    %520 = vector.broadcast %519 : f32 to vector<16x16xf32>
    %521 = arith.mulf %520, %118 : vector<16x16xf32>
    %522 = arith.addf %518, %521 : vector<16x16xf32>
    %cst_286 = arith.constant 5.000000e-01 : f32
    %523 = vector.broadcast %cst_286 : f32 to vector<16x16xf32>
    %524 = arith.mulf %523, %522 : vector<16x16xf32>
    %cst_287 = arith.constant 0.707106769 : f32
    %525 = vector.broadcast %cst_287 : f32 to vector<16x16xf32>
    %526 = arith.mulf %522, %525 : vector<16x16xf32>
    %527 = math.absf %526 : vector<16x16xf32>
    %cst_288 = arith.constant 0.327591091 : f32
    %528 = vector.broadcast %cst_288 : f32 to vector<16x16xf32>
    %529 = arith.mulf %528, %527 : vector<16x16xf32>
    %cst_289 = arith.constant 1.000000e+00 : f32
    %530 = vector.broadcast %cst_289 : f32 to vector<16x16xf32>
    %531 = arith.addf %530, %529 : vector<16x16xf32>
    %cst_290 = arith.constant 1.000000e+00 : f32
    %532 = vector.broadcast %cst_290 : f32 to vector<16x16xf32>
    %533 = arith.divf %532, %531 : vector<16x16xf32>
    %cst_291 = arith.constant 1.06140542 : f32
    %534 = vector.broadcast %cst_291 : f32 to vector<16x16xf32>
    %535 = arith.mulf %533, %534 : vector<16x16xf32>
    %cst_292 = arith.constant -1.45315206 : f32
    %536 = vector.broadcast %cst_292 : f32 to vector<16x16xf32>
    %537 = arith.addf %536, %535 : vector<16x16xf32>
    %538 = arith.mulf %533, %537 : vector<16x16xf32>
    %cst_293 = arith.constant 1.42141378 : f32
    %539 = vector.broadcast %cst_293 : f32 to vector<16x16xf32>
    %540 = arith.addf %539, %538 : vector<16x16xf32>
    %541 = arith.mulf %533, %540 : vector<16x16xf32>
    %cst_294 = arith.constant -0.284496725 : f32
    %542 = vector.broadcast %cst_294 : f32 to vector<16x16xf32>
    %543 = arith.addf %542, %541 : vector<16x16xf32>
    %544 = arith.mulf %533, %543 : vector<16x16xf32>
    %cst_295 = arith.constant 0.254829586 : f32
    %545 = vector.broadcast %cst_295 : f32 to vector<16x16xf32>
    %546 = arith.addf %545, %544 : vector<16x16xf32>
    %547 = arith.mulf %533, %546 : vector<16x16xf32>
    %cst_296 = arith.constant 0.000000e+00 : f32
    %548 = vector.broadcast %cst_296 : f32 to vector<16x16xf32>
    %549 = arith.subf %548, %527 : vector<16x16xf32>
    %550 = arith.mulf %549, %527 : vector<16x16xf32>
    %551 = math.exp %550 : vector<16x16xf32>
    %552 = arith.mulf %547, %551 : vector<16x16xf32>
    %cst_297 = arith.constant 1.000000e+00 : f32
    %553 = vector.broadcast %cst_297 : f32 to vector<16x16xf32>
    %554 = arith.subf %553, %552 : vector<16x16xf32>
    %cst_298 = arith.constant 0.000000e+00 : f32
    %555 = vector.broadcast %cst_298 : f32 to vector<16x16xf32>
    %556 = arith.cmpf oge, %526, %555 : vector<16x16xf32>
    %cst_299 = arith.constant 0.000000e+00 : f32
    %557 = vector.broadcast %cst_299 : f32 to vector<16x16xf32>
    %558 = arith.subf %557, %554 : vector<16x16xf32>
    %559 = arith.select %556, %554, %558 : vector<16x16xi1>, vector<16x16xf32>
    %cst_300 = arith.constant 1.000000e+00 : f32
    %560 = vector.broadcast %cst_300 : f32 to vector<16x16xf32>
    %561 = arith.addf %560, %559 : vector<16x16xf32>
    %562 = arith.mulf %524, %561 : vector<16x16xf32>
    %cst_301 = arith.constant dense<0.000000e+00> : vector<16xf32>
    %563 = vector.multi_reduction <add>, %562, %cst_301 [1] : vector<16x16xf32> to vector<16xf32>
    %564 = vector.shape_cast %563 : vector<16xf32> to vector<16x1xf32>
    %cst_302 = arith.constant dense<0.000000e+00> : vector<1xf32>
    %565 = vector.multi_reduction <add>, %564, %cst_302 [0] : vector<16x1xf32> to vector<1xf32>
    %566 = vector.shape_cast %565 : vector<1xf32> to vector<1x1xf32>
    %cst_303 = arith.constant 2.560000e+02 : f32
    %567 = vector.broadcast %cst_303 : f32 to vector<1x1xf32>
    %568 = arith.divf %566, %567 : vector<1x1xf32>
    %569 = vector.broadcast %568 : vector<1x1xf32> to vector<16x16xf32>
    %570 = arith.subf %562, %569 : vector<16x16xf32>
    %571 = arith.mulf %570, %570 : vector<16x16xf32>
    %cst_304 = arith.constant dense<0.000000e+00> : vector<16xf32>
    %572 = vector.multi_reduction <add>, %571, %cst_304 [1] : vector<16x16xf32> to vector<16xf32>
    %573 = vector.shape_cast %572 : vector<16xf32> to vector<16x1xf32>
    %cst_305 = arith.constant dense<0.000000e+00> : vector<1xf32>
    %574 = vector.multi_reduction <add>, %573, %cst_305 [0] : vector<16x1xf32> to vector<1xf32>
    %575 = vector.shape_cast %574 : vector<1xf32> to vector<1x1xf32>
    %cst_306 = arith.constant 2.560000e+02 : f32
    %576 = vector.broadcast %cst_306 : f32 to vector<1x1xf32>
    %577 = arith.divf %575, %576 : vector<1x1xf32>
    %cst_307 = arith.constant 9.99999997E-7 : f32
    %578 = vector.broadcast %cst_307 : f32 to vector<1x1xf32>
    %579 = arith.addf %577, %578 : vector<1x1xf32>
    %580 = math.rsqrt %579 : vector<1x1xf32>
    %581 = vector.broadcast %580 : vector<1x1xf32> to vector<16x16xf32>
    %582 = arith.mulf %570, %581 : vector<16x16xf32>
    %583 = arith.mulf %582, %19 : vector<16x16xf32>
    %584 = arith.addf %583, %20 : vector<16x16xf32>
    %585 = arith.index_cast %arg0 : i32 to index
    %c2_308 = arith.constant 2 : index
    %586 = memref.load %arg13[%585, %c2_308] : memref<2x4xf32, #tpu.memory_space<smem>>
    %587 = arith.index_cast %arg0 : i32 to index
    %c2_309 = arith.constant 2 : index
    %588 = memref.load %arg14[%587, %c2_309] : memref<2x4xf32, #tpu.memory_space<smem>>
    %589 = arith.mulf %586, %0 : f32
    %cst_310 = arith.constant 1.000000e+00 : f32
    %590 = arith.addf %cst_310, %589 : f32
    %591 = vector.broadcast %590 : f32 to vector<16x16xf32>
    %592 = arith.mulf %591, %584 : vector<16x16xf32>
    %593 = arith.mulf %588, %0 : f32
    %594 = vector.broadcast %593 : f32 to vector<16x16xf32>
    %595 = arith.addf %592, %594 : vector<16x16xf32>
    %c0_311 = arith.constant 0 : index
    %c2_312 = arith.constant 2 : index
    %c0_313 = arith.constant 0 : index
    %c0_314 = arith.constant 0 : index
    %596 = vector.load %arg16[%c0_311, %c2_312, %c0_313, %c0_314] : memref<1x4x16x16xf32, #tpu.memory_space<vmem>>, vector<1x1x16x16xf32>
    %597 = vector.shape_cast %596 : vector<1x1x16x16xf32> to vector<16x16xf32>
    %598 = vector.shape_cast %595 : vector<16x16xf32> to vector<1x1x16x16xf32>
    tpu.vector_store %arg16[%c0_311, %c2_312, %c0_313, %c0_314], %598 {strides = array<i32>} : memref<1x4x16x16xf32, #tpu.memory_space<vmem>>, vector<1x1x16x16xf32>,
    %c0_315 = arith.constant 0 : index
    %c3_316 = arith.constant 3 : index
    %c0_317 = arith.constant 0 : index
    %c0_318 = arith.constant 0 : index
    %599 = vector.load %arg6[%c0_315, %c3_316, %c0_317, %c0_318] : memref<2x16x16x9xf32, #tpu.memory_space<vmem>>, vector<1x1x16x9xf32>
    %600 = vector.shape_cast %599 : vector<1x1x16x9xf32> to vector<16x9xf32>
    %c1_319 = arith.constant 1 : index
    %c3_320 = arith.constant 3 : index
    %c0_321 = arith.constant 0 : index
    %c0_322 = arith.constant 0 : index
    %601 = vector.load %arg6[%c1_319, %c3_320, %c0_321, %c0_322] : memref<2x16x16x9xf32, #tpu.memory_space<vmem>>, vector<1x1x16x9xf32>
    %602 = vector.shape_cast %601 : vector<1x1x16x9xf32> to vector<16x9xf32>
    %603 = arith.mulf %49, %600 : vector<16x9xf32>
    %604 = arith.mulf %52, %602 : vector<16x9xf32>
    %605 = arith.subf %603, %604 : vector<16x9xf32>
    %606 = arith.mulf %49, %602 : vector<16x9xf32>
    %607 = arith.mulf %52, %600 : vector<16x9xf32>
    %608 = arith.addf %606, %607 : vector<16x9xf32>
    %c0_323 = arith.constant 0 : index
    %c7 = arith.constant 7 : index
    %c0_324 = arith.constant 0 : index
    %c0_325 = arith.constant 0 : index
    %609 = vector.load %arg6[%c0_323, %c7, %c0_324, %c0_325] : memref<2x16x16x9xf32, #tpu.memory_space<vmem>>, vector<1x1x16x9xf32>
    %610 = vector.shape_cast %609 : vector<1x1x16x9xf32> to vector<16x9xf32>
    %c1_326 = arith.constant 1 : index
    %c7_327 = arith.constant 7 : index
    %c0_328 = arith.constant 0 : index
    %c0_329 = arith.constant 0 : index
    %611 = vector.load %arg6[%c1_326, %c7_327, %c0_328, %c0_329] : memref<2x16x16x9xf32, #tpu.memory_space<vmem>>, vector<1x1x16x9xf32>
    %612 = vector.shape_cast %611 : vector<1x1x16x9xf32> to vector<16x9xf32>
    %613 = arith.mulf %81, %610 : vector<16x9xf32>
    %614 = arith.mulf %84, %612 : vector<16x9xf32>
    %615 = arith.subf %613, %614 : vector<16x9xf32>
    %616 = arith.mulf %81, %612 : vector<16x9xf32>
    %617 = arith.mulf %84, %610 : vector<16x9xf32>
    %618 = arith.addf %616, %617 : vector<16x9xf32>
    %619 = arith.addf %605, %615 : vector<16x9xf32>
    %620 = arith.addf %608, %618 : vector<16x9xf32>
    %c0_330 = arith.constant 0 : index
    %c11 = arith.constant 11 : index
    %c0_331 = arith.constant 0 : index
    %c0_332 = arith.constant 0 : index
    %621 = vector.load %arg6[%c0_330, %c11, %c0_331, %c0_332] : memref<2x16x16x9xf32, #tpu.memory_space<vmem>>, vector<1x1x16x9xf32>
    %622 = vector.shape_cast %621 : vector<1x1x16x9xf32> to vector<16x9xf32>
    %c1_333 = arith.constant 1 : index
    %c11_334 = arith.constant 11 : index
    %c0_335 = arith.constant 0 : index
    %c0_336 = arith.constant 0 : index
    %623 = vector.load %arg6[%c1_333, %c11_334, %c0_335, %c0_336] : memref<2x16x16x9xf32, #tpu.memory_space<vmem>>, vector<1x1x16x9xf32>
    %624 = vector.shape_cast %623 : vector<1x1x16x9xf32> to vector<16x9xf32>
    %625 = arith.mulf %113, %622 : vector<16x9xf32>
    %626 = arith.mulf %116, %624 : vector<16x9xf32>
    %627 = arith.subf %625, %626 : vector<16x9xf32>
    %628 = arith.mulf %113, %624 : vector<16x9xf32>
    %629 = arith.mulf %116, %622 : vector<16x9xf32>
    %630 = arith.addf %628, %629 : vector<16x9xf32>
    %631 = arith.addf %619, %627 : vector<16x9xf32>
    %632 = arith.addf %620, %630 : vector<16x9xf32>
    %c0_337 = arith.constant 0 : index
    %c15 = arith.constant 15 : index
    %c0_338 = arith.constant 0 : index
    %c0_339 = arith.constant 0 : index
    %633 = vector.load %arg6[%c0_337, %c15, %c0_338, %c0_339] : memref<2x16x16x9xf32, #tpu.memory_space<vmem>>, vector<1x1x16x9xf32>
    %634 = vector.shape_cast %633 : vector<1x1x16x9xf32> to vector<16x9xf32>
    %c1_340 = arith.constant 1 : index
    %c15_341 = arith.constant 15 : index
    %c0_342 = arith.constant 0 : index
    %c0_343 = arith.constant 0 : index
    %635 = vector.load %arg6[%c1_340, %c15_341, %c0_342, %c0_343] : memref<2x16x16x9xf32, #tpu.memory_space<vmem>>, vector<1x1x16x9xf32>
    %636 = vector.shape_cast %635 : vector<1x1x16x9xf32> to vector<16x9xf32>
    %637 = arith.mulf %145, %634 : vector<16x9xf32>
    %638 = arith.mulf %148, %636 : vector<16x9xf32>
    %639 = arith.subf %637, %638 : vector<16x9xf32>
    %640 = arith.mulf %145, %636 : vector<16x9xf32>
    %641 = arith.mulf %148, %634 : vector<16x9xf32>
    %642 = arith.addf %640, %641 : vector<16x9xf32>
    %643 = arith.addf %631, %639 : vector<16x9xf32>
    %644 = arith.addf %632, %642 : vector<16x9xf32>
    %cst_344 = arith.constant dense<0.000000e+00> : vector<16x9xf32>
    %645 = tpu.matmul %10, %643, %cst_344 {dimension_numbers = #tpu.dot_dimension_numbers<[1], [0], [0], [1], [0, 0, 1, 1], [], []>} : vector<16x16xf32>, vector<16x9xf32>, vector<16x9xf32> -> vector<16x9xf32>
    %cst_345 = arith.constant dense<0.000000e+00> : vector<16x9xf32>
    %646 = tpu.matmul %12, %644, %cst_345 {dimension_numbers = #tpu.dot_dimension_numbers<[1], [0], [0], [1], [0, 0, 1, 1], [], []>} : vector<16x16xf32>, vector<16x9xf32>, vector<16x9xf32> -> vector<16x9xf32>
    %647 = arith.subf %645, %646 : vector<16x9xf32>
    %cst_346 = arith.constant dense<0.000000e+00> : vector<16x9xf32>
    %648 = tpu.matmul %10, %644, %cst_346 {dimension_numbers = #tpu.dot_dimension_numbers<[1], [0], [0], [1], [0, 0, 1, 1], [], []>} : vector<16x16xf32>, vector<16x9xf32>, vector<16x9xf32> -> vector<16x9xf32>
    %cst_347 = arith.constant dense<0.000000e+00> : vector<16x9xf32>
    %649 = tpu.matmul %12, %643, %cst_347 {dimension_numbers = #tpu.dot_dimension_numbers<[1], [0], [0], [1], [0, 0, 1, 1], [], []>} : vector<16x16xf32>, vector<16x9xf32>, vector<16x9xf32> -> vector<16x9xf32>
    %650 = arith.addf %648, %649 : vector<16x9xf32>
    %cst_348 = arith.constant dense<0.000000e+00> : vector<16x16xf32>
    %651 = tpu.matmul %647, %14, %cst_348 {dimension_numbers = #tpu.dot_dimension_numbers<[1], [0], [0], [1], [0, 0, 1, 1], [], []>} : vector<16x9xf32>, vector<9x16xf32>, vector<16x16xf32> -> vector<16x16xf32>
    %cst_349 = arith.constant dense<0.000000e+00> : vector<16x16xf32>
    %652 = tpu.matmul %650, %16, %cst_349 {dimension_numbers = #tpu.dot_dimension_numbers<[1], [0], [0], [1], [0, 0, 1, 1], [], []>} : vector<16x9xf32>, vector<9x16xf32>, vector<16x16xf32> -> vector<16x16xf32>
    %653 = arith.addf %651, %652 : vector<16x16xf32>
    %c3_350 = arith.constant 3 : index
    %654 = memref.load %arg12[%c3_350] : memref<4xf32, #tpu.memory_space<smem>>
    %655 = vector.broadcast %654 : f32 to vector<16x16xf32>
    %656 = arith.addf %653, %655 : vector<16x16xf32>
    %c3_351 = arith.constant 3 : index
    %c0_352 = arith.constant 0 : index
    %657 = memref.load %arg11[%c3_351, %c0_352] : memref<4x4xf32, #tpu.memory_space<smem>>
    %658 = vector.broadcast %657 : f32 to vector<16x16xf32>
    %659 = arith.mulf %658, %22 : vector<16x16xf32>
    %660 = arith.addf %656, %659 : vector<16x16xf32>
    %c3_353 = arith.constant 3 : index
    %c1_354 = arith.constant 1 : index
    %661 = memref.load %arg11[%c3_353, %c1_354] : memref<4x4xf32, #tpu.memory_space<smem>>
    %662 = vector.broadcast %661 : f32 to vector<16x16xf32>
    %663 = arith.mulf %662, %54 : vector<16x16xf32>
    %664 = arith.addf %660, %663 : vector<16x16xf32>
    %c3_355 = arith.constant 3 : index
    %c2_356 = arith.constant 2 : index
    %665 = memref.load %arg11[%c3_355, %c2_356] : memref<4x4xf32, #tpu.memory_space<smem>>
    %666 = vector.broadcast %665 : f32 to vector<16x16xf32>
    %667 = arith.mulf %666, %86 : vector<16x16xf32>
    %668 = arith.addf %664, %667 : vector<16x16xf32>
    %c3_357 = arith.constant 3 : index
    %c3_358 = arith.constant 3 : index
    %669 = memref.load %arg11[%c3_357, %c3_358] : memref<4x4xf32, #tpu.memory_space<smem>>
    %670 = vector.broadcast %669 : f32 to vector<16x16xf32>
    %671 = arith.mulf %670, %118 : vector<16x16xf32>
    %672 = arith.addf %668, %671 : vector<16x16xf32>
    %cst_359 = arith.constant 5.000000e-01 : f32
    %673 = vector.broadcast %cst_359 : f32 to vector<16x16xf32>
    %674 = arith.mulf %673, %672 : vector<16x16xf32>
    %cst_360 = arith.constant 0.707106769 : f32
    %675 = vector.broadcast %cst_360 : f32 to vector<16x16xf32>
    %676 = arith.mulf %672, %675 : vector<16x16xf32>
    %677 = math.absf %676 : vector<16x16xf32>
    %cst_361 = arith.constant 0.327591091 : f32
    %678 = vector.broadcast %cst_361 : f32 to vector<16x16xf32>
    %679 = arith.mulf %678, %677 : vector<16x16xf32>
    %cst_362 = arith.constant 1.000000e+00 : f32
    %680 = vector.broadcast %cst_362 : f32 to vector<16x16xf32>
    %681 = arith.addf %680, %679 : vector<16x16xf32>
    %cst_363 = arith.constant 1.000000e+00 : f32
    %682 = vector.broadcast %cst_363 : f32 to vector<16x16xf32>
    %683 = arith.divf %682, %681 : vector<16x16xf32>
    %cst_364 = arith.constant 1.06140542 : f32
    %684 = vector.broadcast %cst_364 : f32 to vector<16x16xf32>
    %685 = arith.mulf %683, %684 : vector<16x16xf32>
    %cst_365 = arith.constant -1.45315206 : f32
    %686 = vector.broadcast %cst_365 : f32 to vector<16x16xf32>
    %687 = arith.addf %686, %685 : vector<16x16xf32>
    %688 = arith.mulf %683, %687 : vector<16x16xf32>
    %cst_366 = arith.constant 1.42141378 : f32
    %689 = vector.broadcast %cst_366 : f32 to vector<16x16xf32>
    %690 = arith.addf %689, %688 : vector<16x16xf32>
    %691 = arith.mulf %683, %690 : vector<16x16xf32>
    %cst_367 = arith.constant -0.284496725 : f32
    %692 = vector.broadcast %cst_367 : f32 to vector<16x16xf32>
    %693 = arith.addf %692, %691 : vector<16x16xf32>
    %694 = arith.mulf %683, %693 : vector<16x16xf32>
    %cst_368 = arith.constant 0.254829586 : f32
    %695 = vector.broadcast %cst_368 : f32 to vector<16x16xf32>
    %696 = arith.addf %695, %694 : vector<16x16xf32>
    %697 = arith.mulf %683, %696 : vector<16x16xf32>
    %cst_369 = arith.constant 0.000000e+00 : f32
    %698 = vector.broadcast %cst_369 : f32 to vector<16x16xf32>
    %699 = arith.subf %698, %677 : vector<16x16xf32>
    %700 = arith.mulf %699, %677 : vector<16x16xf32>
    %701 = math.exp %700 : vector<16x16xf32>
    %702 = arith.mulf %697, %701 : vector<16x16xf32>
    %cst_370 = arith.constant 1.000000e+00 : f32
    %703 = vector.broadcast %cst_370 : f32 to vector<16x16xf32>
    %704 = arith.subf %703, %702 : vector<16x16xf32>
    %cst_371 = arith.constant 0.000000e+00 : f32
    %705 = vector.broadcast %cst_371 : f32 to vector<16x16xf32>
    %706 = arith.cmpf oge, %676, %705 : vector<16x16xf32>
    %cst_372 = arith.constant 0.000000e+00 : f32
    %707 = vector.broadcast %cst_372 : f32 to vector<16x16xf32>
    %708 = arith.subf %707, %704 : vector<16x16xf32>
    %709 = arith.select %706, %704, %708 : vector<16x16xi1>, vector<16x16xf32>
    %cst_373 = arith.constant 1.000000e+00 : f32
    %710 = vector.broadcast %cst_373 : f32 to vector<16x16xf32>
    %711 = arith.addf %710, %709 : vector<16x16xf32>
    %712 = arith.mulf %674, %711 : vector<16x16xf32>
    %cst_374 = arith.constant dense<0.000000e+00> : vector<16xf32>
    %713 = vector.multi_reduction <add>, %712, %cst_374 [1] : vector<16x16xf32> to vector<16xf32>
    %714 = vector.shape_cast %713 : vector<16xf32> to vector<16x1xf32>
    %cst_375 = arith.constant dense<0.000000e+00> : vector<1xf32>
    %715 = vector.multi_reduction <add>, %714, %cst_375 [0] : vector<16x1xf32> to vector<1xf32>
    %716 = vector.shape_cast %715 : vector<1xf32> to vector<1x1xf32>
    %cst_376 = arith.constant 2.560000e+02 : f32
    %717 = vector.broadcast %cst_376 : f32 to vector<1x1xf32>
    %718 = arith.divf %716, %717 : vector<1x1xf32>
    %719 = vector.broadcast %718 : vector<1x1xf32> to vector<16x16xf32>
    %720 = arith.subf %712, %719 : vector<16x16xf32>
    %721 = arith.mulf %720, %720 : vector<16x16xf32>
    %cst_377 = arith.constant dense<0.000000e+00> : vector<16xf32>
    %722 = vector.multi_reduction <add>, %721, %cst_377 [1] : vector<16x16xf32> to vector<16xf32>
    %723 = vector.shape_cast %722 : vector<16xf32> to vector<16x1xf32>
    %cst_378 = arith.constant dense<0.000000e+00> : vector<1xf32>
    %724 = vector.multi_reduction <add>, %723, %cst_378 [0] : vector<16x1xf32> to vector<1xf32>
    %725 = vector.shape_cast %724 : vector<1xf32> to vector<1x1xf32>
    %cst_379 = arith.constant 2.560000e+02 : f32
    %726 = vector.broadcast %cst_379 : f32 to vector<1x1xf32>
    %727 = arith.divf %725, %726 : vector<1x1xf32>
    %cst_380 = arith.constant 9.99999997E-7 : f32
    %728 = vector.broadcast %cst_380 : f32 to vector<1x1xf32>
    %729 = arith.addf %727, %728 : vector<1x1xf32>
    %730 = math.rsqrt %729 : vector<1x1xf32>
    %731 = vector.broadcast %730 : vector<1x1xf32> to vector<16x16xf32>
    %732 = arith.mulf %720, %731 : vector<16x16xf32>
    %733 = arith.mulf %732, %19 : vector<16x16xf32>
    %734 = arith.addf %733, %20 : vector<16x16xf32>
    %735 = arith.index_cast %arg0 : i32 to index
    %c3_381 = arith.constant 3 : index
    %736 = memref.load %arg13[%735, %c3_381] : memref<2x4xf32, #tpu.memory_space<smem>>
    %737 = arith.index_cast %arg0 : i32 to index
    %c3_382 = arith.constant 3 : index
    %738 = memref.load %arg14[%737, %c3_382] : memref<2x4xf32, #tpu.memory_space<smem>>
    %739 = arith.mulf %736, %0 : f32
    %cst_383 = arith.constant 1.000000e+00 : f32
    %740 = arith.addf %cst_383, %739 : f32
    %741 = vector.broadcast %740 : f32 to vector<16x16xf32>
    %742 = arith.mulf %741, %734 : vector<16x16xf32>
    %743 = arith.mulf %738, %0 : f32
    %744 = vector.broadcast %743 : f32 to vector<16x16xf32>
    %745 = arith.addf %742, %744 : vector<16x16xf32>
    %c0_384 = arith.constant 0 : index
    %c3_385 = arith.constant 3 : index
    %c0_386 = arith.constant 0 : index
    %c0_387 = arith.constant 0 : index
    %746 = vector.load %arg16[%c0_384, %c3_385, %c0_386, %c0_387] : memref<1x4x16x16xf32, #tpu.memory_space<vmem>>, vector<1x1x16x16xf32>
    %747 = vector.shape_cast %746 : vector<1x1x16x16xf32> to vector<16x16xf32>
    %748 = vector.shape_cast %745 : vector<16x16xf32> to vector<1x1x16x16xf32>
    tpu.vector_store %arg16[%c0_384, %c3_385, %c0_386, %c0_387], %748 {strides = array<i32>} : memref<1x4x16x16xf32, #tpu.memory_space<vmem>>, vector<1x1x16x16xf32>,
    return
  }
  func.func @transform_0(%arg0: i32) -> (i32, i32, i32, i32) {
    %c0_i32 = arith.constant 0 : i32
    %c0_i32_0 = arith.constant 0 : i32
    %c0_i32_1 = arith.constant 0 : i32
    %c0_i32_2 = arith.constant 0 : i32
    return %arg0, %c0_i32, %c0_i32_0, %c0_i32_1 : i32, i32, i32, i32
  }
  func.func @transform_1(%arg0: i32) -> (i32, i32, i32) {
    %c0_i32 = arith.constant 0 : i32
    %c0_i32_0 = arith.constant 0 : i32
    %c0_i32_1 = arith.constant 0 : i32
    %c0_i32_2 = arith.constant 0 : i32
    return %c0_i32, %c0_i32_0, %c0_i32_1 : i32, i32, i32
  }
  func.func @transform_2(%arg0: i32) -> (i32, i32, i32) {
    %c0_i32 = arith.constant 0 : i32
    %c0_i32_0 = arith.constant 0 : i32
    %c0_i32_1 = arith.constant 0 : i32
    %c0_i32_2 = arith.constant 0 : i32
    return %c0_i32, %c0_i32_0, %c0_i32_1 : i32, i32, i32
  }
  func.func @transform_3(%arg0: i32) -> (i32, i32, i32) {
    %c0_i32 = arith.constant 0 : i32
    %c0_i32_0 = arith.constant 0 : i32
    %c0_i32_1 = arith.constant 0 : i32
    %c0_i32_2 = arith.constant 0 : i32
    return %c0_i32, %c0_i32_0, %c0_i32_1 : i32, i32, i32
  }
  func.func @transform_4(%arg0: i32) -> (i32, i32, i32) {
    %c0_i32 = arith.constant 0 : i32
    %c0_i32_0 = arith.constant 0 : i32
    %c0_i32_1 = arith.constant 0 : i32
    %c0_i32_2 = arith.constant 0 : i32
    return %c0_i32, %c0_i32_0, %c0_i32_1 : i32, i32, i32
  }
  func.func @transform_5(%arg0: i32) -> (i32, i32, i32, i32) {
    %c0_i32 = arith.constant 0 : i32
    %c0_i32_0 = arith.constant 0 : i32
    %c0_i32_1 = arith.constant 0 : i32
    %c0_i32_2 = arith.constant 0 : i32
    %c0_i32_3 = arith.constant 0 : i32
    return %c0_i32, %c0_i32_0, %c0_i32_1, %c0_i32_2 : i32, i32, i32, i32
  }
  func.func @transform_6(%arg0: i32) -> (i32, i32) {
    %c0_i32 = arith.constant 0 : i32
    %c0_i32_0 = arith.constant 0 : i32
    %c0_i32_1 = arith.constant 0 : i32
    return %c0_i32, %c0_i32_0 : i32, i32
  }
  func.func @transform_7(%arg0: i32) -> (i32, i32) {
    %c0_i32 = arith.constant 0 : i32
    %c0_i32_0 = arith.constant 0 : i32
    %c0_i32_1 = arith.constant 0 : i32
    return %c0_i32, %c0_i32_0 : i32, i32
  }
  func.func @transform_8(%arg0: i32) -> (i32, i32) {
    %c0_i32 = arith.constant 0 : i32
    %c0_i32_0 = arith.constant 0 : i32
    %c0_i32_1 = arith.constant 0 : i32
    return %c0_i32, %c0_i32_0 : i32, i32
  }
  func.func @transform_9(%arg0: i32) -> (i32, i32) {
    %c0_i32 = arith.constant 0 : i32
    %c0_i32_0 = arith.constant 0 : i32
    %c0_i32_1 = arith.constant 0 : i32
    return %c0_i32, %c0_i32_0 : i32, i32
  }
  func.func @transform_10(%arg0: i32) -> (i32, i32) {
    %c0_i32 = arith.constant 0 : i32
    %c0_i32_0 = arith.constant 0 : i32
    %c0_i32_1 = arith.constant 0 : i32
    return %c0_i32, %c0_i32_0 : i32, i32
  }
  func.func @transform_11(%arg0: i32) -> i32 {
    %c0_i32 = arith.constant 0 : i32
    %c0_i32_0 = arith.constant 0 : i32
    return %c0_i32 : i32
  }
  func.func @transform_12(%arg0: i32) -> (i32, i32) {
    %c0_i32 = arith.constant 0 : i32
    %c0_i32_0 = arith.constant 0 : i32
    %c0_i32_1 = arith.constant 0 : i32
    return %c0_i32, %c0_i32_0 : i32, i32
  }
  func.func @transform_13(%arg0: i32) -> (i32, i32) {
    %c0_i32 = arith.constant 0 : i32
    %c0_i32_0 = arith.constant 0 : i32
    %c0_i32_1 = arith.constant 0 : i32
    return %c0_i32, %c0_i32_0 : i32, i32
  }
  func.func @transform_14(%arg0: i32) -> i32 {
    %c0_i32 = arith.constant 0 : i32
    %c0_i32_0 = arith.constant 0 : i32
    return %c0_i32 : i32
  }
  func.func @transform_15(%arg0: i32) -> (i32, i32, i32, i32) {
    %c0_i32 = arith.constant 0 : i32
    %c0_i32_0 = arith.constant 0 : i32
    %c0_i32_1 = arith.constant 0 : i32
    %c0_i32_2 = arith.constant 0 : i32
    return %arg0, %c0_i32, %c0_i32_0, %c0_i32_1 : i32, i32, i32, i32
  }
}

</mosaic_0001>

<bundles_post_ra>
// kernel: fno_block_filmed.1
= control target key start
LH: loop header
LB: loop body
LE: loop exit
PB: predicated region body
PF: predicated region fallthrough
CT: control target
= control target key end

     0   :  { %s8045_s0 = inlined_call_operand.vmem [shape: f32[2,4,16,16], index: 0, kind: input, shape index: {}]   ;;  %s8046_s1 = inlined_call_operand.vmem [shape: f32[2,16,9], index: 1, kind: input, shape index: {}]   ;;  %s8047_s2 = inlined_call_operand.vmem [shape: f32[2,16,16], index: 2, kind: input, shape index: {}]   ;;  %s8048_s3 = inlined_call_operand.vmem [shape: f32[2,16,16], index: 3, kind: input, shape index: {}]   ;;  %s8049_s4 = inlined_call_operand.vmem [shape: f32[2,9,16], index: 4, kind: input, shape index: {}]   ;;  %s8050_s5 = inlined_call_operand.vmem [shape: f32[2,16,16,9], index: 5, kind: input, shape index: {}]   ;;  %s8051_s6 = inlined_call_operand.vmem [shape: f32[16,16], index: 6, kind: input, shape index: {}]   ;;  %s8052_s7 = inlined_call_operand.vmem [shape: f32[16,16], index: 7, kind: input, shape index: {}]   ;;  %s8053_s8 = inlined_call_operand.vmem [shape: f32[16,16], index: 8, kind: input, shape index: {}]   ;;  %s8054_s9 = inlined_call_operand.vmem [shape: f32[16,16], index: 9, kind: input, shape index: {}]   ;;  %s8055_s10 = inlined_call_operand.vmem [shape: f32[4,4], index: 10, kind: input, shape index: {}]   ;;  %s8056_s11 = inlined_call_operand.vmem [shape: f32[4], index: 11, kind: input, shape index: {}]   ;;  %s8057_s12 = inlined_call_operand.vmem [shape: f32[2,4], index: 12, kind: input, shape index: {}]   ;;  %s8058_s13 = inlined_call_operand.vmem [shape: f32[2,4], index: 13, kind: input, shape index: {}]   ;;  %s8059_s14 = inlined_call_operand.<no memory space> [shape: f32[1], index: 14, kind: input, shape index: {}]   ;;  %s8060_s15 = inlined_call_operand.hbm [shape: f32[2,4,16,16], index: 15, kind: output, shape index: {}]  }
   0x1   :  { %8088 = sst [smem:[#allocation42_spill]] %s8045_s0 }
   0x2   :  { %8089 = sst [smem:[#allocation43_spill]] %s8046_s1 }
   0x3   :  { %8090 = sst [smem:[#allocation44_spill]] %s8047_s2 }
   0x4   :  { %8091 = sst [smem:[#allocation45_spill]] %s8048_s3 }
   0x5   :  { %8092 = sst [smem:[#allocation46_spill]] %s8056_s11 }
   0x6   :  { %20 = sst [smem:[#allocation2]] %s8059_s14 }
   0x7   :  { %21 = vsyncpa [#allocation5], 0 }
   0x8   :  { %22 = vsyncpa [#allocation7], 0 }
   0x9   :  { %23 = vsyncpa [#allocation10], 0 }
   0xa   :  { %24 = vsyncpa [#allocation4], 0 }
   0xb   :  { %26 = vsyncpa [#allocation4 + $0x1], 0  ;;  %s6584_s20 = smov 0   ;;  %s6586_s21 = smov 0  }
   0xc   :  { %s6588_s22 = smov 0   ;;  %s6590_s23 = smov 0  }
   0xd LB: > { %8093 = sst [smem:[#allocation16_spill]] %s6488_s22  ;;  %s6605_s14 = sadd.s32 4294967295, %s6492_s23   ;;  %s6492_s23 = sphi %s6590_s23, %s8182_s23   ;;  %s6488_s22 = sphi %s6588_s22, %s8184_s22   ;;  %s6484_s21 = sphi %s6586_s21, %s8186_s21   ;;  %s6480_s20 = sphi %s6584_s20, %s8185_s20  }
   0xe   : > { %s5467_s24 = sadd.s32 4294967294, %s6492_s23   ;;  %s6609_s25 = sadd.s32 1, %s6492_s23  }
   0xf   : > { %8094 = sst [smem:[#allocation17_spill]] %s6609_s25  ;;  %s359_s26 = sadd.s32 1, %s6488_s22 }
  0x10   : > { %s356_s27 = ssub.s32 %s6492_s23, %s6609_s25  ;;  %p369_p0 = scmp.ne.s32.totalorder %s6488_s22, %s6484_s21 }
  0x11   : > { %p357_p1 = scmp.eq.s32.totalorder %s356_s27, 0  ;;  %p370_p2 = scmp.eq.s32.totalorder %s6605_s14, 1 }
  0x12   : > { %p375_p3 = scmp.ne.s32.totalorder %s6484_s21, %s6480_s20  ;;  %p376_p4 = scmp.eq.s32.totalorder %s5467_s24, 1 }
  0x13   : > { %s6620_s28 = scalar_select %p357_p1, %s6488_s22, %s359_s26  }
  0x14   : > { %p6622_p5 = por %p370_p2, %p369_p0  ;;  %p6626_p6 = por %p376_p4, %p375_p3 }
  0x15   : > { %8095 = sst [smem:[#allocation18_spill]] %s6620_s28  ;;  %p5468_p7 = scmp.ge.s32.totalorder %s6492_s23, 1 }
  0x16   : > { %s8096_s29 = scalar_select %p6622_p5, 1, 0 }
  0x17   : > { %s8097_s30 = scalar_select %p6626_p6, 1, 0 }
  0x18   : > { %p383_p8 = scmp.lt.s32.totalorder %s6492_s23, 3  ;;  %p8065_p9 = scmp.eq.s32.totalorder %s6605_s14, 0 }
  0x19   : > { %8098 = sst [smem:[#allocation19_spill]] %s8097_s30  ;;  %s423_s27 = sshll.u32 %s8055_s10, 4  ;;  %s424_s27 = int_to_ptr.vmem [resolvable:$true] %s423_s27 }
  0x1a   : > { %p6633_p10 = pnand %p5468_p7, %p383_p8  ;;  %s8100_s11 = sld [smem:[#allocation46_spill]] }
  0x1b   : > { %s445_s17 = sshll.u32 %s8057_s12, 4  ;;  %s456_s30 = sshll.u32 %s8058_s13, 4  ;;  %s6654_s17 = int_to_ptr.vmem [resolvable:$true] %s445_s17  ;;  %s457_s30 = int_to_ptr.vmem [resolvable:$true] %s456_s30 }
  0x1c   : > { %s8099_s16 = scalar_select %p6633_p10, 1, 0 }
  0x1d   : > { %p6240_p11 = pneg %p6633_p10 }
  0x1f   : > { %p6647_p12 = pnand %p8065_p9, %p6240_p11 }
  0x20   : > { %s434_s19 = sshll.u32 %s8100_s11, 4  ;;  %s435_s19 = int_to_ptr.vmem [resolvable:$true] %s434_s19 }
  0x21   : > { %s6360_s24 = scalar_lea.vmem %s435_s19, 16  ;;  %p6362_p0 = pneg %p6647_p12 }
  0x22   : > { %p6361_p13 = scmp.ne.s32.totalorder %s435_s19, %s6360_s24  ;;  %p6368_p3 = scmp.lt.s32.totalorder %s435_s19, %s435_s19 }
  0x23   : > { %p6369_p4 = scmp.lt.s32.totalorder %s6360_s24, %s6360_s24 }
  0x24   : > { %p6363_p1 = pnand %p6362_p0, %p6361_p13 }
  0x25   : > { %p6370_p7 = por %p6369_p4, %p6368_p3 }
  0x26   : > { %p6364_p2 = pneg %p6363_p1 }
  0x28   : > { %p6371_p8 = pnand %p6370_p7, %p6364_p2 }
  0x2a   : > { %6374 = shalt.err (!%p6371_p8)
}
  0x2b   : > { %s6494_s22 = smov [#allocation6]   ;;  %s6375_s11 = scalar_lea.vmem %s424_s27, 64 }
  0x2c   : > { %6246 = dma.vmem_to_smem (!%p6647_p12), %s435_s19, 16, %s6494_s22, [#allocation7]  }
  0x2d   : > { %p6376_p11 = scmp.ne.s32.totalorder %s424_s27, %s6375_s11  ;;  %p6383_p5 = scmp.lt.s32.totalorder %s424_s27, %s424_s27 }
  0x2e   : > { %p6384_p10 = scmp.lt.s32.totalorder %s6375_s11, %s6375_s11 }
  0x2f   : > { %p6378_p9 = pnand %p6376_p11, %p6362_p0 }
  0x30   : > { %p6385_p13 = por %p6384_p10, %p6383_p5 }
  0x31   : > { %p6379_p6 = pneg %p6378_p9 }
  0x33   : > { %p6386_p1 = pnand %p6385_p13, %p6379_p6 }
  0x35   : > { %6389 = shalt.err (!%p6386_p1)
}
  0x36   : > { %s6495_s25 = smov [#allocation3]   ;;  %s6390_s19 = scalar_lea.vmem %s6654_s17, 32 }
  0x37   : > { %6243 = dma.vmem_to_smem (!%p6647_p12), %s424_s27, 64, %s6495_s25, [#allocation5]  }
  0x38   : > { %p6391_p2 = scmp.ne.s32.totalorder %s6654_s17, %s6390_s19  ;;  %p6398_p9 = scmp.lt.s32.totalorder %s6654_s17, %s6654_s17 }
  0x39   : > { %p6399_p7 = scmp.lt.s32.totalorder %s6390_s19, %s6390_s19 }
  0x3a   : > { %p6393_p3 = pnand %p6391_p2, %p6362_p0 }
  0x3b   : > { %p6400_p5 = por %p6399_p7, %p6398_p9 }
  0x3c   : > { %p6394_p4 = pneg %p6393_p3 }
  0x3e   : > { %p6401_p6 = pnand %p6400_p5, %p6394_p4 }
  0x40   : > { %6404 = shalt.err (!%p6401_p6)
}
  0x41   : > { %s6496_s26 = smov [#allocation8]   ;;  %s6405_s24 = scalar_lea.vmem %s457_s30, 32 }
  0x42   : > { %6249 = dma.vmem_to_smem (!%p6647_p12), %s6654_s17, 32, %s6496_s26, [#allocation7]  }
  0x43   : > { %p6406_p10 = scmp.ne.s32.totalorder %s457_s30, %s6405_s24  ;;  %p6413_p13 = scmp.lt.s32.totalorder %s457_s30, %s457_s30 }
  0x44   : > { %p6414_p1 = scmp.lt.s32.totalorder %s6405_s24, %s6405_s24 }
  0x45   : > { %p6408_p8 = pnand %p6406_p10, %p6362_p0 }
  0x46   : > { %p6415_p2 = por %p6414_p1, %p6413_p13 }
  0x47   : > { %p6409_p11 = pneg %p6408_p8 }
  0x49   : > { %p6416_p3 = pnand %p6415_p2, %p6409_p11 }
  0x4b   : > { %6419 = shalt.err (!%p6416_p3)
}
  0x4c   : > { %s6497_s22 = smov [#allocation9]   ;;  %p8102_p4 = scmp.ne.s32.totalorder %s8099_s16, 0 }
  0x4d   : > { %6252 = dma.vmem_to_smem (!%p6647_p12), %s457_s30, 32, %s6497_s22, [#allocation10]  }
  0x4e   : > { %480 = sbr.rel (%p8102_p4) target bundleno = 2926 (0xb6e), region = 80 }
  0x53   : > { %p8103_p9 = scmp.eq.s32.totalorder %s6605_s14, 0 }
  0x55   : > { %6463 = dma.done.wait (%p8103_p9), [#allocation5], 64   ;;  %p8104_p7 = pmov %p8103_p9 }
  0x57   : > { %6465 = vsyncadd (%p8104_p7), [#allocation5], 4294967232  ;;  %p8105_p0 = pmov %p8104_p7 }
  0x59   : > { %6467 = dma.done.wait (%p8105_p0), [#allocation7], 48   ;;  %p8106_p5 = pmov %p8105_p0 }
  0x5a   : > { %p8107_p6 = pmov %p8105_p0 }
  0x5b   : > { %6469 = vsyncadd (%p8106_p5), [#allocation7], 4294967248 }
  0x5c   : > { %6471 = dma.done.wait (%p8107_p6), [#allocation10], 32   ;;  %p8108_p12 = pmov %p8105_p0 }
  0x5e   : > { %6473 = vsyncadd (%p8108_p12), [#allocation10], 4294967264 }
  0x5f   : > { %498 = sfence }
  0x60   : > { %p541_p10 = scmp.lt.s32.totalorder %s6605_s14, 1  ;;  %vm577_vm0 = vcmask 130048   ;;  %s8109_s0 = sld [smem:[#allocation42_spill]]  ;;  %v6766_v60 = vld [vmem:[%s8051_s6] sm:$0xff]  ;;  %v6771_v61 = vld [vmem:[%s8051_s6 + $0x8] sm:$0xff]  ;;  %vm2996_vm1 = vcmask 1040384  }
  0x61   : > { %s8110_s1 = sld [smem:[#allocation43_spill]]  ;;  %8115 = vst [vmem:[#allocation24_spill] sm:$0xff] %v6771_v61  ;;  %vm2989_vm2 = vcmask 72704   ;;  %p8179_p11 = scmp.ne.s32.totalorder %s8096_s29, 0 }
  0x62   : > { %s542_s28 = scalar_select %p541_p10, %s6605_s14, 1 }
  0x63   : > { %s8118_s2 = sld [smem:[#allocation44_spill]] }
  0x64   : > { %s5692_s30 = sshll.u32 %s542_s28, 6  ;;  %s8177_s3 = sld [smem:[#allocation45_spill]] }
  0x65   : > { %s3163_s25 = sld [smem:[#allocation3]] }
  0x66   : > { %s6709_s11 = scalar_lea.vmem %s8109_s0, %s5692_s30  ;;  %s3159_s19 = sld [smem:[#allocation6]] }
  0x67   : > { %v575_v0 = vld [vmem:[%s6709_s11] sm:$0xff]  ;;  %v576_v1 = vld [vmem:[%s6709_s11 + $0x8] sm:$0xff]  ;;  %v5502_v4 = vld [vmem:[%s6709_s11 + $0x10] sm:$0xff]  ;;  %s5572_s0 = sld [smem:[#allocation3 + $0x1]] }
  0x68   : > { %v578_v2 = vsel %vm577_vm0, %v575_v0, 0.0  ;;  %v581_v3 = vsel %vm577_vm0, %v576_v1, 0.0  ;;  %v1092_v5 = vsel %vm577_vm0, %v5502_v4, 0.0  ;;  %v5503_v21 = vld [vmem:[%s6709_s11 + $0x18] sm:$0xff]  ;;  %v6724_v24 = vld [vmem:[%s8110_s1 + $0x8] sm:$0xff]  ;;  %v6734_v26 = vld [vmem:[%s8110_s1] sm:$0xff] }
  0x69   : > { %579 = vadd.xlane.f32.xlu0 %v578_v2  ;;  %v1095_v23 = vsel %vm577_vm0, %v5503_v21, 0.0  ;;  %8111 = vst [vmem:[#allocation20_spill] sm:$0xff] %v6724_v24  ;;  %v6729_v25 = vld [vmem:[%s8110_s1 + $0x18] sm:$0xff]  ;;  %8113 = vst [vmem:[#allocation22_spill] sm:$0xff] %v6734_v26  ;;  %5886 = vmatprep.subr.mxu0 %v6724_v24  ;;  %v6741_v27 = vld [vmem:[%s8110_s1 + $0x10] sm:$0xff]  ;;  %s7609_s26 = sld [smem:[#allocation3 + $0x2]] }
  0x6a   : > { %8112 = vst [vmem:[#allocation21_spill] sm:$0xff] %v6729_v25  ;;  %5893 = vmatprep.subr.mxu1 %v6729_v25  ;;  %8114 = vst [vmem:[#allocation23_spill] sm:$0xff] %v6741_v27  ;;  %5887 = vmatpush3.msra.mxu0 %v6724_v24  ;;  %v5517_v53 = vld [vmem:[%s6709_s11 + $0x28] sm:$0xff]  ;;  %v5516_v54 = vld [vmem:[%s6709_s11 + $0x20] sm:$0xff]  ;;  %s7611_s18 = sld [smem:[#allocation3 + $0x3]] }
  0x6b   : > { %5894 = vmatpush3.msra.mxu1 %v6729_v25  ;;  %5888 = vmatprep.subr.mxu0 %v6734_v26  ;;  %v1596_v57 = vsel %vm577_vm0, %v5517_v53, 0.0  ;;  %v1593_v58 = vsel %vm577_vm0, %v5516_v54, 0.0  ;;  %s5606_s27 = sld [smem:[#allocation6 + $0x1]] }
  0x6c   : > { %5895 = vmatprep.subr.mxu1 %v6741_v27  ;;  %5889 = vmatpush3.msra.mxu0 %v6734_v26  ;;  %s5608_s24 = sld [smem:[#allocation3 + $0x81]] }
  0x6d   : > { %582 = vadd.xlane.f32.xlu0 %v581_v3  ;;  %5896 = vmatpush3.msra.mxu1 %v6741_v27  ;;  %s5609_s22 = sld [smem:[#allocation3 + $0x82]] }
  0x6e   : > { %s7719_s28 = sld [smem:[#allocation3 + $0x83]] }
  0x6f   : > { %s5644_s30 = sld [smem:[#allocation3 + $0x100]] }
  0x70   : > { %s5643_s16 = sld [smem:[#allocation6 + $0x2]] }
  0x71   : > { %1093 = vadd.xlane.f32.xlu0 %v1092_v5  ;;  %s5645_s17 = sld [smem:[#allocation3 + $0x101]] }
  0xf2   : > { %v580_v6 = vpop.xlane.xlu0 %579 }
  0xf6   : > { %v583_v7 = vpop.xlane.xlu0 %582 }
  0xf7   : > { %v584_v8 = vadd.f32 %v583_v7, %v580_v6  ;;  %v6794_v6 = vld [vmem:[%s8118_s2] sm:$0xff]  ;;  %v6799_v7 = vld [vmem:[%s8118_s2 + $0x10] sm:$0xff] }
  0xf8   : > { %8119 = vst [vmem:[#allocation27_spill] sm:$0xff] %v6794_v6 }
  0xf9   : > { %v585_v9 = vrot.slane %v584_v8, 4 }
  0xfa   : > { %v1094_v31 = vpop.xlane.xlu0 %1093 }
  0xfb   : > { %v586_v10 = vadd.f32 %v585_v9, %v584_v8 }
  0xfd   : > { %v587_v11 = vrot.slane %v586_v10, 2 }
  0xff   : > { %v588_v12 = vadd.f32 %v587_v11, %v586_v10 }
 0x101   : > { %v589_v13 = vrot.slane %v588_v12, 1 }
 0x103   : > { %v590_v14 = vadd.f32 %v589_v13, %v588_v12 }
 0x105   : > { %v592_v15 = vmul.f32 0.00390625, %v590_v14 }
 0x107   : > { %v593_v16 = vsub.f32 %v575_v0, %v592_v15  ;;  %v594_v17 = vsub.f32 %v576_v1, %v592_v15  ;;  %v6776_v0 = vld [vmem:[%s8052_s7] sm:$0xff]  ;;  %v6781_v1 = vld [vmem:[%s8052_s7 + $0x8] sm:$0xff] }
 0x108   : > { %8116 = vst [vmem:[#allocation25_spill] sm:$0xff] %v6776_v0  ;;  %8117 = vst [vmem:[#allocation26_spill] sm:$0xff] %v6781_v1 }
 0x109   : > { %v595_v18 = vmul.f32 %v593_v16, %v593_v16  ;;  %v596_v20 = vmul.f32 %v594_v17, %v594_v17 }
 0x10b   : > { %v597_v19 = vsel %vm577_vm0, %v595_v18, 0.0  ;;  %v600_v22 = vsel %vm577_vm0, %v596_v20, 0.0 }
 0x10c   : > { %598 = vadd.xlane.f32.xlu1 %v597_v19 }
 0x110   : > { %601 = vadd.xlane.f32.xlu1 %v600_v22 }
 0x114   : > { %1096 = vadd.xlane.f32.xlu1 %v1095_v23 }
 0x195   : > { %v599_v28 = vpop.xlane.xlu1 %598 }
 0x199   : > { %v602_v29 = vpop.xlane.xlu1 %601 }
 0x19a   : > { %v603_v30 = vadd.f32 %v602_v29, %v599_v28 }
 0x19c   : > { %v604_v32 = vrot.slane %v603_v30, 4 }
 0x19d   : > { %v1097_v33 = vpop.xlane.xlu1 %1096 }
 0x19e   : > { %v605_v34 = vadd.f32 %v604_v32, %v603_v30  ;;  %v1098_v35 = vadd.f32 %v1097_v33, %v1094_v31  ;;  %v6814_v30 = vld [vmem:[%s6709_s11 + $0x38] sm:$0xff]  ;;  %v6817_v31 = vld [vmem:[%s6709_s11 + $0x30] sm:$0xff] }
 0x1a0   : > { %v606_v36 = vrot.slane %v605_v34, 2  ;;  %v1099_v37 = vrot.slane %v1098_v35, 4 }
 0x1a2   : > { %v607_v38 = vadd.f32 %v606_v36, %v605_v34  ;;  %v1100_v39 = vadd.f32 %v1099_v37, %v1098_v35  ;;  %v2097_v34 = vsel %vm577_vm0, %v6814_v30, 0.0  ;;  %v2094_v35 = vsel %vm577_vm0, %v6817_v31, 0.0 }
 0x1a4   : > { %v608_v40 = vrot.slane %v607_v38, 1  ;;  %v1101_v41 = vrot.slane %v1100_v39, 2 }
 0x1a6   : > { %v609_v42 = vadd.f32 %v608_v40, %v607_v38  ;;  %v1102_v43 = vadd.f32 %v1101_v41, %v1100_v39 }
 0x1a8   : > { %v610_v44 = vmul.f32 0.00390625, %v609_v42  ;;  %v1103_v45 = vrot.slane %v1102_v43, 1 }
 0x1aa   : > { %v611_v46 = vadd.f32 1e-06, %v610_v44  ;;  %v1104_v47 = vadd.f32 %v1103_v45, %v1102_v43 }
 0x1ac   : > { %6304 = vrsqrt.f32 %v611_v46  ;;  %v1105_v48 = vmul.f32 0.00390625, %v1104_v47 }
 0x1ae   : > { %v6749_v49 = vsub.f32 %v5503_v21, %v1105_v48  ;;  %v6751_v50 = vsub.f32 %v5502_v4, %v1105_v48  ;;  %v6828_v48 = vld [vmem:[%s8118_s2 + $0x8] sm:$0xff] }
 0x1b0   : > { %v1109_v51 = vmul.f32 %v6749_v49, %v6749_v49  ;;  %v1108_v52 = vmul.f32 %v6751_v50, %v6751_v50 }
 0x1b2   : > { %v1113_v55 = vsel %vm577_vm0, %v1109_v51, 0.0  ;;  %v1110_v56 = vsel %vm577_vm0, %v1108_v52, 0.0  ;;  %v6833_v51 = vld [vmem:[%s8118_s2 + $0x18] sm:$0xff] }
 0x1b3   : > { %1114 = vadd.xlane.f32.xlu1 %v1113_v55  ;;  %1111 = vadd.xlane.f32.xlu0 %v1110_v56 }
 0x1b7   : > { %1597 = vadd.xlane.f32.xlu1 %v1596_v57  ;;  %1594 = vadd.xlane.f32.xlu0 %v1593_v58 }
 0x1b9   : > { %v6305_v59 = vpop.eup %6304 }
 0x1ba   : > { %v613_v62 = vmul.f32 %v6305_v59, %v593_v16  ;;  %v614_v63 = vmul.f32 %v6305_v59, %v594_v17 }
 0x1bc   : > { %v615_v2 = vmul.f32 %v613_v62, %v6766_v60  ;;  %v616_v3 = vmul.f32 %v614_v63, %v6771_v61 }
 0x1be   : > { %v617_v4 = vadd.f32 %v615_v2, %v6776_v0  ;;  %v618_v5 = vadd.f32 %v616_v3, %v6781_v1 }
 0x1c0   : > { %5890 = vmatprep.mubr.msk.f32.mxu0 %vm577_vm0, %v617_v4  ;;  %5897 = vmatprep.mubr.msk.f32.mxu1 %vm577_vm0, %v617_v4 }
 0x1c1   : > { %5891 = vmatmul.mubr.msk.f32.vlgmr.msra.gmra.mxu0 %vm577_vm0, %v618_v5  ;;  %5898 = vmatmul.mubr.msk.f32.vlgmr.msra.gmra.mxu1 %vm577_vm0, %v618_v5 }
 0x1c2   : > { %5904 = vmatprep.mubr.msk.f32.mxu0 %vm577_vm0, %v6794_v6  ;;  %5911 = vmatprep.mubr.msk.f32.mxu1 %vm577_vm0, %v6799_v7 }
 0x23c   : > { %v1115_v8 = vpop.xlane.xlu1 %1114  ;;  %v1112_v9 = vpop.xlane.xlu0 %1111 }
 0x23d   : > { %v1116_v20 = vadd.f32 %v1115_v8, %v1112_v9 }
 0x23f   : > { %v1117_v29 = vrot.slane %v1116_v20, 4 }
 0x240   : > { %v1598_v10 = vpop.xlane.xlu1 %1597  ;;  %v1595_v11 = vpop.xlane.xlu0 %1594 }
 0x241   : > { %v1599_v12 = vadd.f32 %v1598_v10, %v1595_v11  ;;  %v1118_v36 = vadd.f32 %v1117_v29, %v1116_v20 }
 0x243   : > { %v1600_v13 = vrot.slane %v1599_v12, 4  ;;  %v1119_v37 = vrot.slane %v1118_v36, 2 }
 0x245   : > { %v1601_v14 = vadd.f32 %v1600_v13, %v1599_v12  ;;  %v1120_v38 = vadd.f32 %v1119_v37, %v1118_v36  ;;  %v5545_v36 = vld [vmem:[%s8050_s5 + $0x108] sm:$0xff]  ;;  %v2592_v37 = vld [vmem:[%s8050_s5] sm:$0xff] }
 0x247   : > { %v1602_v15 = vrot.slane %v1601_v14, 2  ;;  %v1121_v39 = vrot.slane %v1120_v38, 1 }
 0x249   : > { %v1603_v16 = vadd.f32 %v1602_v15, %v1601_v14  ;;  %v1122_v40 = vadd.f32 %v1121_v39, %v1120_v38  ;;  %v5544_v38 = vld [vmem:[%s8050_s5 + $0x100] sm:$0xff] }
 0x24b   : > { %v1604_v17 = vrot.slane %v1603_v16, 1  ;;  %v1123_v41 = vmul.f32 0.00390625, %v1122_v40 }
 0x24d   : > { %v1605_v18 = vadd.f32 %v1604_v17, %v1603_v16  ;;  %v1124_v42 = vadd.f32 1e-06, %v1123_v41  ;;  %v5577_v41 = vld [vmem:[%s8050_s5 + $0x18] sm:$0xff] }
 0x24f   : > { %v1606_v19 = vmul.f32 0.00390625, %v1605_v18  ;;  %6306 = vrsqrt.f32 %v1124_v42  ;;  %v5579_v42 = vld [vmem:[%s8050_s5 + $0x118] sm:$0xff] }
 0x251   : > { %v6805_v21 = vsub.f32 %v5517_v53, %v1606_v19  ;;  %v6807_v22 = vsub.f32 %v5516_v54, %v1606_v19 }
 0x253   : > { %v1610_v23 = vmul.f32 %v6805_v21, %v6805_v21  ;;  %v1609_v28 = vmul.f32 %v6807_v22, %v6807_v22 }
 0x255   : > { %v1614_v32 = vsel %vm577_vm0, %v1610_v23, 0.0  ;;  %v1611_v33 = vsel %vm577_vm0, %v1609_v28, 0.0 }
 0x256   : > { %1615 = vadd.xlane.f32.xlu1 %v1614_v32  ;;  %1612 = vadd.xlane.f32.xlu0 %v1611_v33  ;;  %v2593_v33 = vld [vmem:[%s8050_s5 + $0x8] sm:$0xff] }
 0x25a   : > { %2098 = vadd.xlane.f32.xlu1 %v2097_v34  ;;  %2095 = vadd.xlane.f32.xlu0 %v2094_v35 }
 0x25c   : > { %v6307_v43 = vpop.eup %6306 }
 0x25d   : > { %v1126_v52 = vmul.f32 %v6307_v43, %v6751_v50  ;;  %v1127_v54 = vmul.f32 %v6307_v43, %v6749_v49  ;;  %v5616_v43 = vld [vmem:[%s8050_s5 + $0x128] sm:$0xff] }
 0x25f   : > { %v1128_v53 = vmul.f32 %v1126_v52, %v6766_v60  ;;  %v1129_v49 = vmul.f32 %v1127_v54, %v6771_v61  ;;  %v5578_v54 = vld [vmem:[%s8050_s5 + $0x110] sm:$0xff] }
 0x261   : > { %v1130_v50 = vadd.f32 %v1128_v53, %v6776_v0  ;;  %v1131_v55 = vadd.f32 %v1129_v49, %v6781_v1  ;;  %v5615_v49 = vld [vmem:[%s8050_s5 + $0x120] sm:$0xff] }
 0x281   : > { %v5892_v44 = vpop.f32.mrf.mxu0  ;;  %v5899_v45 = vpop.f32.mrf.mxu1 }
 0x282   : > { %5900 = vmatprep.subr.mxu0 %v5892_v44  ;;  %5907 = vmatprep.subr.mxu1 %v5899_v45 }
 0x283   : > { %v691_v46 = vpop.f32.mrf.mxu0  ;;  %v766_v47 = vpop.f32.mrf.mxu1  ;;  %5901 = vmatpush3.msra.mxu0 %v5892_v44  ;;  %5908 = vmatpush3.msra.mxu1 %v5899_v45 }
 0x284   : > { %5902 = vmatprep.subr.mxu0 %v691_v46  ;;  %5909 = vmatprep.subr.mxu1 %v766_v47 }
 0x285   : > { %5903 = vmatpush3.msra.mxu0 %v691_v46  ;;  %5910 = vmatpush3.msra.mxu1 %v766_v47 }
 0x286   : > { %5905 = vmatmul.mubr.msk.f32.vlgmr.msra.gmra.mxu0 %vm577_vm0, %v6828_v48  ;;  %5912 = vmatmul.mubr.msk.f32.vlgmr.msra.gmra.mxu1 %vm577_vm0, %v6833_v51 }
 0x287   : > { %5914 = vmatprep.subr.mxu0 %v5892_v44  ;;  %5921 = vmatprep.subr.mxu1 %v5899_v45 }
 0x288   : > { %5915 = vmatpush3.msra.mxu0 %v5892_v44  ;;  %5922 = vmatpush3.msra.mxu1 %v5899_v45  ;;  %v5576_v45 = vld [vmem:[%s8050_s5 + $0x10] sm:$0xff] }
 0x289   : > { %5916 = vmatprep.subr.mxu0 %v691_v46  ;;  %5923 = vmatprep.subr.mxu1 %v766_v47 }
 0x28a   : > { %5917 = vmatpush3.msra.mxu0 %v691_v46  ;;  %5918 = vmatprep.mubr.msk.f32.mxu0 %vm577_vm0, %v6799_v7  ;;  %v5614_v46 = vld [vmem:[%s8050_s5 + $0x28] sm:$0xff] }
 0x28b   : > { %5924 = vmatpush3.msra.mxu1 %v766_v47  ;;  %5925 = vmatprep.mubr.msk.f32.mxu1 %vm577_vm0, %v6794_v6  ;;  %v6913_v47 = vld [vmem:[%s8050_s5 + $0x138] sm:$0xff] }
 0x28c   : > { %5919 = vmatmul.mubr.msk.f32.vlgmr.msra.gmra.mxu0 %vm577_vm0, %v6833_v51  ;;  %5926 = vmatmul.mubr.msk.f32.vlgmr.msra.gmra.mxu1 %vm577_vm0, %v6828_v48 }
 0x28d   : > { %5928 = vmatprep.subr.mxu0 %v6724_v24  ;;  %5935 = vmatprep.subr.mxu1 %v6729_v25 }
 0x28e   : > { %5929 = vmatpush3.msra.mxu0 %v6724_v24  ;;  %5932 = vmatprep.mubr.msk.f32.mxu0 %vm577_vm0, %v1130_v50 }
 0x28f   : > { %5936 = vmatpush3.msra.mxu1 %v6729_v25  ;;  %5939 = vmatprep.mubr.msk.f32.mxu1 %vm577_vm0, %v1130_v50  ;;  %v5613_v50 = vld [vmem:[%s8050_s5 + $0x20] sm:$0xff] }
 0x290   : > { %5930 = vmatprep.subr.mxu0 %v6734_v26  ;;  %5937 = vmatprep.subr.mxu1 %v6741_v27 }
 0x291   : > { %5931 = vmatpush3.msra.mxu0 %v6734_v26  ;;  %5938 = vmatpush3.msra.mxu1 %v6741_v27 }
 0x292   : > { %5933 = vmatmul.mubr.msk.f32.vlgmr.msra.gmra.mxu0 %vm577_vm0, %v1131_v55  ;;  %5940 = vmatmul.mubr.msk.f32.vlgmr.msra.gmra.mxu1 %vm577_vm0, %v1131_v55 }
 0x293   : > { %5946 = vmatprep.mubr.msk.f32.mxu0 %vm577_vm0, %v6794_v6  ;;  %5953 = vmatprep.mubr.msk.f32.mxu1 %vm577_vm0, %v6799_v7 }
 0x2df   : > { %v1616_v56 = vpop.xlane.xlu1 %1615  ;;  %v1613_v57 = vpop.xlane.xlu0 %1612 }
 0x2e0   : > { %v1617_v58 = vadd.f32 %v1616_v56, %v1613_v57 }
 0x2e2   : > { %v1618_v17 = vrot.slane %v1617_v58, 4 }
 0x2e3   : > { %v2099_v59 = vpop.xlane.xlu1 %2098  ;;  %v2096_v62 = vpop.xlane.xlu0 %2095 }
 0x2e4   : > { %v2100_v63 = vadd.f32 %v2099_v59, %v2096_v62  ;;  %v1619_v18 = vadd.f32 %v1618_v17, %v1617_v58  ;;  %v5651_v58 = vld [vmem:[%s8050_s5 + $0x38] sm:$0xff]  ;;  %v5650_v59 = vld [vmem:[%s8050_s5 + $0x30] sm:$0xff] }
 0x2e5   : > { %v5652_v62 = vld [vmem:[%s8050_s5 + $0x130] sm:$0xff] }
 0x2e6   : > { %v2101_v2 = vrot.slane %v2100_v63, 4  ;;  %v1620_v19 = vrot.slane %v1619_v18, 2 }
 0x2e8   : > { %v2102_v3 = vadd.f32 %v2101_v2, %v2100_v63  ;;  %v1621_v20 = vadd.f32 %v1620_v19, %v1619_v18 }
 0x2ea   : > { %v2103_v4 = vrot.slane %v2102_v3, 2  ;;  %v1622_v23 = vrot.slane %v1621_v20, 1 }
 0x2ec   : > { %v2104_v5 = vadd.f32 %v2103_v4, %v2102_v3  ;;  %v1623_v28 = vadd.f32 %v1622_v23, %v1621_v20 }
 0x2ee   : > { %v2105_v8 = vrot.slane %v2104_v5, 1  ;;  %v1624_v29 = vmul.f32 0.00390625, %v1623_v28 }
 0x2f0   : > { %v2106_v9 = vadd.f32 %v2105_v8, %v2104_v5 }
 0x2f2   : > { %v2107_v10 = vmul.f32 0.00390625, %v2106_v9 }
 0x2f4   : > { %v6870_v11 = vsub.f32 %v6814_v30, %v2107_v10  ;;  %v6873_v12 = vsub.f32 %v6817_v31, %v2107_v10  ;;  %v1625_v30 = vadd.f32 1e-06, %v1624_v29 }
 0x2f6   : > { %8120 = vst [vmem:[#allocation28_spill] sm:$0xff] %v6870_v11  ;;  %v2111_v13 = vmul.f32 %v6870_v11, %v6870_v11  ;;  %v2110_v14 = vmul.f32 %v6873_v12, %v6873_v12  ;;  %6308 = vrsqrt.f32 %v1625_v30 }
 0x2f8   : > { %v2115_v15 = vsel %vm577_vm0, %v2111_v13, 0.0  ;;  %v2112_v16 = vsel %vm577_vm0, %v2110_v14, 0.0 }
 0x2f9   : > { %2116 = vadd.xlane.f32.xlu1 %v2115_v15  ;;  %2113 = vadd.xlane.f32.xlu0 %v2112_v16 }
 0x303   : > { %v6884_v34 = vpop.eup %6308 }
 0x304   : > { %v6917_v52 = vmul.f32 %v6884_v34, %v6807_v22 }
 0x346   : > { %v5906_v31 = vpop.f32.mrf.mxu0  ;;  %v5913_v32 = vpop.f32.mrf.mxu1 }
 0x347   : > { %v938_v35 = vsub.f32 %v5906_v31, %v5913_v32 }
 0x348   : > { %v847_v39 = vpop.f32.mrf.mxu0  ;;  %v928_v40 = vpop.f32.mrf.mxu1 }
 0x349   : > { %v937_v44 = vsub.f32 %v847_v39, %v928_v40  ;;  %v6919_v53 = vmul.f32 %v2593_v33, %v938_v35  ;;  %v2604_v55 = vmul.f32 %v5545_v36, %v938_v35  ;;  %v6930_v56 = vmul.f32 %v5577_v41, %v938_v35 }
 0x34a   : > { %v3308_v57 = vmul.f32 %v5579_v42, %v938_v35  ;;  %v3993_v22 = vmul.f32 %v5616_v43, %v938_v35  ;;  %v6943_v5 = vmul.f32 %v5614_v46, %v938_v35  ;;  %v4678_v8 = vmul.f32 %v6913_v47, %v938_v35 }
 0x34b   : > { %v6941_v3 = vmul.f32 %v2592_v37, %v937_v44  ;;  %v2603_v4 = vmul.f32 %v5544_v38, %v937_v44  ;;  %v3307_v10 = vmul.f32 %v5578_v54, %v937_v44  ;;  %v6946_v13 = vmul.f32 %v5576_v45, %v937_v44 }
 0x34c   : > { %v5920_v63 = vpop.f32.mrf.mxu0  ;;  %v5927_v2 = vpop.f32.mrf.mxu1  ;;  %v3992_v14 = vmul.f32 %v5615_v49, %v937_v44  ;;  %v6948_v17 = vmul.f32 %v5613_v50, %v937_v44  ;;  %v6950_v18 = vmul.f32 %v5651_v58, %v938_v35  ;;  %v4677_v19 = vmul.f32 %v5652_v62, %v937_v44 }
 0x34d   : > { %v1086_v9 = vadd.f32 %v5927_v2, %v5920_v63  ;;  %v6952_v20 = vmul.f32 %v5650_v59, %v937_v44 }
 0x34e   : > { %v1005_v15 = vpop.f32.mrf.mxu0  ;;  %v1080_v16 = vpop.f32.mrf.mxu1  ;;  %8121 = vst [vmem:[#allocation29_spill] sm:$0xff] %v6948_v17  ;;  %8122 = vst [vmem:[#allocation30_spill] sm:$0xff] %v6950_v18 }
 0x34f   : > { %8123 = vst [vmem:[#allocation31_spill] sm:$0xff] %v6952_v20  ;;  %v1081_v23 = vadd.f32 %v1080_v16, %v1005_v15  ;;  %v6954_v28 = vmul.f32 %v5545_v36, %v1086_v9  ;;  %v2606_v29 = vmul.f32 %v2593_v33, %v1086_v9  ;;  %v6956_v30 = vmul.f32 %v5579_v42, %v1086_v9 }
 0x350   : > { %v3310_v31 = vmul.f32 %v5577_v41, %v1086_v9  ;;  %v3995_v32 = vmul.f32 %v5614_v46, %v1086_v9  ;;  %v6958_v39 = vmul.f32 %v5616_v43, %v1086_v9  ;;  %v4680_v40 = vmul.f32 %v5651_v58, %v1086_v9 }
 0x351   : > { %v6962_v2 = vadd.f32 %v2606_v29, %v2604_v55  ;;  %v6964_v35 = vmul.f32 %v5544_v38, %v1081_v23  ;;  %v2605_v44 = vmul.f32 %v2592_v37, %v1081_v23  ;;  %v3309_v41 = vmul.f32 %v5576_v45, %v1081_v23 }
 0x352   : > { %v5934_v11 = vpop.f32.mrf.mxu0  ;;  %v5941_v15 = vpop.f32.mrf.mxu1  ;;  %v6968_v36 = vadd.f32 %v3310_v31, %v3308_v57  ;;  %v6970_v42 = vmul.f32 %v5578_v54, %v1081_v23  ;;  %v6976_v38 = vadd.f32 %v3995_v32, %v3993_v22  ;;  %v3994_v57 = vmul.f32 %v5613_v50, %v1081_v23  ;;  %v7096_v50 = vld [vmem:[%s8050_s5 + $0x70] sm:$0xff] }
 0x353   : > { %5942 = vmatprep.subr.mxu0 %v5934_v11  ;;  %5949 = vmatprep.subr.mxu1 %v5941_v15  ;;  %v6974_v46 = vadd.f32 %v2605_v44, %v2603_v4  ;;  %v6978_v58 = vadd.f32 %v3309_v41, %v3307_v10  ;;  %v6984_v16 = vmul.f32 %v5615_v49, %v1081_v23  ;;  %v7101_v54 = vld [vmem:[%s8050_s5 + $0x170] sm:$0xff] }
 0x354   : > { %v1204_v37 = vpop.f32.mrf.mxu0  ;;  %v1279_v55 = vpop.f32.mrf.mxu1  ;;  %5943 = vmatpush3.msra.mxu0 %v5934_v11  ;;  %5950 = vmatpush3.msra.mxu1 %v5941_v15  ;;  %v6986_v4 = vadd.f32 %v4680_v40, %v4678_v8  ;;  %v6989_v22 = vmul.f32 %v6913_v47, %v1086_v9  ;;  %v4679_v10 = vmul.f32 %v5650_v59, %v1081_v23  ;;  %v7088_v59 = vld [vmem:[%s8050_s5 + $0x160] sm:$0xff] }
 0x355   : > { %5944 = vmatprep.subr.mxu0 %v1204_v37  ;;  %5951 = vmatprep.subr.mxu1 %v1279_v55  ;;  %8124 = vst [vmem:[#allocation32_spill] sm:$0xff] %v6984_v16  ;;  %v6991_v29 = vmul.f32 %v5652_v62, %v1081_v23  ;;  %v6997_v31 = vadd.f32 %v3994_v57, %v3992_v14 }
 0x356   : > { %8125 = vst [vmem:[#allocation33_spill] sm:$0xff] %v6986_v4  ;;  %5945 = vmatpush3.msra.mxu0 %v1204_v37  ;;  %5952 = vmatpush3.msra.mxu1 %v1279_v55  ;;  %8126 = vst [vmem:[#allocation34_spill] sm:$0xff] %v6989_v22  ;;  %v7003_v49 = vadd.f32 %v4679_v10, %v4677_v19  ;;  %v1629_v62 = vmul.f32 %v6917_v52, %v6766_v60 }
 0x357   : > { %8127 = vst [vmem:[#allocation35_spill] sm:$0xff] %v6991_v29  ;;  %5947 = vmatmul.mubr.msk.f32.vlgmr.msra.gmra.mxu0 %vm577_vm0, %v6828_v48  ;;  %5954 = vmatmul.mubr.msk.f32.vlgmr.msra.gmra.mxu1 %vm577_vm0, %v6833_v51  ;;  %8128 = vst [vmem:[#allocation36_spill] sm:$0xff] %v6997_v31  ;;  %v1628_v8 = vmul.f32 %v6884_v34, %v6805_v21 }
 0x358   : > { %5956 = vmatprep.subr.mxu0 %v5934_v11  ;;  %5963 = vmatprep.subr.mxu1 %v5941_v15  ;;  %8129 = vst [vmem:[#allocation37_spill] sm:$0xff] %v7003_v49 }
 0x359   : > { %5957 = vmatpush3.msra.mxu0 %v5934_v11  ;;  %5964 = vmatpush3.msra.mxu1 %v5941_v15  ;;  %v1631_v11 = vadd.f32 %v1629_v62, %v6776_v0  ;;  %v1630_v21 = vmul.f32 %v1628_v8, %v6771_v61  ;;  %v5547_v8 = vld [vmem:[%s8050_s5 + $0x48] sm:$0xff] }
 0x35a   : > { %5958 = vmatprep.subr.mxu0 %v1204_v37  ;;  %5965 = vmatprep.subr.mxu1 %v1279_v55 }
 0x35b   : > { %5959 = vmatpush3.msra.mxu0 %v1204_v37  ;;  %5960 = vmatprep.mubr.msk.f32.mxu0 %vm577_vm0, %v6799_v7  ;;  %v1632_v34 = vadd.f32 %v1630_v21, %v6781_v1  ;;  %v5549_v21 = vld [vmem:[%s8050_s5 + $0x148] sm:$0xff] }
 0x35c   : > { %5966 = vmatpush3.msra.mxu1 %v1279_v55  ;;  %5967 = vmatprep.mubr.msk.f32.mxu1 %vm577_vm0, %v6794_v6 }
 0x35d   : > { %5961 = vmatmul.mubr.msk.f32.vlgmr.msra.gmra.mxu0 %vm577_vm0, %v6833_v51  ;;  %5968 = vmatmul.mubr.msk.f32.vlgmr.msra.gmra.mxu1 %vm577_vm0, %v6828_v48 }
 0x35e   : > { %5970 = vmatprep.subr.mxu0 %v6724_v24  ;;  %5977 = vmatprep.subr.mxu1 %v6729_v25 }
 0x35f   : > { %5971 = vmatpush3.msra.mxu0 %v6724_v24  ;;  %5974 = vmatprep.mubr.msk.f32.mxu0 %vm577_vm0, %v1631_v11 }
 0x360   : > { %5978 = vmatpush3.msra.mxu1 %v6729_v25  ;;  %5981 = vmatprep.mubr.msk.f32.mxu1 %vm577_vm0, %v1631_v11 }
 0x361   : > { %5972 = vmatprep.subr.mxu0 %v6734_v26  ;;  %5979 = vmatprep.subr.mxu1 %v6741_v27 }
 0x362   : > { %5973 = vmatpush3.msra.mxu0 %v6734_v26  ;;  %5980 = vmatpush3.msra.mxu1 %v6741_v27 }
 0x363   : > { %5975 = vmatmul.mubr.msk.f32.vlgmr.msra.gmra.mxu0 %vm577_vm0, %v1632_v34  ;;  %5982 = vmatmul.mubr.msk.f32.vlgmr.msra.gmra.mxu1 %vm577_vm0, %v1632_v34  ;;  %v5546_v34 = vld [vmem:[%s8050_s5 + $0x40] sm:$0xff] }
 0x364   : > { %5988 = vmatprep.mubr.msk.f32.mxu0 %vm577_vm0, %v6794_v6  ;;  %5995 = vmatprep.mubr.msk.f32.mxu1 %vm577_vm0, %v6799_v7 }
 0x382   : > { %v2117_v52 = vpop.xlane.xlu1 %2116  ;;  %v2114_v9 = vpop.xlane.xlu0 %2113 }
 0x383   : > { %v2118_v14 = vadd.f32 %v2117_v52, %v2114_v9  ;;  %v5548_v52 = vld [vmem:[%s8050_s5 + $0x140] sm:$0xff] }
 0x385   : > { %v2119_v19 = vrot.slane %v2118_v14, 4 }
 0x387   : > { %v2120_v23 = vadd.f32 %v2119_v19, %v2118_v14  ;;  %v5583_v19 = vld [vmem:[%s8050_s5 + $0x158] sm:$0xff] }
 0x389   : > { %v2121_v32 = vrot.slane %v2120_v23, 2 }
 0x38b   : > { %v2122_v40 = vadd.f32 %v2121_v32, %v2120_v23  ;;  %v5620_v23 = vld [vmem:[%s8050_s5 + $0x168] sm:$0xff] }
 0x38d   : > { %v2123_v44 = vrot.slane %v2122_v40, 1 }
 0x38f   : > { %v2124_v15 = vadd.f32 %v2123_v44, %v2122_v40  ;;  %v5580_v40 = vld [vmem:[%s8050_s5 + $0x50] sm:$0xff]  ;;  %v5618_v44 = vld [vmem:[%s8050_s5 + $0x68] sm:$0xff] }
 0x391   : > { %v2125_v41 = vmul.f32 0.00390625, %v2124_v15  ;;  %v7069_v15 = vld [vmem:[%s8050_s5 + $0x178] sm:$0xff] }
 0x393   : > { %v2126_v37 = vadd.f32 1e-06, %v2125_v41 }
 0x395   : > { %6310 = vrsqrt.f32 %v2126_v37  ;;  %v8131_v37 = vld [vmem:[#allocation28_spill] sm:$0xff] }
 0x3a2   : > { %v6311_v55 = vpop.eup %6310 }
 0x3a3   : > { %v2128_v62 = vmul.f32 %v6311_v55, %v6873_v12  ;;  %v5581_v12 = vld [vmem:[%s8050_s5 + $0x58] sm:$0xff] }
 0x3a5   : > { %v7072_v41 = vmul.f32 %v2128_v62, %v6766_v60 }
 0x3a7   : > { %8130 = vst [vmem:[#allocation38_spill] sm:$0xff] %v7072_v41 }
 0x417   : > { %v5948_v57 = vpop.f32.mrf.mxu0  ;;  %v5955_v10 = vpop.f32.mrf.mxu1 }
 0x418   : > { %v1439_v11 = vsub.f32 %v5948_v57, %v5955_v10  ;;  %v7075_v57 = vmul.f32 %v6311_v55, %v8131_v37  ;;  %v5655_v37 = vld [vmem:[%s8050_s5 + $0x78] sm:$0xff] }
 0x419   : > { %v1354_v9 = vpop.f32.mrf.mxu0  ;;  %v1429_v14 = vpop.f32.mrf.mxu1 }
 0x41a   : > { %v1438_v32 = vsub.f32 %v1354_v9, %v1429_v14  ;;  %8132 = vst [vmem:[#allocation28_spill] sm:$0xff] %v7075_v57  ;;  %v2616_v10 = vmul.f32 %v5547_v8, %v1439_v11  ;;  %v5582_v9 = vld [vmem:[%s8050_s5 + $0x150] sm:$0xff]  ;;  %v7083_v14 = vld [vmem:[%s8050_s5 + $0x60] sm:$0xff]  ;;  %v2622_v60 = vmul.f32 %v5549_v21, %v1439_v11  ;;  %v3320_v62 = vmul.f32 %v5581_v12, %v1439_v11 }
 0x41b   : > { %v3326_v47 = vmul.f32 %v5583_v19, %v1439_v11  ;;  %v4011_v55 = vmul.f32 %v5620_v23, %v1439_v11  ;;  %v4005_v1 = vmul.f32 %v5618_v44, %v1439_v11  ;;  %v7104_v27 = vmul.f32 %v7069_v15, %v1439_v11 }
 0x41c   : > { %v2615_v33 = vmul.f32 %v5546_v34, %v1438_v32  ;;  %v2621_v63 = vmul.f32 %v5548_v52, %v1438_v32  ;;  %v3325_v29 = vmul.f32 %v5582_v9, %v1438_v32  ;;  %v3319_v20 = vmul.f32 %v5580_v40, %v1438_v32 }
 0x41d   : > { %v5962_v45 = vpop.f32.mrf.mxu0  ;;  %v5969_v43 = vpop.f32.mrf.mxu1  ;;  %v4010_v49 = vmul.f32 %v7088_v59, %v1438_v32  ;;  %v7110_v22 = vmul.f32 %v7083_v14, %v1438_v32  ;;  %v7112_v18 = vmul.f32 %v5655_v37, %v1439_v11  ;;  %v7115_v57 = vmul.f32 %v7101_v54, %v1438_v32 }
 0x41e   : > { %v7106_v26 = vadd.f32 %v5969_v43, %v5962_v45  ;;  %v7118_v61 = vmul.f32 %v7096_v50, %v1438_v32 }
 0x41f   : > { %v1506_v25 = vpop.f32.mrf.mxu0  ;;  %v1581_v24 = vpop.f32.mrf.mxu1  ;;  %8133 = vst [vmem:[#allocation39_spill] sm:$0xff] %v7112_v18  ;;  %8134 = vst [vmem:[#allocation40_spill] sm:$0xff] %v7115_v57 }
 0x420   : > { %8135 = vst [vmem:[#allocation41_spill] sm:$0xff] %v7118_v61  ;;  %v1582_v41 = vadd.f32 %v1581_v24, %v1506_v25  ;;  %v2618_v43 = vmul.f32 %v5549_v21, %v7106_v26  ;;  %v2624_v45 = vmul.f32 %v5547_v8, %v7106_v26  ;;  %v3322_v0 = vmul.f32 %v5583_v19, %v7106_v26 }
 0x421   : > { %v3328_v16 = vmul.f32 %v5581_v12, %v7106_v26  ;;  %v4013_v17 = vmul.f32 %v5618_v44, %v7106_v26  ;;  %v4007_v11 = vmul.f32 %v5620_v23, %v7106_v26  ;;  %v4698_v6 = vmul.f32 %v5655_v37, %v7106_v26  ;;  %v8154_v37 = vld [vmem:[#allocation30_spill] sm:$0xff] }
 0x422   : > { %v2620_v18 = vsub.f32 %v2616_v10, %v2618_v43  ;;  %v2626_v57 = vadd.f32 %v2624_v45, %v2622_v60  ;;  %v2617_v4 = vmul.f32 %v5548_v52, %v1582_v41  ;;  %v2623_v32 = vmul.f32 %v5546_v34, %v1582_v41  ;;  %v8152_v60 = vld [vmem:[#allocation24_spill] sm:$0xff]  ;;  %v8155_v43 = vld [vmem:[#allocation34_spill] sm:$0xff] }
 0x423   : > { %v5976_v61 = vpop.f32.mrf.mxu0  ;;  %v5983_v24 = vpop.f32.mrf.mxu1  ;;  %v3324_v25 = vsub.f32 %v3320_v62, %v3322_v0  ;;  %v3330_v21 = vadd.f32 %v3328_v16, %v3326_v47  ;;  %v3327_v31 = vmul.f32 %v5580_v40, %v1582_v41  ;;  %v3321_v8 = vmul.f32 %v5582_v9, %v1582_v41  ;;  %v8151_v9 = vld [vmem:[#allocation38_spill] sm:$0xff]  ;;  %v8153_v62 = vld [vmem:[#allocation28_spill] sm:$0xff] }
 0x424   : > { %5984 = vmatprep.subr.mxu0 %v5976_v61  ;;  %5991 = vmatprep.subr.mxu1 %v5983_v24  ;;  %v8136_v12 = vsub.f32 %v6919_v53, %v6954_v28  ;;  %v7133_v23 = vadd.f32 %v2626_v57, %v6962_v2  ;;  %v2619_v44 = vsub.f32 %v2615_v33, %v2617_v4  ;;  %v8150_v57 = vld [vmem:[#allocation25_spill] sm:$0xff] }
 0x425   : > { %v1705_v10 = vpop.f32.mrf.mxu0  ;;  %v1780_v52 = vpop.f32.mrf.mxu1  ;;  %5985 = vmatpush3.msra.mxu0 %v5976_v61  ;;  %5992 = vmatpush3.msra.mxu1 %v5983_v24  ;;  %v2625_v34 = vadd.f32 %v2623_v32, %v2621_v63  ;;  %v8137_v0 = vsub.f32 %v6930_v56, %v6956_v30  ;;  %v7141_v47 = vadd.f32 %v3330_v21, %v6968_v36  ;;  %v8158_v32 = vld [vmem:[#allocation20_spill] sm:$0xff] }
 0x426   : > { %v7130_v19 = vadd.f32 %v2620_v18, %v8136_v12  ;;  %5986 = vmatprep.subr.mxu0 %v1705_v10  ;;  %5993 = vmatprep.subr.mxu1 %v1780_v52  ;;  %v8138_v53 = vsub.f32 %v6941_v3, %v6964_v35  ;;  %v3329_v28 = vadd.f32 %v3327_v31, %v3325_v29  ;;  %v8142_v29 = vld [vmem:[#allocation33_spill] sm:$0xff]  ;;  %v8144_v31 = vld [vmem:[#allocation27_spill] sm:$0xff] }
 0x427   : > { %v7138_v16 = vadd.f32 %v3324_v25, %v8137_v0  ;;  %v3323_v2 = vsub.f32 %v3319_v20, %v3321_v8  ;;  %5987 = vmatpush3.msra.mxu0 %v1705_v10  ;;  %5994 = vmatpush3.msra.mxu1 %v1780_v52  ;;  %v7149_v63 = vadd.f32 %v2625_v34, %v6974_v46  ;;  %v8160_v25 = vld [vmem:[#allocation37_spill] sm:$0xff]  ;;  %v8162_v8 = vld [vmem:[#allocation31_spill] sm:$0xff]  ;;  %v8168_v0 = vld [vmem:[#allocation26_spill] sm:$0xff] }
 0x428   : > { %v7146_v18 = vadd.f32 %v2619_v44, %v8138_v53  ;;  %v4015_v56 = vadd.f32 %v4013_v17, %v4011_v55  ;;  %v4009_v30 = vsub.f32 %v4005_v1, %v4007_v11  ;;  %5989 = vmatmul.mubr.msk.f32.vlgmr.msra.gmra.mxu0 %vm577_vm0, %v6828_v48  ;;  %5996 = vmatmul.mubr.msk.f32.vlgmr.msra.gmra.mxu1 %vm577_vm0, %v6833_v51  ;;  %v8163_v12 = vld [vmem:[#allocation35_spill] sm:$0xff] }
 0x429   : > { %v7156_v33 = vadd.f32 %v3329_v28, %v6978_v58  ;;  %v8139_v3 = vsub.f32 %v6946_v13, %v6970_v42  ;;  %v4012_v35 = vmul.f32 %v7083_v14, %v1582_v41  ;;  %5998 = vmatprep.subr.mxu0 %v5976_v61  ;;  %6005 = vmatprep.subr.mxu1 %v5983_v24  ;;  %v8167_v34 = vld [vmem:[#allocation23_spill] sm:$0xff] }
 0x42a   : > { %v7165_v1 = vadd.f32 %v4015_v56, %v6976_v38  ;;  %v8140_v17 = vsub.f32 %v6943_v5, %v6958_v39  ;;  %v4006_v46 = vmul.f32 %v7088_v59, %v1582_v41  ;;  %5999 = vmatpush3.msra.mxu0 %v5976_v61  ;;  %6006 = vmatpush3.msra.mxu1 %v5983_v24  ;;  %v8141_v61 = vld [vmem:[#allocation36_spill] sm:$0xff]  ;;  %v8159_v24 = vld [vmem:[#allocation21_spill] sm:$0xff] }
 0x42b   : > { %v7161_v20 = vadd.f32 %v3323_v2, %v8139_v3  ;;  %v4014_v58 = vadd.f32 %v4012_v35, %v4010_v49  ;;  %v4700_v13 = vadd.f32 %v4698_v6, %v7104_v27  ;;  %v4692_v42 = vmul.f32 %v7069_v15, %v7106_v26  ;;  %6000 = vmatprep.subr.mxu0 %v1705_v10  ;;  %v8143_v6 = vld [vmem:[#allocation39_spill] sm:$0xff]  ;;  %v8148_v59 = vld [vmem:[#allocation40_spill] sm:$0xff]  ;;  %v8149_v15 = vld [vmem:[#allocation41_spill] sm:$0xff] }
 0x42c   : > { %v7170_v36 = vadd.f32 %v4009_v30, %v8140_v17  ;;  %6007 = vmatprep.subr.mxu1 %v1780_v52  ;;  %v4008_v38 = vsub.f32 %v7110_v22, %v4006_v46  ;;  %v4697_v4 = vmul.f32 %v7096_v50, %v1582_v41  ;;  %v4691_v5 = vmul.f32 %v7101_v54, %v1582_v41  ;;  %v8145_v22 = vld [vmem:[#allocation29_spill] sm:$0xff]  ;;  %v8146_v50 = vld [vmem:[#allocation32_spill] sm:$0xff] }
 0x42d   : > { %6001 = vmatpush3.msra.mxu0 %v1705_v10  ;;  %6002 = vmatprep.mubr.msk.f32.mxu0 %vm577_vm0, %v6799_v7  ;;  %v7182_v39 = vadd.f32 %v4014_v58, %v8141_v61  ;;  %v7185_v27 = vadd.f32 %v4700_v13, %v8142_v29  ;;  %v4694_v26 = vsub.f32 %v8143_v6, %v4692_v42  ;;  %v5551_v56 = vld [vmem:[%s8050_s5 + $0x88] sm:$0xff]  ;;  %v5550_v35 = vld [vmem:[%s8050_s5 + $0x80] sm:$0xff]  ;;  %v5585_v13 = vld [vmem:[%s8050_s5 + $0x98] sm:$0xff] }
 0x42e   : > { %6008 = vmatpush3.msra.mxu1 %v1780_v52  ;;  %6009 = vmatprep.mubr.msk.f32.mxu1 %vm577_vm0, %v8144_v31  ;;  %v8147_v49 = vsub.f32 %v8145_v22, %v8146_v50  ;;  %v4699_v40 = vadd.f32 %v4697_v4, %v8148_v59  ;;  %v4693_v41 = vsub.f32 %v8149_v15, %v4691_v5  ;;  %v8166_v52 = vld [vmem:[#allocation22_spill] sm:$0xff]  ;;  %v5553_v3 = vld [vmem:[%s8050_s5 + $0x188] sm:$0xff]  ;;  %v5552_v17 = vld [vmem:[%s8050_s5 + $0x180] sm:$0xff] }
 0x42f   : > { %6003 = vmatmul.mubr.msk.f32.vlgmr.msra.gmra.mxu0 %vm577_vm0, %v6833_v51  ;;  %6010 = vmatmul.mubr.msk.f32.vlgmr.msra.gmra.mxu1 %vm577_vm0, %v6828_v48  ;;  %v2132_v14 = vadd.f32 %v8151_v9, %v8150_v57  ;;  %v2131_v55 = vmul.f32 %v8153_v62, %v8152_v60  ;;  %v8156_v45 = vsub.f32 %v8154_v37, %v8155_v43  ;;  %v5587_v42 = vld [vmem:[%s8050_s5 + $0x198] sm:$0xff]  ;;  %v5584_v5 = vld [vmem:[%s8050_s5 + $0x90] sm:$0xff]  ;;  %v5622_v61 = vld [vmem:[%s8050_s5 + $0xa8] sm:$0xff] }
 0x430   : > { %v7193_v54 = vadd.f32 %v4008_v38, %v8147_v49  ;;  %6012 = vmatprep.subr.mxu0 %v8158_v32  ;;  %6019 = vmatprep.subr.mxu1 %v8159_v24  ;;  %v7213_v21 = vadd.f32 %v4699_v40, %v8160_v25  ;;  %v8164_v44 = vsub.f32 %v8162_v8, %v8163_v12  ;;  %v5624_v38 = vld [vmem:[%s8050_s5 + $0x1a8] sm:$0xff]  ;;  %v7265_v29 = vld [vmem:[%s8050_s5 + $0x1b8] sm:$0xff]  ;;  %v7273_v22 = vld [vmem:[%s8050_s5 + $0xa0] sm:$0xff] }
 0x431   : > { %v7208_v11 = vadd.f32 %v4694_v26, %v8156_v45  ;;  %6013 = vmatpush3.msra.mxu0 %v8158_v32  ;;  %6016 = vmatprep.mubr.msk.f32.mxu0 %vm577_vm0, %v2132_v14  ;;  %v2133_v53 = vadd.f32 %v2131_v55, %v8168_v0  ;;  %v5586_v26 = vld [vmem:[%s8050_s5 + $0x190] sm:$0xff]  ;;  %v7278_v50 = vld [vmem:[%s8050_s5 + $0x1a0] sm:$0xff] }
 0x432   : > { %8161 = vst [vmem:[#allocation33_spill] sm:$0xff] %v7213_v21  ;;  %v7218_v10 = vadd.f32 %v4693_v41, %v8164_v44  ;;  %6020 = vmatpush3.msra.mxu1 %v8159_v24  ;;  %6023 = vmatprep.mubr.msk.f32.mxu1 %vm577_vm0, %v2132_v14  ;;  %v5659_v41 = vld [vmem:[%s8050_s5 + $0xb8] sm:$0xff]  ;;  %v7286_v57 = vld [vmem:[%s8050_s5 + $0xb0] sm:$0xff] }
 0x433   : > { %8157 = vst [vmem:[#allocation36_spill] sm:$0xff] %v7208_v11  ;;  %6014 = vmatprep.subr.mxu0 %v8166_v52  ;;  %6021 = vmatprep.subr.mxu1 %v8167_v34  ;;  %v7291_v9 = vld [vmem:[%s8050_s5 + $0x1b0] sm:$0xff] }
 0x434   : > { %8165 = vst [vmem:[#allocation39_spill] sm:$0xff] %v7218_v10  ;;  %6015 = vmatpush3.msra.mxu0 %v8166_v52  ;;  %6022 = vmatpush3.msra.mxu1 %v8167_v34 }
 0x435   : > { %6017 = vmatmul.mubr.msk.f32.vlgmr.msra.gmra.mxu0 %vm577_vm0, %v2133_v53  ;;  %6024 = vmatmul.mubr.msk.f32.vlgmr.msra.gmra.mxu1 %vm577_vm0, %v2133_v53 }
 0x436   : > { %6030 = vmatprep.mubr.msk.f32.mxu0 %vm577_vm0, %v8144_v31  ;;  %6037 = vmatprep.mubr.msk.f32.mxu1 %vm577_vm0, %v6799_v7 }
 0x4e8   : > { %v5990_v28 = vpop.f32.mrf.mxu0  ;;  %v5997_v2 = vpop.f32.mrf.mxu1 }
 0x4e9   : > { %v1940_v30 = vsub.f32 %v5990_v28, %v5997_v2 }
 0x4ea   : > { %v1855_v46 = vpop.f32.mrf.mxu0  ;;  %v1930_v58 = vpop.f32.mrf.mxu1 }
 0x4eb   : > { %v1939_v4 = vsub.f32 %v1855_v46, %v1930_v58  ;;  %v2638_v6 = vmul.f32 %v5551_v56, %v1940_v30  ;;  %v2644_v49 = vmul.f32 %v5553_v3, %v1940_v30  ;;  %v3342_v59 = vmul.f32 %v5585_v13, %v1940_v30 }
 0x4ec   : > { %v3348_v40 = vmul.f32 %v5587_v42, %v1940_v30  ;;  %v4033_v15 = vmul.f32 %v5624_v38, %v1940_v30  ;;  %v4027_v37 = vmul.f32 %v5622_v61, %v1940_v30  ;;  %v7294_v43 = vmul.f32 %v7265_v29, %v1940_v30 }
 0x4ed   : > { %v2637_v62 = vmul.f32 %v5550_v35, %v1939_v4  ;;  %v2643_v55 = vmul.f32 %v5552_v17, %v1939_v4  ;;  %v3347_v32 = vmul.f32 %v5586_v26, %v1939_v4  ;;  %v3341_v24 = vmul.f32 %v5584_v5, %v1939_v4 }
 0x4ee   : > { %v4032_v25 = vmul.f32 %v7278_v50, %v1939_v4  ;;  %v7300_v44 = vmul.f32 %v7273_v22, %v1939_v4  ;;  %v7302_v52 = vmul.f32 %v5659_v41, %v1940_v30  ;;  %v7305_v34 = vmul.f32 %v7291_v9, %v1939_v4 }
 0x4ef   : > { %v6004_v14 = vpop.f32.mrf.mxu0  ;;  %v6011_v60 = vpop.f32.mrf.mxu1  ;;  %v7308_v0 = vmul.f32 %v7286_v57, %v1939_v4 }
 0x4f0   : > { %v7296_v45 = vadd.f32 %v6011_v60, %v6004_v14  ;;  %8169 = vst [vmem:[#allocation27_spill] sm:$0xff] %v7305_v34 }
 0x4f1   : > { %v2007_v8 = vpop.f32.mrf.mxu0  ;;  %v2082_v12 = vpop.f32.mrf.mxu1  ;;  %8170 = vst [vmem:[#allocation29_spill] sm:$0xff] %v7308_v0 }
 0x4f2   : > { %v2083_v53 = vadd.f32 %v2082_v12, %v2007_v8  ;;  %v2640_v28 = vmul.f32 %v5553_v3, %v7296_v45  ;;  %v2646_v2 = vmul.f32 %v5551_v56, %v7296_v45  ;;  %v3344_v46 = vmul.f32 %v5587_v42, %v7296_v45 }
 0x4f3   : > { %v3350_v58 = vmul.f32 %v5585_v13, %v7296_v45  ;;  %v4035_v14 = vmul.f32 %v5622_v61, %v7296_v45  ;;  %v4029_v30 = vmul.f32 %v5624_v38, %v7296_v45  ;;  %v4720_v60 = vmul.f32 %v5659_v41, %v7296_v45 }
 0x4f4   : > { %v2642_v10 = vsub.f32 %v2638_v6, %v2640_v28  ;;  %v2648_v21 = vadd.f32 %v2646_v2, %v2644_v49  ;;  %v2639_v11 = vmul.f32 %v5552_v17, %v2083_v53  ;;  %v2645_v4 = vmul.f32 %v5550_v35, %v2083_v53  ;;  %v5628_v28 = vld [vmem:[%s8050_s5 + $0x1e8] sm:$0xff]  ;;  %v5556_v2 = vld [vmem:[%s8050_s5 + $0x1c0] sm:$0xff] }
 0x4f5   : > { %v6018_v0 = vpop.f32.mrf.mxu0  ;;  %v6025_v8 = vpop.f32.mrf.mxu1  ;;  %v3346_v12 = vsub.f32 %v3342_v59, %v3344_v46  ;;  %v3352_v3 = vadd.f32 %v3350_v58, %v3348_v40  ;;  %v3349_v34 = vmul.f32 %v5584_v5, %v2083_v53  ;;  %v3343_v56 = vmul.f32 %v5586_v26, %v2083_v53  ;;  %v5626_v46 = vld [vmem:[%s8050_s5 + $0xe8] sm:$0xff]  ;;  %v7428_v58 = vld [vmem:[%s8050_s5 + $0x1f8] sm:$0xff] }
 0x4f6   : > { %6026 = vmatprep.subr.mxu0 %v6018_v0  ;;  %6033 = vmatprep.subr.mxu1 %v6025_v8  ;;  %v7318_v13 = vadd.f32 %v2642_v10, %v7130_v19  ;;  %v7321_v42 = vadd.f32 %v2648_v21, %v7133_v23  ;;  %v2641_v38 = vsub.f32 %v2637_v62, %v2639_v11 }
 0x4f7   : > { %v2206_v61 = vpop.f32.mrf.mxu0  ;;  %v2281_v6 = vpop.f32.mrf.mxu1  ;;  %6027 = vmatpush3.msra.mxu0 %v6018_v0  ;;  %6034 = vmatpush3.msra.mxu1 %v6025_v8  ;;  %v2647_v35 = vadd.f32 %v2645_v4, %v2643_v55  ;;  %v7324_v17 = vadd.f32 %v3346_v12, %v7138_v16  ;;  %v7327_v5 = vadd.f32 %v3352_v3, %v7141_v47 }
 0x4f8   : > { %6028 = vmatprep.subr.mxu0 %v2206_v61  ;;  %6035 = vmatprep.subr.mxu1 %v2281_v6  ;;  %v7330_v19 = vadd.f32 %v2641_v38, %v7146_v18  ;;  %v3351_v10 = vadd.f32 %v3349_v34, %v3347_v32  ;;  %v3345_v23 = vsub.f32 %v3341_v24, %v3343_v56  ;;  %v8173_v62 = vld [vmem:[#allocation29_spill] sm:$0xff] }
 0x4f9   : > { %8171 = vst [vmem:[#allocation32_spill] sm:$0xff] %v7327_v5  ;;  %6029 = vmatpush3.msra.mxu0 %v2206_v61  ;;  %6036 = vmatpush3.msra.mxu1 %v2281_v6  ;;  %v7333_v11 = vadd.f32 %v2647_v35, %v7149_v63  ;;  %v4037_v21 = vadd.f32 %v4035_v14, %v4033_v15  ;;  %v5588_v14 = vld [vmem:[%s8050_s5 + $0xd0] sm:$0xff] }
 0x4fa   : > { %v4031_v26 = vsub.f32 %v4027_v37, %v4029_v30  ;;  %6031 = vmatmul.mubr.msk.f32.vlgmr.msra.gmra.mxu0 %vm577_vm0, %v6828_v48  ;;  %6038 = vmatmul.mubr.msk.f32.vlgmr.msra.gmra.mxu1 %vm577_vm0, %v6833_v51  ;;  %v7340_v16 = vadd.f32 %v3351_v10, %v7156_v33  ;;  %v7343_v47 = vadd.f32 %v3345_v23, %v7161_v20  ;;  %v5590_v30 = vld [vmem:[%s8050_s5 + $0x1d0] sm:$0xff]  ;;  %v5663_v23 = vld [vmem:[%s8050_s5 + $0xf8] sm:$0xff] }
 0x4fb   : > { %v4034_v18 = vmul.f32 %v7273_v22, %v2083_v53  ;;  %6040 = vmatprep.subr.mxu0 %v6018_v0  ;;  %6047 = vmatprep.subr.mxu1 %v6025_v8  ;;  %v7347_v63 = vadd.f32 %v4037_v21, %v7165_v1  ;;  %v4028_v59 = vmul.f32 %v7278_v50, %v2083_v53 }
 0x4fc   : > { %v7350_v49 = vadd.f32 %v4031_v26, %v7170_v36  ;;  %6041 = vmatpush3.msra.mxu0 %v6018_v0  ;;  %6048 = vmatpush3.msra.mxu1 %v6025_v8  ;;  %v4722_v33 = vadd.f32 %v4720_v60, %v7294_v43  ;;  %v4714_v20 = vmul.f32 %v7265_v29, %v7296_v45  ;;  %v5554_v0 = vld [vmem:[%s8050_s5 + $0xc0] sm:$0xff]  ;;  %v5662_v26 = vld [vmem:[%s8050_s5 + $0xf0] sm:$0xff] }
 0x4fd   : > { %v4036_v40 = vadd.f32 %v4034_v18, %v4032_v25  ;;  %6042 = vmatprep.subr.mxu0 %v2206_v61  ;;  %6049 = vmatprep.subr.mxu1 %v2281_v6  ;;  %v4030_v22 = vsub.f32 %v7300_v44, %v4028_v59  ;;  %v4719_v1 = vmul.f32 %v7286_v57, %v2083_v53  ;;  %v8172_v57 = vld [vmem:[#allocation27_spill] sm:$0xff]  ;;  %v5555_v44 = vld [vmem:[%s8050_s5 + $0xc8] sm:$0xff]  ;;  %v5627_v60 = vld [vmem:[%s8050_s5 + $0x1e0] sm:$0xff] }
 0x4fe   : > { %v4713_v15 = vmul.f32 %v7291_v9, %v2083_v53  ;;  %6043 = vmatpush3.msra.mxu0 %v2206_v61  ;;  %6044 = vmatprep.mubr.msk.f32.mxu0 %vm577_vm0, %v6799_v7  ;;  %v7365_v50 = vadd.f32 %v4722_v33, %v7185_v27  ;;  %v4716_v29 = vsub.f32 %v7302_v52, %v4714_v20  ;;  %v8174_v7 = vld [vmem:[#allocation36_spill] sm:$0xff]  ;;  %v8175_v27 = vld [vmem:[#allocation33_spill] sm:$0xff]  ;;  %v5589_v53 = vld [vmem:[%s8050_s5 + $0xd8] sm:$0xff] }
 0x4ff   : > { %v7362_v36 = vadd.f32 %v4036_v40, %v7182_v39  ;;  %6050 = vmatpush3.msra.mxu1 %v2281_v6  ;;  %6051 = vmatprep.mubr.msk.f32.mxu1 %vm577_vm0, %v8144_v31  ;;  %v7371_v41 = vadd.f32 %v4030_v22, %v7193_v54  ;;  %v4721_v9 = vadd.f32 %v4719_v1, %v8172_v57  ;;  %v8176_v31 = vld [vmem:[#allocation39_spill] sm:$0xff]  ;;  %v7391_v54 = vld [vmem:[%s8177_s3] sm:$0xff]  ;;  %v5557_v52 = vld [vmem:[%s8050_s5 + $0x1c8] sm:$0xff] }
 0x500   : > { %v4715_v55 = vsub.f32 %v8173_v62, %v4713_v15  ;;  %6045 = vmatmul.mubr.msk.f32.vlgmr.msra.gmra.mxu0 %vm577_vm0, %v6833_v51  ;;  %6052 = vmatmul.mubr.msk.f32.vlgmr.msra.gmra.mxu1 %vm577_vm0, %v6828_v48  ;;  %v7380_v39 = vadd.f32 %v4716_v29, %v8174_v7  ;;  %v7396_v51 = vld [vmem:[%s8177_s3 + $0x10] sm:$0xff]  ;;  %v5625_v61 = vld [vmem:[%s8050_s5 + $0xe0] sm:$0xff] }
 0x501   : > { %v7383_v37 = vadd.f32 %v4721_v9, %v8175_v27  ;;  %6058 = vmatprep.mubr.msk.f32.mxu0 %vm577_vm0, %v7391_v54  ;;  %6065 = vmatprep.mubr.msk.f32.mxu1 %vm577_vm0, %v7396_v51  ;;  %v7460_v18 = vld [vmem:[%s8050_s5 + $0x1f0] sm:$0xff] }
 0x502   : > { %v7386_v43 = vadd.f32 %v4715_v55, %v8176_v31 }
 0x5ba   : > { %v6032_v48 = vpop.f32.mrf.mxu0  ;;  %v6039_v45 = vpop.f32.mrf.mxu1 }
 0x5bb   : > { %v7402_v32 = vsub.f32 %v6032_v48, %v6039_v45 }
 0x5bc   : > { %v2356_v24 = vpop.f32.mrf.mxu0  ;;  %v2431_v25 = vpop.f32.mrf.mxu1 }
 0x5bd   : > { %v2440_v34 = vsub.f32 %v2356_v24, %v2431_v25  ;;  %v2660_v12 = vmul.f32 %v5555_v44, %v7402_v32  ;;  %v2666_v3 = vmul.f32 %v5557_v52, %v7402_v32  ;;  %v7442_v56 = vmul.f32 %v5589_v53, %v7402_v32  ;;  %v5591_v25 = vld [vmem:[%s8050_s5 + $0x1d8] sm:$0xff] }
 0x5be   : > { %v4055_v38 = vmul.f32 %v5628_v28, %v7402_v32  ;;  %v4049_v10 = vmul.f32 %v5626_v46, %v7402_v32  ;;  %v4740_v21 = vmul.f32 %v7428_v58, %v7402_v32  ;;  %v4734_v55 = vmul.f32 %v5663_v23, %v7402_v32 }
 0x5bf   : > { %v2659_v35 = vmul.f32 %v5554_v0, %v2440_v34  ;;  %v2665_v33 = vmul.f32 %v5556_v2, %v2440_v34  ;;  %v3369_v20 = vmul.f32 %v5590_v30, %v2440_v34  ;;  %v3363_v22 = vmul.f32 %v5588_v14, %v2440_v34 }
 0x5c0   : > { %v6046_v4 = vpop.f32.mrf.mxu0  ;;  %v6053_v8 = vpop.f32.mrf.mxu1  ;;  %v4054_v1 = vmul.f32 %v5627_v60, %v2440_v34  ;;  %v4048_v9 = vmul.f32 %v5625_v61, %v2440_v34  ;;  %v4739_v7 = vmul.f32 %v7460_v18, %v2440_v34  ;;  %v7464_v27 = vmul.f32 %v5662_v26, %v2440_v34 }
 0x5c1   : > { %v2589_v6 = vadd.f32 %v6053_v8, %v6046_v4 }
 0x5c2   : > { %v2508_v59 = vpop.f32.mrf.mxu0  ;;  %v2583_v40 = vpop.f32.mrf.mxu1 }
 0x5c3   : > { %v2584_v15 = vadd.f32 %v2583_v40, %v2508_v59  ;;  %v2662_v29 = vmul.f32 %v5557_v52, %v2589_v6  ;;  %v2668_v57 = vmul.f32 %v5555_v44, %v2589_v6  ;;  %v4057_v62 = vmul.f32 %v5626_v46, %v2589_v6 }
 0x5c4   : > { %v7469_v4 = vmul.f32 %v5591_v25, %v2589_v6  ;;  %v4051_v8 = vmul.f32 %v5628_v28, %v2589_v6  ;;  %v3372_v5 = vmul.f32 %v5589_v53, %v2589_v6 }
 0x5c5   : > { %v2664_v31 = vsub.f32 %v2660_v12, %v2662_v29  ;;  %v2670_v48 = vadd.f32 %v2668_v57, %v2666_v3  ;;  %v2661_v45 = vmul.f32 %v5556_v2, %v2584_v15  ;;  %v2667_v24 = vmul.f32 %v5554_v0, %v2584_v15 }
 0x5c6   : > { %v3371_v52 = vmul.f32 %v5588_v14, %v2584_v15  ;;  %v3365_v44 = vmul.f32 %v5590_v30, %v2584_v15  ;;  %v4742_v2 = vmul.f32 %v5663_v23, %v2589_v6  ;;  %v4059_v57 = vadd.f32 %v4057_v62, %v4055_v38 }
 0x5c7   : > { %v2672_v46 = vadd.f32 %v2664_v31, %v7318_v13  ;;  %v2674_v59 = vadd.f32 %v2670_v48, %v7321_v42  ;;  %v2663_v40 = vsub.f32 %v2659_v35, %v2661_v45  ;;  %v2669_v34 = vadd.f32 %v2667_v24, %v2665_v33  ;;  %v7478_v13 = vld [vmem:[%s8177_s3 + $0x8] sm:$0xff]  ;;  %v7483_v42 = vld [vmem:[%s8177_s3 + $0x18] sm:$0xff] }
 0x5c8   : > { %v3373_v12 = vadd.f32 %v3371_v52, %v3369_v20  ;;  %v3367_v3 = vsub.f32 %v3363_v22, %v3365_v44  ;;  %v7492_v28 = vadd.f32 %v4059_v57, %v7347_v63  ;;  %v4056_v14 = vmul.f32 %v5625_v61, %v2584_v15  ;;  %v7551_v20 = vld [vmem:[%s8049_s4] sm:$0xff] }
 0x5c9   : > { %6054 = vmatprep.subr.mxu0 %v2672_v46  ;;  %6061 = vmatprep.subr.mxu1 %v2674_v59  ;;  %v2671_v0 = vadd.f32 %v2663_v40, %v7330_v19  ;;  %v2673_v29 = vadd.f32 %v2669_v34, %v7333_v11  ;;  %v4053_v11 = vsub.f32 %v4049_v10, %v4051_v8  ;;  %v3160_v44 = vstv %s3159_s19  ;;  %v7614_v40 = vld [vmem:[%s6709_s11 + $0x8] sm:$0xff]  ;;  %s7800_s19 = sld [smem:[#allocation3 + $0x103]] }
 0x5ca   : > { %6055 = vmatpush3.msra.mxu0 %v2672_v46  ;;  %6062 = vmatpush3.msra.mxu1 %v2674_v59  ;;  %v7486_v53 = vadd.f32 %v3373_v12, %v7340_v16  ;;  %v7489_v19 = vadd.f32 %v3367_v3, %v7343_v47  ;;  %v4050_v30 = vmul.f32 %v5627_v60, %v2584_v15  ;;  %v3170_v8 = vstv %s5572_s0  ;;  %s5681_s0 = sld [smem:[#allocation3 + $0x180]] }
 0x5cb   : > { %6056 = vmatprep.subr.mxu0 %v2671_v0  ;;  %6063 = vmatprep.subr.mxu1 %v2673_v29  ;;  %v7495_v38 = vadd.f32 %v4053_v11, %v7350_v49  ;;  %v4744_v35 = vadd.f32 %v4742_v2, %v4740_v21  ;;  %v4736_v16 = vmul.f32 %v7428_v58, %v2589_v6  ;;  %v3176_v3 = vstv %s7609_s26  ;;  %s5680_s26 = sld [smem:[#allocation6 + $0x3]] }
 0x5cc   : > { %6057 = vmatpush3.msra.mxu0 %v2671_v0  ;;  %6064 = vmatpush3.msra.mxu1 %v2673_v29  ;;  %v4058_v47 = vadd.f32 %v4056_v14, %v4054_v1  ;;  %v4052_v10 = vsub.f32 %v4048_v9, %v4050_v30  ;;  %v4741_v63 = vmul.f32 %v5662_v26, %v2584_v15  ;;  %v3182_v14 = vstv %s7611_s18  ;;  %s5682_s18 = sld [smem:[#allocation3 + $0x181]] }
 0x5cd   : > { %6059 = vmatmul.mubr.msk.f32.vlgmr.msra.gmra.mxu0 %vm577_vm0, %v7478_v13  ;;  %6066 = vmatmul.mubr.msk.f32.vlgmr.msra.gmra.mxu1 %vm577_vm0, %v7483_v42  ;;  %v7503_v60 = vadd.f32 %v4744_v35, %v7365_v50  ;;  %v4738_v61 = vsub.f32 %v4734_v55, %v4736_v16  ;;  %v4735_v49 = vmul.f32 %v7460_v18, %v2584_v15  ;;  %v7628_v16 = vld [vmem:[%s6709_s11 + $0x10] sm:$0xff] }
 0x5ce   : > { %6068 = vmatprep.subr.mxu0 %v2672_v46  ;;  %6075 = vmatprep.subr.mxu1 %v2674_v59  ;;  %v7507_v58 = vadd.f32 %v4058_v47, %v7362_v36  ;;  %v7510_v6 = vadd.f32 %v4052_v10, %v7371_v41  ;;  %v4743_v23 = vadd.f32 %v4741_v63, %v4739_v7  ;;  %v7522_v36 = vld [vmem:[%s8049_s4 + $0x18] sm:$0x1]  ;;  %v7527_v41 = vld [vmem:[%s8049_s4 + $0x8] sm:$0x1] }
 0x5cf   : > { %6069 = vmatpush3.msra.mxu0 %v2672_v46  ;;  %6076 = vmatpush3.msra.mxu1 %v2674_v59  ;;  %v3370_v21 = vmul.f32 %v5591_v25, %v7402_v32  ;;  %v7514_v26 = vadd.f32 %v4738_v61, %v7380_v39  ;;  %v4737_v50 = vsub.f32 %v7464_v27, %v4735_v49  ;;  %v7632_v63 = vld [vmem:[%s6709_s11 + $0x28] sm:$0xff] }
 0x5d0   : > { %6070 = vmatprep.subr.mxu0 %v2671_v0  ;;  %6077 = vmatprep.subr.mxu1 %v2673_v29  ;;  %v7530_v39 = vadd.f32 %v4743_v23, %v7383_v37  ;;  %v3368_v32 = vsub.f32 %v7442_v56, %v7469_v4  ;;  %v7546_v37 = vld [vmem:[%s8049_s4 + $0x10] sm:$0xff]  ;;  %v3164_v4 = vstv %s3163_s25  ;;  %v3171_v47 = vmul.f32 %v7628_v16, %v3170_v8  ;;  %s5646_s25 = sld [smem:[#allocation3 + $0x102]] }
 0x5d1   : > { %6071 = vmatpush3.msra.mxu0 %v2671_v0  ;;  %6072 = vmatprep.mubr.msk.f32.mxu0 %vm577_vm0, %v7396_v51  ;;  %v3374_v18 = vadd.f32 %v3372_v5, %v3370_v21  ;;  %v7537_v33 = vadd.f32 %v4737_v50, %v7386_v43  ;;  %v8178_v43 = vld [vmem:[#allocation32_spill] sm:$0xff]  ;;  %v3166_v34 = vmul.f32 %v7614_v40, %v3164_v4  ;;  %v7619_v0 = vld [vmem:[%s6709_s11 + $0x18] sm:$0xff] }
 0x5d2   : > { %6078 = vmatpush3.msra.mxu1 %v2673_v29  ;;  %6079 = vmatprep.mubr.msk.f32.mxu1 %vm577_vm0, %v7391_v54  ;;  %v3376_v5 = vadd.f32 %v3368_v32, %v7324_v17  ;;  %v3172_v29 = vmul.f32 %v7619_v0, %v3170_v8  ;;  %v3178_v61 = vmul.f32 %v7632_v63, %v3176_v3  ;;  %v7636_v50 = vld [vmem:[%s6709_s11 + $0x38] sm:$0xff] }
 0x5d3   : > { %6073 = vmatmul.mubr.msk.f32.vlgmr.msra.gmra.mxu0 %vm577_vm0, %v7483_v42  ;;  %6080 = vmatmul.mubr.msk.f32.vlgmr.msra.gmra.mxu1 %vm577_vm0, %v7478_v13  ;;  %v3378_v56 = vadd.f32 %v3374_v18, %v8178_v43  ;;  %v3184_v32 = vmul.f32 %v7636_v50, %v3182_v14  ;;  %v7640_v18 = vld [vmem:[%s6709_s11 + $0x20] sm:$0xff] }
 0x5d4   : > { %6082 = vmatprep.subr.msk.mxu0 %vm2996_vm1, %v7522_v36  ;;  %6089 = vmatprep.subr.msk.mxu1 %vm2996_vm1, %v7527_v41 }
 0x5d5   : > { %6083 = vmatpush3.msk.msra.mxu0 %vm2996_vm1, %v7522_v36  ;;  %6090 = vmatpush3.msk.msra.mxu1 %vm2996_vm1, %v7527_v41 }
 0x5d6   : > { %6084 = vmatprep.subr.mxu0 %v7546_v37  ;;  %6091 = vmatprep.subr.mxu1 %v7551_v20 }
 0x5d7   : > { %6085 = vmatpush3.msra.mxu0 %v7546_v37  ;;  %6092 = vmatpush3.msra.mxu1 %v7551_v20 }
 0x5d8   : > { %6096 = vmatprep.subr.mxu0 %v3376_v5  ;;  %6103 = vmatprep.subr.mxu1 %v3378_v56 }
 0x68d   : > { %v6060_v22 = vpop.f32.mrf.mxu0  ;;  %v6067_v1 = vpop.f32.mrf.mxu1 }
 0x68e   : > { %v2838_v55 = vsub.f32 %v6060_v22, %v6067_v1 }
 0x68f   : > { %v2747_v15 = vpop.f32.mrf.mxu0  ;;  %v2828_v9 = vpop.f32.mrf.mxu1 }
 0x690   : > { %v2837_v62 = vsub.f32 %v2747_v15, %v2828_v9  ;;  %v7644_v9 = vld [vmem:[%s6709_s11 + $0x30] sm:$0xff] }
 0x692   : > { %6093 = vmatprep.mubr.msk.f32.mxu1 %vm2989_vm2, %v2837_v62  ;;  %v3183_v62 = vmul.f32 %v7644_v9, %v3182_v14 }
 0x693   : > { %v6074_v7 = vpop.f32.mrf.mxu0  ;;  %v6081_v27 = vpop.f32.mrf.mxu1  ;;  %6094 = vmatmul.mubr.msk.f32.vlgmr.msra.gmra.mxu1 %vm2989_vm2, %v2838_v55 }
 0x694   : > { %6104 = vmatpush3.msra.mxu1 %v3378_v56  ;;  %6107 = vmatprep.mubr.msk.f32.mxu1 %vm577_vm0, %v7396_v51  ;;  %v2986_v45 = vadd.f32 %v6081_v27, %v6074_v7 }
 0x695   : > { %v2905_v17 = vpop.f32.mrf.mxu0  ;;  %v2980_v31 = vpop.f32.mrf.mxu1  ;;  %6105 = vmatprep.subr.mxu1 %v7486_v53 }
 0x696   : > { %v2981_v48 = vadd.f32 %v2980_v31, %v2905_v17  ;;  %6106 = vmatpush3.msra.mxu1 %v7486_v53 }
 0x697   : > { %6117 = vmatprep.subr.mxu1 %v3378_v56  ;;  %6108 = vmatmul.mubr.msk.f32.vlgmr.msra.gmra.mxu1 %vm577_vm0, %v7483_v42 }
 0x698   : > { %6086 = vmatprep.mubr.msk.f32.mxu0 %vm2989_vm2, %v2981_v48  ;;  %6118 = vmatpush3.msra.mxu1 %v3378_v56 }
 0x699   : > { %6087 = vmatmul.mubr.msk.f32.vlgmr.msra.gmra.mxu0 %vm2989_vm2, %v2986_v45  ;;  %6119 = vmatprep.subr.mxu1 %v7486_v53 }
 0x69a   : > { %6097 = vmatpush3.msra.mxu0 %v3376_v5  ;;  %6120 = vmatpush3.msra.mxu1 %v7486_v53  ;;  %v7623_v53 = vld [vmem:[%s6709_s11] sm:$0xff]  ;;  %s5607_s11 = sld [smem:[#allocation3 + $0x80]] }
 0x69b   : > { %6098 = vmatprep.subr.mxu0 %v7489_v19  ;;  %6100 = vmatprep.mubr.msk.f32.mxu0 %vm577_vm0, %v7391_v54 }
 0x69c   : > { %6099 = vmatpush3.msra.mxu0 %v7489_v19  ;;  %6121 = vmatprep.mubr.msk.f32.mxu1 %vm577_vm0, %v7391_v54 }
 0x69d   : > { %6110 = vmatprep.subr.mxu0 %v3376_v5  ;;  %6131 = vmatprep.subr.msk.mxu1 %vm2996_vm1, %v7527_v41 }
 0x69e   : > { %6101 = vmatmul.mubr.msk.f32.vlgmr.msra.gmra.mxu0 %vm577_vm0, %v7478_v13  ;;  %6122 = vmatmul.mubr.msk.f32.vlgmr.msra.gmra.mxu1 %vm577_vm0, %v7478_v13 }
 0x69f   : > { %6111 = vmatpush3.msra.mxu0 %v3376_v5  ;;  %6132 = vmatpush3.msk.msra.mxu1 %vm2996_vm1, %v7527_v41  ;;  %v3177_v5 = vmul.f32 %v7640_v18, %v3176_v3 }
 0x6a0   : > { %6112 = vmatprep.subr.mxu0 %v7489_v19  ;;  %6133 = vmatprep.subr.mxu1 %v7551_v20 }
 0x6a1   : > { %6113 = vmatpush3.msra.mxu0 %v7489_v19  ;;  %6134 = vmatpush3.msra.mxu1 %v7551_v20  ;;  %v3165_v19 = vmul.f32 %v7623_v53, %v3164_v4 }
 0x6a2   : > { %6114 = vmatprep.mubr.msk.f32.mxu0 %vm577_vm0, %v7396_v51  ;;  %6124 = vmatprep.subr.msk.mxu0 %vm2996_vm1, %v7522_v36 }
 0x6a3   : > { %6145 = vmatprep.subr.mxu1 %v7492_v28  ;;  %6115 = vmatmul.mubr.msk.f32.vlgmr.msra.gmra.mxu0 %vm577_vm0, %v7483_v42 }
 0x6a4   : > { %6125 = vmatpush3.msk.msra.mxu0 %vm2996_vm1, %v7522_v36 }
 0x6a5   : > { %6126 = vmatprep.subr.mxu0 %v7546_v37 }
 0x6a6   : > { %6127 = vmatpush3.msra.mxu0 %v7546_v37 }
 0x6a7   : > { %6138 = vmatprep.subr.mxu0 %v7495_v38 }
 0x753   : > { %v6095_v24 = vpop.f32.mrf.mxu1 }
 0x755   : > { %v3150_v25 = vpop.f32.mrf.mxu1 }
 0x757   : > { %v6109_v46 = vpop.f32.mrf.mxu1 }
 0x759   : > { %v6088_v52 = vpop.f32.mrf.mxu0  ;;  %v3520_v11 = vpop.f32.mrf.mxu1 }
 0x75a   : > { %v3156_v59 = vadd.f32 %v6095_v24, %v6088_v52 }
 0x75b   : > { %v3066_v12 = vpop.f32.mrf.mxu0 }
 0x75c   : > { %v3162_v2 = vadd.f32 %v3160_v44, %v3156_v59  ;;  %v3151_v57 = vadd.f32 %v3150_v25, %v3066_v12 }
 0x75e   : > { %v3168_v30 = vadd.f32 %v3166_v34, %v3162_v2  ;;  %v3161_v35 = vadd.f32 %v3160_v44, %v3151_v57  ;;  %v6102_v10 = vpop.f32.mrf.mxu0  ;;  %v6123_v56 = vpop.f32.mrf.mxu1 }
 0x75f   : > { %v3530_v1 = vsub.f32 %v6102_v10, %v6109_v46 }
 0x760   : > { %v3174_v49 = vadd.f32 %v3172_v29, %v3168_v30  ;;  %v3167_v23 = vadd.f32 %v3165_v19, %v3161_v35  ;;  %v3445_v21 = vpop.f32.mrf.mxu0  ;;  %v3672_v17 = vpop.f32.mrf.mxu1 }
 0x761   : > { %v3529_v43 = vsub.f32 %v3445_v21, %v3520_v11 }
 0x762   : > { %v3173_v22 = vadd.f32 %v3171_v47, %v3167_v23  ;;  %v3180_v15 = vadd.f32 %v3178_v61, %v3174_v49 }
 0x763   : > { %v6116_v55 = vpop.f32.mrf.mxu0  ;;  %6135 = vmatprep.mubr.msk.f32.mxu1 %vm2989_vm2, %v3529_v43 }
 0x764   : > { %6136 = vmatmul.mubr.msk.f32.vlgmr.msra.gmra.mxu1 %vm2989_vm2, %v3530_v1  ;;  %v7649_v7 = vadd.f32 %v3184_v32, %v3180_v15  ;;  %v3179_v27 = vadd.f32 %v3177_v5, %v3173_v22  ;;  %v3678_v25 = vadd.f32 %v6123_v56, %v6116_v55 }
 0x765   : > { %v3597_v31 = vpop.f32.mrf.mxu0  ;;  %6146 = vmatpush3.msra.mxu1 %v7492_v28  ;;  %6149 = vmatprep.mubr.msk.f32.mxu1 %vm577_vm0, %v7396_v51 }
 0x766   : > { %v3673_v48 = vadd.f32 %v3672_v17, %v3597_v31  ;;  %6147 = vmatprep.subr.mxu1 %v7507_v58  ;;  %v7656_v45 = vmul.f32 0.70710677, %v7649_v7  ;;  %v7658_v24 = vadd.f32 %v3183_v62, %v3179_v27 }
 0x767   : > { %6148 = vmatpush3.msra.mxu1 %v7507_v58 }
 0x768   : > { %6128 = vmatprep.mubr.msk.f32.mxu0 %vm2989_vm2, %v3673_v48  ;;  %6159 = vmatprep.subr.mxu1 %v7492_v28  ;;  %v3192_v4 = vand.u32 2147483647, %v7656_v45  ;;  %v7665_v52 = vmul.f32 0.70710677, %v7658_v24  ;;  %vm3232_vm3 = vcmp.ge.f32.partialorder %v7656_v45, 0.0 }
 0x769   : > { %6129 = vmatmul.mubr.msk.f32.vlgmr.msra.gmra.mxu0 %vm2989_vm2, %v3678_v25  ;;  %6150 = vmatmul.mubr.msk.f32.vlgmr.msra.gmra.mxu1 %vm577_vm0, %v7483_v42 }
 0x76a   : > { %6139 = vmatpush3.msra.mxu0 %v7495_v38  ;;  %6160 = vmatpush3.msra.mxu1 %v7492_v28  ;;  %v3194_v44 = vmul.f32 0.3275911, %v3192_v4  ;;  %v3191_v8 = vand.u32 2147483647, %v7665_v52  ;;  %vm3231_vm4 = vcmp.ge.f32.partialorder %v7665_v52, 0.0 }
 0x76b   : > { %6140 = vmatprep.subr.mxu0 %v7510_v6  ;;  %6161 = vmatprep.subr.mxu1 %v7507_v58 }
 0x76c   : > { %6141 = vmatpush3.msra.mxu0 %v7510_v6  ;;  %6162 = vmatpush3.msra.mxu1 %v7507_v58  ;;  %v3196_v46 = vadd.f32 1.0, %v3194_v44  ;;  %v3193_v59 = vmul.f32 0.3275911, %v3191_v8  ;;  %v3219_v58 = vsub.f32 0.0, %v3191_v8 }
 0x76d   : > { %6142 = vmatprep.mubr.msk.f32.mxu0 %vm577_vm0, %v7391_v54  ;;  %6152 = vmatprep.subr.mxu0 %v7495_v38 }
 0x76e   : > { %6163 = vmatprep.mubr.msk.f32.mxu1 %vm577_vm0, %v7391_v54  ;;  %6173 = vmatprep.subr.msk.mxu1 %vm2996_vm1, %v7527_v41  ;;  %6312 = vrcp.f32 %v3196_v46  ;;  %v3195_v28 = vadd.f32 1.0, %v3193_v59  ;;  %v3221_v12 = vmul.f32 %v3219_v58, %v3191_v8 }
 0x76f   : > { %6143 = vmatmul.mubr.msk.f32.vlgmr.msra.gmra.mxu0 %vm577_vm0, %v7478_v13  ;;  %6164 = vmatmul.mubr.msk.f32.vlgmr.msra.gmra.mxu1 %vm577_vm0, %v7478_v13 }
 0x770   : > { %6153 = vmatpush3.msra.mxu0 %v7495_v38  ;;  %6174 = vmatpush3.msk.msra.mxu1 %vm2996_vm1, %v7527_v41  ;;  %6314 = vrcp.f32 %v3195_v28  ;;  %v3220_v38 = vsub.f32 0.0, %v3192_v4  ;;  %v3223_v11 = vmul.f32 1.442695, %v3221_v12  ;;  %v3187_v28 = vmul.f32 0.5, %v7658_v24 }
 0x771   : > { %6154 = vmatprep.subr.mxu0 %v7510_v6  ;;  %6175 = vmatprep.subr.mxu1 %v7551_v20  ;;  %v3848_v24 = vstv %s5607_s11  ;;  %v3844_v12 = vstv %s5606_s27  ;;  %s5683_s11 = sld [smem:[#allocation3 + $0x182]] }
 0x772   : > { %6155 = vmatpush3.msra.mxu0 %v7510_v6  ;;  %6176 = vmatpush3.msra.mxu1 %v7551_v20  ;;  %v3222_v6 = vmul.f32 %v3220_v38, %v3192_v4  ;;  %v3188_v4 = vmul.f32 0.5, %v7649_v7  ;;  %s5684_s27 = sld [smem:[#allocation3 + $0x183]] }
 0x773   : > { %6156 = vmatprep.mubr.msk.f32.mxu0 %vm577_vm0, %v7396_v51  ;;  %6166 = vmatprep.subr.msk.mxu0 %vm2996_vm1, %v7522_v36 }
 0x774   : > { %6187 = vmatprep.subr.mxu1 %v7503_v60  ;;  %6157 = vmatmul.mubr.msk.f32.vlgmr.msra.gmra.mxu0 %vm577_vm0, %v7483_v42  ;;  %v3225_v2 = vmul.f32 1.442695, %v3222_v6 }
 0x775   : > { %6167 = vmatpush3.msk.msra.mxu0 %vm2996_vm1, %v7522_v36 }
 0x776   : > { %6168 = vmatprep.subr.mxu0 %v7546_v37  ;;  %6316 = vpow2.f32 %v3225_v2 }
 0x777   : > { %6169 = vmatpush3.msra.mxu0 %v7546_v37  ;;  %6318 = vpow2.f32 %v3223_v11  ;;  %v3860_v11 = vstv %s5609_s22  ;;  %s7902_s22 = sld [smem:[#allocation2]] }
 0x778   : > { %6180 = vmatprep.subr.mxu0 %v7514_v26 }
 0x77b   : > { %v6313_v34 = vpop.eup %6312 }
 0x77c   : > { %v3202_v3 = vmul.f32 1.0614054, %v6313_v34 }
 0x77d   : > { %v6315_v29 = vpop.eup %6314 }
 0x77e   : > { %v3204_v57 = vadd.f32 -1.4531521, %v3202_v3  ;;  %v3201_v19 = vmul.f32 1.0614054, %v6315_v29  ;;  %v3854_v3 = vstv %s5608_s24  ;;  %s7898_s24 = sshll.u32 %s6605_s14, 7 }
 0x780   : > { %v3206_v14 = vmul.f32 %v6313_v34, %v3204_v57  ;;  %v3203_v30 = vadd.f32 -1.4531521, %v3201_v19 }
 0x782   : > { %v3208_v35 = vadd.f32 1.4214138, %v3206_v14  ;;  %v3205_v47 = vmul.f32 %v6315_v29, %v3203_v30  ;;  %v3856_v30 = vmul.f32 %v7619_v0, %v3854_v3 }
 0x783   : > { %v6317_v22 = vpop.eup %6316 }
 0x784   : > { %v3210_v10 = vmul.f32 %v6313_v34, %v3208_v35  ;;  %v3207_v61 = vadd.f32 1.4214138, %v3205_v47  ;;  %v6319_v55 = vpop.eup %6318  ;;  %v3849_v47 = vmul.f32 %v7623_v53, %v3848_v24 }
 0x786   : > { %v3212_v49 = vadd.f32 -0.28449672, %v3210_v10  ;;  %v3209_v23 = vmul.f32 %v6315_v29, %v3207_v61  ;;  %v3866_v10 = vstv %s7719_s28  ;;  %s3282_s28 = sld [smem:[#allocation8 + %s7898_s24]] }
 0x788   : > { %v3214_v21 = vmul.f32 %v6313_v34, %v3212_v49  ;;  %v3211_v32 = vadd.f32 -0.28449672, %v3209_v23  ;;  %v3855_v23 = vmul.f32 %v7628_v16, %v3854_v3 }
 0x78a   : > { %v3216_v5 = vadd.f32 0.2548296, %v3214_v21  ;;  %v3213_v43 = vmul.f32 %v6315_v29, %v3211_v32  ;;  %v3862_v32 = vmul.f32 %v7632_v63, %v3860_v11 }
 0x78c   : > { %v3218_v56 = vmul.f32 %v6313_v34, %v3216_v5  ;;  %v3215_v1 = vadd.f32 0.2548296, %v3213_v43 }
 0x78e   : > { %v3228_v15 = vmul.f32 %v6317_v22, %v3218_v56  ;;  %v3217_v62 = vmul.f32 %v6315_v29, %v3215_v1  ;;  %v3850_v29 = vmul.f32 %v7614_v40, %v3848_v24  ;;  %v3868_v22 = vmul.f32 %v7636_v50, %v3866_v10 }
 0x78f   : > { %v3861_v1 = vmul.f32 %v7640_v18, %v3860_v11 }
 0x790   : > { %v3230_v27 = vsub.f32 1.0, %v3228_v15  ;;  %v3227_v17 = vmul.f32 %v6319_v55, %v3217_v62 }
 0x792   : > { %v3234_v31 = vsub.f32 0.0, %v3230_v27  ;;  %v3229_v48 = vsub.f32 1.0, %v3227_v17 }
 0x794   : > { %v3236_v25 = vsel %vm3232_vm3, %v3230_v27, %v3234_v31  ;;  %v3233_v8 = vsub.f32 0.0, %v3229_v48  ;;  %v3867_v31 = vmul.f32 %v7644_v9, %v3866_v10 }
 0x795   : > { %v3238_v44 = vadd.f32 1.0, %v3236_v25 }
 0x796   : > { %v3235_v59 = vsel %vm3231_vm4, %v3229_v48, %v3233_v8 }
 0x797   : > { %v7710_v46 = vmul.f32 %v3238_v44, %v3188_v4  ;;  %v3237_v38 = vadd.f32 1.0, %v3235_v59 }
 0x799   : > { %v3244_v58 = vsel %vm577_vm0, %v7710_v46, 0.0  ;;  %v7715_v6 = vmul.f32 %v3237_v38, %v3187_v28 }
 0x79a   : > { %3245 = vadd.xlane.f32.xlu1 %v3244_v58 }
 0x79b   : > { %v3241_v45 = vsel %vm577_vm0, %v7715_v6, 0.0 }
 0x79c   : > { %3242 = vadd.xlane.f32.xlu0 %v3241_v45 }
 0x824   : > { %v6137_v7 = vpop.f32.mrf.mxu1 }
 0x826   : > { %v3834_v52 = vpop.f32.mrf.mxu1 }
 0x829   : > { %v6130_v34 = vpop.f32.mrf.mxu0  ;;  %v6151_v57 = vpop.f32.mrf.mxu1 }
 0x82a   : > { %v3840_v2 = vadd.f32 %v6137_v7, %v6130_v34 }
 0x82b   : > { %v3753_v19 = vpop.f32.mrf.mxu0  ;;  %v4205_v21 = vpop.f32.mrf.mxu1 }
 0x82c   : > { %v3846_v14 = vadd.f32 %v3844_v12, %v3840_v2  ;;  %v3835_v35 = vadd.f32 %v3834_v52, %v3753_v19 }
 0x82e   : > { %v3852_v61 = vadd.f32 %v3850_v29, %v3846_v14  ;;  %v3845_v49 = vadd.f32 %v3844_v12, %v3835_v35 }
 0x82f   : > { %v6144_v5 = vpop.f32.mrf.mxu0  ;;  %v6165_v27 = vpop.f32.mrf.mxu1 }
 0x830   : > { %v3858_v43 = vadd.f32 %v3856_v30, %v3852_v61  ;;  %v3851_v56 = vadd.f32 %v3849_v47, %v3845_v49  ;;  %v4215_v48 = vsub.f32 %v6144_v5, %v6151_v57 }
 0x831   : > { %v4130_v15 = vpop.f32.mrf.mxu0  ;;  %v4357_v8 = vpop.f32.mrf.mxu1 }
 0x832   : > { %v3857_v62 = vadd.f32 %v3855_v23, %v3851_v56  ;;  %v4214_v55 = vsub.f32 %v4130_v15, %v4205_v21  ;;  %v3864_v17 = vadd.f32 %v3862_v32, %v3858_v43 }
 0x834   : > { %v6158_v25 = vpop.f32.mrf.mxu0  ;;  %6177 = vmatprep.mubr.msk.f32.mxu1 %vm2989_vm2, %v4214_v55  ;;  %v7731_v4 = vadd.f32 %v3868_v22, %v3864_v17  ;;  %v3863_v44 = vadd.f32 %v3861_v1, %v3857_v62 }
 0x835   : > { %6178 = vmatmul.mubr.msk.f32.vlgmr.msra.gmra.mxu1 %vm2989_vm2, %v4215_v48  ;;  %v4363_v45 = vadd.f32 %v6165_v27, %v6158_v25 }
 0x836   : > { %v4282_v59 = vpop.f32.mrf.mxu0  ;;  %6188 = vmatpush3.msra.mxu1 %v7503_v60  ;;  %6191 = vmatprep.mubr.msk.f32.mxu1 %vm577_vm0, %v7396_v51  ;;  %v7738_v28 = vmul.f32 0.70710677, %v7731_v4  ;;  %v7740_v38 = vadd.f32 %v3867_v31, %v3863_v44  ;;  %v3872_v27 = vmul.f32 0.5, %v7731_v4 }
 0x837   : > { %v4358_v58 = vadd.f32 %v4357_v8, %v4282_v59  ;;  %6189 = vmatprep.subr.mxu1 %v7530_v39 }
 0x838   : > { %6190 = vmatpush3.msra.mxu1 %v7530_v39  ;;  %v3876_v7 = vand.u32 2147483647, %v7738_v28  ;;  %v7746_v24 = vmul.f32 0.70710677, %v7740_v38  ;;  %vm3916_vm5 = vcmp.ge.f32.partialorder %v7738_v28, 0.0  ;;  %v3871_v44 = vmul.f32 0.5, %v7740_v38 }
 0x839   : > { %6170 = vmatprep.mubr.msk.f32.mxu0 %vm2989_vm2, %v4358_v58  ;;  %6201 = vmatprep.subr.mxu1 %v7503_v60 }
 0x83a   : > { %6171 = vmatmul.mubr.msk.f32.vlgmr.msra.gmra.mxu0 %vm2989_vm2, %v4363_v45  ;;  %6192 = vmatmul.mubr.msk.f32.vlgmr.msra.gmra.mxu1 %vm577_vm0, %v7483_v42  ;;  %v3878_v52 = vmul.f32 0.3275911, %v3876_v7  ;;  %v3875_v34 = vand.u32 2147483647, %v7746_v24  ;;  %vm3915_vm6 = vcmp.ge.f32.partialorder %v7746_v24, 0.0  ;;  %v4533_v45 = vstv %s5644_s30  ;;  %s3965_s30 = sadd.s32 1, %s7898_s24 }
 0x83b   : > { %6181 = vmatpush3.msra.mxu0 %v7514_v26  ;;  %6202 = vmatpush3.msra.mxu1 %v7503_v60  ;;  %v4529_v24 = vstv %s5643_s16  ;;  %s3966_s16 = sld [smem:[#allocation8 + %s3965_s30]] }
 0x83c   : > { %6182 = vmatprep.subr.mxu0 %v7537_v33  ;;  %6203 = vmatprep.subr.mxu1 %v7530_v39  ;;  %v3880_v12 = vadd.f32 1.0, %v3878_v52  ;;  %v3877_v3 = vmul.f32 0.3275911, %v3875_v34  ;;  %v4539_v52 = vstv %s5645_s17  ;;  %s7907_s17 = sld [smem:[#allocation9 + %s7898_s24]] }
 0x83d   : > { %6183 = vmatpush3.msra.mxu0 %v7537_v33  ;;  %6204 = vmatpush3.msra.mxu1 %v7530_v39 }
 0x83e   : > { %6184 = vmatprep.mubr.msk.f32.mxu0 %vm577_vm0, %v7391_v54  ;;  %6194 = vmatprep.subr.mxu0 %v7514_v26  ;;  %6320 = vrcp.f32 %v3880_v12  ;;  %v3879_v2 = vadd.f32 1.0, %v3877_v3  ;;  %v4535_v3 = vmul.f32 %v7614_v40, %v4533_v45 }
 0x83f   : > { %6185 = vmatmul.mubr.msk.f32.vlgmr.msra.gmra.mxu0 %vm577_vm0, %v7478_v13  ;;  %6205 = vmatprep.mubr.msk.f32.mxu1 %vm577_vm0, %v7391_v54  ;;  %v3904_v54 = vsub.f32 0.0, %v3876_v7 }
 0x840   : > { %6195 = vmatpush3.msra.mxu0 %v7514_v26  ;;  %6198 = vmatprep.mubr.msk.f32.mxu0 %vm577_vm0, %v7396_v51  ;;  %6322 = vrcp.f32 %v3879_v2  ;;  %v3903_v51 = vsub.f32 0.0, %v3875_v34 }
 0x841   : > { %6196 = vmatprep.subr.mxu0 %v7537_v33  ;;  %6206 = vmatmul.mubr.msk.f32.vlgmr.msra.gmra.mxu1 %vm577_vm0, %v7478_v13  ;;  %v3906_v13 = vmul.f32 %v3904_v54, %v3876_v7  ;;  %v4545_v54 = vstv %s5646_s25  ;;  %s4650_s25 = sadd.s32 2, %s7898_s24  ;;  %s3968_s3 = smul.f32 %s3966_s16, %s7902_s22 }
 0x842   : > { %6197 = vmatpush3.msra.mxu0 %v7537_v33  ;;  %6215 = vmatprep.subr.msk.mxu1 %vm2996_vm1, %v7527_v41  ;;  %v3905_v60 = vmul.f32 %v3903_v51, %v3875_v34  ;;  %s3289_s1 = smul.f32 %s7907_s17, %s7902_s22  ;;  %s538_s16 = sand.u32 1, %s6484_s21  }
 0x843   : > { %6199 = vmatmul.mubr.msk.f32.vlgmr.msra.gmra.mxu0 %vm577_vm0, %v7483_v42  ;;  %6216 = vmatpush3.msk.msra.mxu1 %vm2996_vm1, %v7527_v41  ;;  %v3909_v41 = vmul.f32 1.442695, %v3906_v13  ;;  %v4541_v13 = vmul.f32 %v7619_v0, %v4539_v52 }
 0x844   : > { %6217 = vmatprep.subr.mxu1 %v7551_v20  ;;  %6208 = vmatprep.subr.msk.mxu0 %vm2996_vm1, %v7522_v36  ;;  %v3907_v57 = vmul.f32 1.442695, %v3905_v60  ;;  %v4534_v60 = vmul.f32 %v7623_v53, %v4533_v45 }
 0x845   : > { %6218 = vmatpush3.msra.mxu1 %v7551_v20  ;;  %6209 = vmatpush3.msk.msra.mxu0 %vm2996_vm1, %v7522_v36  ;;  %6324 = vpow2.f32 %v3909_v41  ;;  %v4551_v41 = vstv %s7800_s19  ;;  %s3284_s19 = smul.f32 %s3282_s28, %s7902_s22  ;;  %s5479_s28 = sshll.u32 %s538_s16, 6 }
 0x846   : > { %6210 = vmatprep.subr.mxu0 %v7546_v37  ;;  %6326 = vpow2.f32 %v3907_v57 }
 0x847   : > { %6211 = vmatpush3.msra.mxu0 %v7546_v37  ;;  %s3285_s2 = sadd.f32 1.0, %s3284_s19 }
 0x848   : > { %s7943_s19 = sld [smem:[#allocation9 + %s4650_s25]] }
 0x84b   : > { %v6321_v42 = vpop.eup %6320 }
 0x84c   : > { %v3886_v26 = vmul.f32 1.0614054, %v6321_v42 }
 0x84d   : > { %v6323_v39 = vpop.eup %6322 }
 0x84e   : > { %v3888_v33 = vadd.f32 -1.4531521, %v3886_v26  ;;  %v3885_v29 = vmul.f32 1.0614054, %v6323_v39 }
 0x850   : > { %v3890_v19 = vmul.f32 %v6321_v42, %v3888_v33  ;;  %v3887_v20 = vadd.f32 -1.4531521, %v3885_v29  ;;  %v4540_v29 = vmul.f32 %v7628_v16, %v4539_v52 }
 0x852   : > { %v3892_v11 = vadd.f32 1.4214138, %v3890_v19  ;;  %v3889_v14 = vmul.f32 %v6323_v39, %v3887_v20  ;;  %v6325_v21 = vpop.eup %6324  ;;  %v4547_v19 = vmul.f32 %v7632_v63, %v4545_v54 }
 0x853   : > { %v6327_v56 = vpop.eup %6326 }
 0x854   : > { %v3894_v36 = vmul.f32 %v6321_v42, %v3892_v11  ;;  %v3891_v30 = vadd.f32 1.4214138, %v3889_v14 }
 0x856   : > { %v3896_v35 = vadd.f32 -0.28449672, %v3894_v36  ;;  %v3893_v47 = vmul.f32 %v6323_v39, %v3891_v30  ;;  %v4553_v30 = vmul.f32 %v7636_v50, %v4551_v41 }
 0x858   : > { %v3898_v37 = vmul.f32 %v6321_v42, %v3896_v35  ;;  %v3895_v10 = vadd.f32 -0.28449672, %v3893_v47  ;;  %v4546_v35 = vmul.f32 %v7640_v18, %v4545_v54 }
 0x85a   : > { %v3900_v61 = vadd.f32 0.2548296, %v3898_v37  ;;  %v3897_v49 = vmul.f32 %v6323_v39, %v3895_v10 }
 0x85c   : > { %v3902_v23 = vmul.f32 %v6321_v42, %v3900_v61  ;;  %v3899_v32 = vadd.f32 0.2548296, %v3897_v49 }
 0x85e   : > { %v3912_v5 = vmul.f32 %v6325_v21, %v3902_v23  ;;  %v3901_v43 = vmul.f32 %v6323_v39, %v3899_v32  ;;  %v4552_v23 = vmul.f32 %v7644_v9, %v4551_v41 }
 0x860   : > { %v3914_v22 = vsub.f32 1.0, %v3912_v5  ;;  %v3911_v1 = vmul.f32 %v6327_v56, %v3901_v43 }
 0x862   : > { %v3918_v15 = vsub.f32 0.0, %v3914_v22  ;;  %v3913_v62 = vsub.f32 1.0, %v3911_v1 }
 0x864   : > { %v3920_v55 = vsel %vm3916_vm5, %v3914_v22, %v3918_v15  ;;  %v3917_v31 = vsub.f32 0.0, %v3913_v62 }
 0x865   : > { %v3922_v17 = vadd.f32 1.0, %v3920_v55 }
 0x866   : > { %v3919_v25 = vsel %vm3915_vm6, %v3913_v62, %v3917_v31 }
 0x867   : > { %v7791_v48 = vmul.f32 %v3922_v17, %v3872_v27  ;;  %v3921_v8 = vadd.f32 1.0, %v3919_v25 }
 0x869   : > { %v3928_v59 = vsel %vm577_vm0, %v7791_v48, 0.0  ;;  %v7796_v58 = vmul.f32 %v3921_v8, %v3871_v44 }
 0x86a   : > { %3929 = vadd.xlane.f32.xlu1 %v3928_v59 }
 0x86b   : > { %v3925_v28 = vsel %vm577_vm0, %v7796_v58, 0.0 }
 0x86c   : > { %3926 = vadd.xlane.f32.xlu0 %v3925_v28 }
 0x8f5   : > { %v6179_v4 = vpop.f32.mrf.mxu1 }
 0x8f7   : > { %v4519_v38 = vpop.f32.mrf.mxu1 }
 0x8fa   : > { %v6172_v7 = vpop.f32.mrf.mxu0  ;;  %v6193_v34 = vpop.f32.mrf.mxu1 }
 0x8fb   : > { %v4525_v12 = vadd.f32 %v6179_v4, %v6172_v7 }
 0x8fc   : > { %v4438_v2 = vpop.f32.mrf.mxu0  ;;  %v4890_v26 = vpop.f32.mrf.mxu1 }
 0x8fd   : > { %v4531_v51 = vadd.f32 %v4529_v24, %v4525_v12  ;;  %v4520_v42 = vadd.f32 %v4519_v38, %v4438_v2 }
 0x8ff   : > { %v4537_v39 = vadd.f32 %v4535_v3, %v4531_v51  ;;  %v4530_v33 = vadd.f32 %v4529_v24, %v4520_v42  ;;  %v6186_v57 = vpop.f32.mrf.mxu0 }
 0x900   : > { %v4900_v10 = vsub.f32 %v6186_v57, %v6193_v34 }
 0x901   : > { %v4543_v20 = vadd.f32 %v4541_v13, %v4537_v39  ;;  %v4536_v11 = vadd.f32 %v4534_v60, %v4530_v33  ;;  %v4815_v14 = vpop.f32.mrf.mxu0  ;;  %v6207_v36 = vpop.f32.mrf.mxu1 }
 0x902   : > { %v4899_v47 = vsub.f32 %v4815_v14, %v4890_v26 }
 0x903   : > { %v4542_v37 = vadd.f32 %v4540_v29, %v4536_v11  ;;  %v6200_v61 = vpop.f32.mrf.mxu0  ;;  %v4549_v49 = vadd.f32 %v4547_v19, %v4543_v20  ;;  %v5042_v21 = vpop.f32.mrf.mxu1 }
 0x904   : > { %6219 = vmatprep.mubr.msk.f32.mxu1 %vm2989_vm2, %v4899_v47  ;;  %v5048_v22 = vadd.f32 %v6207_v36, %v6200_v61 }
 0x905   : > { %v4967_v32 = vpop.f32.mrf.mxu0  ;;  %6220 = vmatmul.mubr.msk.f32.vlgmr.msra.gmra.mxu1 %vm2989_vm2, %v4900_v10  ;;  %v4555_v5 = vadd.f32 %v4553_v30, %v4549_v49  ;;  %v4548_v43 = vadd.f32 %v4546_v35, %v4542_v37 }
 0x906   : > { %v5043_v56 = vadd.f32 %v5042_v21, %v4967_v32 }
 0x907   : > { %v4559_v1 = vmul.f32 0.70710677, %v4555_v5  ;;  %v4554_v15 = vadd.f32 %v4552_v23, %v4548_v43  ;;  %v4557_v61 = vmul.f32 0.5, %v4555_v5 }
 0x908   : > { %6212 = vmatprep.mubr.msk.f32.mxu0 %vm2989_vm2, %v5043_v56 }
 0x909   : > { %6213 = vmatmul.mubr.msk.f32.vlgmr.msra.gmra.mxu0 %vm2989_vm2, %v5048_v22  ;;  %v4561_v62 = vand.u32 2147483647, %v4559_v1  ;;  %v4558_v55 = vmul.f32 0.70710677, %v4554_v15  ;;  %vm4601_vm7 = vcmp.ge.f32.partialorder %v4559_v1, 0.0  ;;  %v4556_v43 = vmul.f32 0.5, %v4554_v15 }
 0x90a   : > { %v5214_v15 = vstv %s5680_s26  ;;  %s7913_s26 = sld [smem:[#allocation9 + %s3965_s30]] }
 0x90b   : > { %v4563_v27 = vmul.f32 0.3275911, %v4561_v62  ;;  %v4560_v17 = vand.u32 2147483647, %v4558_v55  ;;  %v4589_v8 = vsub.f32 0.0, %v4561_v62  ;;  %vm4600_vm8 = vcmp.ge.f32.partialorder %v4558_v55, 0.0 }
 0x90c   : > { %v5218_v55 = vstv %s5681_s0  ;;  %s7911_s0 = sld [smem:[#allocation8 + %s4650_s25]]  ;;  %s4658_s25 = smul.f32 %s7943_s19, %s7902_s22 }
 0x90d   : > { %v4565_v31 = vadd.f32 1.0, %v4563_v27  ;;  %v4562_v25 = vmul.f32 0.3275911, %v4560_v17  ;;  %v4588_v59 = vsub.f32 0.0, %v4560_v17  ;;  %v4591_v28 = vmul.f32 %v4589_v8, %v4561_v62 }
 0x90f   : > { %6328 = vrcp.f32 %v4565_v31  ;;  %v4564_v44 = vadd.f32 1.0, %v4562_v25  ;;  %v4590_v38 = vmul.f32 %v4588_v59, %v4560_v17  ;;  %v4594_v7 = vmul.f32 1.442695, %v4591_v28 }
 0x910   : > { %v5224_v17 = vstv %s5682_s18  ;;  %v5220_v25 = vmul.f32 %v7614_v40, %v5218_v55  ;;  %v5230_v59 = vstv %s5683_s11  ;;  %s3973_s30 = smul.f32 %s7913_s26, %s7902_s22 }
 0x911   : > { %6330 = vrcp.f32 %v4564_v44  ;;  %v4592_v12 = vmul.f32 1.442695, %v4590_v38 }
 0x912   : > { %6332 = vpow2.f32 %v4594_v7  ;;  %v5236_v7 = vstv %s5684_s27  ;;  %s3969_s27 = sadd.f32 1.0, %s3968_s3  ;;  %s4653_s17 = smul.f32 %s7911_s0, %s7902_s22 }
 0x913   : > { %6334 = vpow2.f32 %v4592_v12  ;;  %v5232_v12 = vmul.f32 %v7632_v63, %v5230_v59  ;;  %v5238_v40 = vmul.f32 %v7636_v50, %v5236_v7  ;;  %s7961_s3 = scalar_lea.vmem [#allocation11], %s5479_s28  ;;  %s5335_s0 = sadd.s32 3, %s7898_s24 }
 0x914   : > { %s5336_s26 = sld [smem:[#allocation8 + %s5335_s0]]  ;;  %s5693_s24 = sshll.u32 %s6605_s14, 10 }
 0x915   : > { %s5337_s18 = sld [smem:[#allocation9 + %s5335_s0]]  ;;  %s8005_s14 = scalar_lea.sflag [#allocation4], %s538_s16 }
 0x91a   : > { %s5338_s11 = smul.f32 %s5336_s26, %s7902_s22 }
 0x91b   : > { %s5343_s19 = smul.f32 %s5337_s18, %s7902_s22  ;;  %s7995_s22 = scalar_lea.hbm %s8060_s15, %s5693_s24 }
 0x91c   : > { %v6329_v4 = vpop.eup %6328 }
 0x91d   : > { %v4571_v45 = vmul.f32 1.0614054, %v6329_v4 }
 0x91e   : > { %v6331_v24 = vpop.eup %6330 }
 0x91f   : > { %v4573_v52 = vadd.f32 -1.4531521, %v4571_v45  ;;  %v4570_v34 = vmul.f32 1.0614054, %v6331_v24  ;;  %v6333_v19 = vpop.eup %6332  ;;  %v5219_v45 = vmul.f32 %v7623_v53, %v5218_v55 }
 0x920   : > { %v6335_v36 = vpop.eup %6334 }
 0x921   : > { %v4575_v3 = vmul.f32 %v6329_v4, %v4573_v52  ;;  %v4572_v2 = vadd.f32 -1.4531521, %v4570_v34  ;;  %v5225_v34 = vmul.f32 %v7628_v16, %v5224_v17 }
 0x923   : > { %v4577_v54 = vadd.f32 1.4214138, %v4575_v3  ;;  %v4574_v51 = vmul.f32 %v6331_v24, %v4572_v2 }
 0x925   : > { %v4579_v13 = vmul.f32 %v6329_v4, %v4577_v54  ;;  %v4576_v42 = vadd.f32 1.4214138, %v4574_v51  ;;  %v5231_v54 = vmul.f32 %v7640_v18, %v5230_v59 }
 0x927   : > { %v4581_v60 = vadd.f32 -0.28449672, %v4579_v13  ;;  %v4578_v26 = vmul.f32 %v6331_v24, %v4576_v42 }
 0x929   : > { %v4583_v41 = vmul.f32 %v6329_v4, %v4581_v60  ;;  %v4580_v39 = vadd.f32 -0.28449672, %v4578_v26 }
 0x92b   : > { %v4585_v33 = vadd.f32 0.2548296, %v4583_v41  ;;  %v4582_v29 = vmul.f32 %v6331_v24, %v4580_v39 }
 0x92d   : > { %v4587_v57 = vmul.f32 %v6329_v4, %v4585_v33  ;;  %v4584_v20 = vadd.f32 0.2548296, %v4582_v29  ;;  %v5226_v4 = vmul.f32 %v7619_v0, %v5224_v17  ;;  %v5237_v0 = vmul.f32 %v7644_v9, %v5236_v7  ;;  %v3243_v33 = vpop.xlane.xlu0 %3242  ;;  %v3246_v29 = vpop.xlane.xlu1 %3245 }
 0x92f   : > { %v4597_v11 = vmul.f32 %v6333_v19, %v4587_v57  ;;  %v4586_v14 = vmul.f32 %v6331_v24, %v4584_v20  ;;  %v3247_v57 = vadd.f32 %v3246_v29, %v3243_v33 }
 0x931   : > { %v4599_v30 = vsub.f32 1.0, %v4597_v11  ;;  %v4596_v35 = vmul.f32 %v6335_v36, %v4586_v14  ;;  %v3927_v20 = vpop.xlane.xlu0 %3926  ;;  %v3930_v11 = vpop.xlane.xlu1 %3929  ;;  %v3248_v36 = vrot.slane %v3247_v57, 4 }
 0x933   : > { %v4603_v47 = vsub.f32 0.0, %v4599_v30  ;;  %v4598_v37 = vsub.f32 1.0, %v4596_v35 }
 0x935   : > { %v4605_v10 = vsel %vm4601_vm7, %v4599_v30, %v4603_v47  ;;  %v4602_v23 = vsub.f32 0.0, %v4598_v37  ;;  %v3931_v30 = vadd.f32 %v3930_v11, %v3927_v20 }
 0x936   : > { %v4607_v49 = vadd.f32 1.0, %v4605_v10 }
 0x937   : > { %v4604_v32 = vsel %vm4600_vm8, %v4598_v37, %v4602_v23 }
 0x938   : > { %v7815_v21 = vmul.f32 %v4607_v49, %v4557_v61  ;;  %v4606_v56 = vadd.f32 1.0, %v4604_v32  ;;  %v3249_v61 = vadd.f32 %v3248_v36, %v3247_v57  ;;  %v3932_v49 = vrot.slane %v3931_v30, 4 }
 0x93a   : > { %v4613_v22 = vsel %vm577_vm0, %v7815_v21, 0.0  ;;  %v7819_v62 = vmul.f32 %v4606_v56, %v4556_v43 }
 0x93b   : > { %4614 = vadd.xlane.f32.xlu1 %v4613_v22 }
 0x93c   : > { %v4610_v1 = vsel %vm577_vm0, %v7819_v62, 0.0 }
 0x93d   : > { %4611 = vadd.xlane.f32.xlu0 %v4610_v1 }
 0x9c4   : > { %v4615_v23 = vpop.xlane.xlu1 %4614 }
 0x9c5   : > { %v6221_v5 = vpop.f32.mrf.mxu1 }
 0x9c6   : > { %v4612_v47 = vpop.xlane.xlu0 %4611 }
 0x9c7   : > { %v5204_v44 = vpop.f32.mrf.mxu1  ;;  %v4616_v56 = vadd.f32 %v4615_v23, %v4612_v47 }
 0x9c9   : > { %v6214_v27 = vpop.f32.mrf.mxu0 }
 0x9ca   : > { %v5210_v31 = vadd.f32 %v6221_v5, %v6214_v27  ;;  %v3250_v27 = vrot.slane %v3249_v61, 2 }
 0x9cb   : > { %v5123_v8 = vpop.f32.mrf.mxu0 }
 0x9cc   : > { %v5216_v28 = vadd.f32 %v5214_v15, %v5210_v31  ;;  %v5205_v38 = vadd.f32 %v5204_v44, %v5123_v8  ;;  %v4617_v31 = vrot.slane %v4616_v56, 4  ;;  %v3251_v59 = vadd.f32 %v3250_v27, %v3249_v61 }
 0x9ce   : > { %v5222_v24 = vadd.f32 %v5220_v25, %v5216_v28  ;;  %v5215_v52 = vadd.f32 %v5214_v15, %v5205_v38  ;;  %v3933_v15 = vadd.f32 %v3932_v49, %v3931_v30  ;;  %v4618_v38 = vadd.f32 %v4617_v31, %v4616_v56 }
 0x9d0   : > { %v5228_v3 = vadd.f32 %v5226_v4, %v5222_v24  ;;  %v5221_v2 = vadd.f32 %v5219_v45, %v5215_v52  ;;  %v3934_v28 = vrot.slane %v3933_v15, 2  ;;  %v3252_v52 = vrot.slane %v3251_v59, 1 }
 0x9d2   : > { %v5227_v51 = vadd.f32 %v5225_v34, %v5221_v2  ;;  %v5234_v13 = vadd.f32 %v5232_v12, %v5228_v3  ;;  %v3935_v34 = vadd.f32 %v3934_v28, %v3933_v15  ;;  %v4619_v3 = vrot.slane %v4618_v38, 2 }
 0x9d4   : > { %v7831_v42 = vadd.f32 %v5238_v40, %v5234_v13  ;;  %v5233_v53 = vadd.f32 %v5231_v54, %v5227_v51  ;;  %v3253_v51 = vadd.f32 %v3252_v52, %v3251_v59  ;;  %v3936_v13 = vrot.slane %v3935_v34, 1 }
 0x9d6   : > { %v7834_v60 = vmul.f32 0.70710677, %v7831_v42  ;;  %v7836_v26 = vadd.f32 %v5237_v0, %v5233_v53  ;;  %v3254_v29 = vmul.f32 0.00390625, %v3253_v51  ;;  %v5242_v47 = vmul.f32 0.5, %v7831_v42 }
 0x9d8   : > { %v5246_v16 = vand.u32 2147483647, %v7834_v60  ;;  %v7840_v63 = vmul.f32 0.70710677, %v7836_v26  ;;  %vm5286_vm9 = vcmp.ge.f32.partialorder %v7834_v60, 0.0  ;;  %v7845_v36 = vsub.f32 %v7710_v46, %v3254_v29 }
 0x9d9   : > { %v5241_v23 = vmul.f32 0.5, %v7836_v26  ;;  %v7853_v60 = vsub.f32 %v7715_v6, %v3254_v29 }
 0x9da   : > { %v5248_v50 = vmul.f32 0.3275911, %v5246_v16  ;;  %v5245_v18 = vand.u32 2147483647, %v7840_v63  ;;  %v5274_v19 = vsub.f32 0.0, %v5246_v16  ;;  %vm5285_vm10 = vcmp.ge.f32.partialorder %v7840_v63, 0.0 }
 0x9db   : > { %v3257_v26 = vmul.f32 %v7853_v60, %v7853_v60 }
 0x9dc   : > { %v5250_v41 = vadd.f32 1.0, %v5248_v50  ;;  %v5247_v39 = vmul.f32 0.3275911, %v5245_v18  ;;  %v5273_v14 = vsub.f32 0.0, %v5245_v18  ;;  %v5276_v35 = vmul.f32 %v5274_v19, %v5246_v16 }
 0x9dd   : > { %v4620_v16 = vadd.f32 %v4619_v3, %v4618_v38 }
 0x9de   : > { %6336 = vrcp.f32 %v5250_v41  ;;  %v5249_v9 = vadd.f32 1.0, %v5247_v39  ;;  %v5275_v10 = vmul.f32 %v5273_v14, %v5245_v18  ;;  %v5279_v43 = vmul.f32 1.442695, %v5276_v35 }
 0x9df   : > { %v4621_v57 = vrot.slane %v4620_v16, 1 }
 0x9e0   : > { %6338 = vrcp.f32 %v5249_v9  ;;  %v5277_v55 = vmul.f32 1.442695, %v5275_v10  ;;  %v3937_v9 = vadd.f32 %v3936_v13, %v3935_v34 }
 0x9e1   : > { %6340 = vpow2.f32 %v5279_v43  ;;  %v4622_v35 = vadd.f32 %v4621_v57, %v4620_v16  ;;  %v3258_v43 = vmul.f32 %v7845_v36, %v7845_v36 }
 0x9e2   : > { %6342 = vpow2.f32 %v5277_v55  ;;  %v3938_v30 = vmul.f32 0.00390625, %v3937_v9  ;;  %v3259_v55 = vsel %vm577_vm0, %v3257_v26, 0.0 }
 0x9e3   : > { %v4623_v56 = vmul.f32 0.00390625, %v4622_v35 }
 0x9e4   : > { %v7860_v42 = vsub.f32 %v7791_v48, %v3938_v30  ;;  %v7866_v6 = vsub.f32 %v7796_v58, %v3938_v30 }
 0x9e5   : > { %v7872_v48 = vsub.f32 %v7815_v21, %v4623_v56  ;;  %v7878_v15 = vsub.f32 %v7819_v62, %v4623_v56 }
 0x9e6   : > { %v3941_v27 = vmul.f32 %v7866_v6, %v7866_v6 }
 0x9e7   : > { %v4626_v21 = vmul.f32 %v7878_v15, %v7878_v15 }
 0x9e8   : > { %v3943_v31 = vsel %vm577_vm0, %v3941_v27, 0.0  ;;  %v7923_v27 = vld [vmem:[%s8053_s8 + $0x8] sm:$0xff] }
 0x9eb   : > { %v6337_v37 = vpop.eup %6336 }
 0x9ec   : > { %v5256_v32 = vmul.f32 1.0614054, %v6337_v37 }
 0x9ed   : > { %v6339_v22 = vpop.eup %6338 }
 0x9ee   : > { %v5258_v1 = vadd.f32 -1.4531521, %v5256_v32  ;;  %v5255_v5 = vmul.f32 1.0614054, %v6339_v22  ;;  %v6341_v53 = vpop.eup %6340 }
 0x9ef   : > { %v6343_v39 = vpop.eup %6342 }
 0x9f0   : > { %v5260_v17 = vmul.f32 %v6337_v37, %v5258_v1  ;;  %v5257_v25 = vadd.f32 -1.4531521, %v5255_v5  ;;  %v3262_v1 = vsel %vm577_vm0, %v3258_v43, 0.0  ;;  %v3942_v5 = vmul.f32 %v7860_v42, %v7860_v42 }
 0x9f2   : > { %v5262_v44 = vadd.f32 1.4214138, %v5260_v17  ;;  %v5259_v8 = vmul.f32 %v6339_v22, %v5257_v25  ;;  %v3946_v58 = vsel %vm577_vm0, %v3942_v5, 0.0  ;;  %v4627_v17 = vmul.f32 %v7872_v48, %v7872_v48 }
 0x9f4   : > { %v5264_v4 = vmul.f32 %v6337_v37, %v5262_v44  ;;  %v5261_v45 = vadd.f32 1.4214138, %v5259_v8  ;;  %v4631_v25 = vsel %vm577_vm0, %v4627_v17, 0.0  ;;  %v4628_v44 = vsel %vm577_vm0, %v4626_v21, 0.0  ;;  %v7936_v21 = vld [vmem:[%s8054_s9 + $0x8] sm:$0xff] }
 0x9f6   : > { %v5266_v7 = vadd.f32 -0.28449672, %v5264_v4  ;;  %v5263_v24 = vmul.f32 %v6339_v22, %v5261_v45 }
 0x9f8   : > { %v5268_v12 = vmul.f32 %v6337_v37, %v5266_v7  ;;  %v5265_v2 = vadd.f32 -0.28449672, %v5263_v24 }
 0x9fa   : > { %v5270_v40 = vadd.f32 0.2548296, %v5268_v12  ;;  %v5267_v54 = vmul.f32 %v6339_v22, %v5265_v2 }
 0x9fc   : > { %v5272_v0 = vmul.f32 %v6337_v37, %v5270_v40  ;;  %v5269_v50 = vadd.f32 0.2548296, %v5267_v54 }
 0x9fe   : > { %v5282_v18 = vmul.f32 %v6341_v53, %v5272_v0  ;;  %v5271_v41 = vmul.f32 %v6339_v22, %v5269_v50 }
 0xa00   : > { %v5284_v33 = vsub.f32 1.0, %v5282_v18  ;;  %v5281_v19 = vmul.f32 %v6343_v39, %v5271_v41 }
 0xa02   : > { %v5288_v20 = vsub.f32 0.0, %v5284_v33  ;;  %v5283_v11 = vsub.f32 1.0, %v5281_v19 }
 0xa04   : > { %v5290_v14 = vsel %vm5286_vm9, %v5284_v33, %v5288_v20  ;;  %v5287_v10 = vsub.f32 0.0, %v5283_v11 }
 0xa05   : > { %v5292_v37 = vadd.f32 1.0, %v5290_v14 }
 0xa06   : > { %v5289_v49 = vsel %vm5285_vm10, %v5283_v11, %v5287_v10 }
 0xa07   : > { %v7849_v61 = vmul.f32 %v5292_v37, %v5242_v47  ;;  %v5291_v32 = vadd.f32 1.0, %v5289_v49 }
 0xa09   : > { %v5298_v46 = vsel %vm577_vm0, %v7849_v61, 0.0  ;;  %v5293_v63 = vmul.f32 %v5291_v32, %v5241_v23 }
 0xa0a   : > { %5299 = vadd.xlane.f32.xlu1 %v5298_v46 }
 0xa0b   : > { %v5295_v22 = vsel %vm577_vm0, %v5293_v63, 0.0 }
 0xa0c   : > { %5296 = vadd.xlane.f32.xlu0 %v5295_v22 }
 0xa0e   : > { %3263 = vadd.xlane.f32.xlu1 %v3262_v1 }
 0xa10   : > { %3260 = vadd.xlane.f32.xlu0 %v3259_v55  ;;  %v7918_v55 = vld [vmem:[%s8053_s8] sm:$0xff] }
 0xa12   : > { %3947 = vadd.xlane.f32.xlu1 %v3946_v58 }
 0xa14   : > { %3944 = vadd.xlane.f32.xlu0 %v3943_v31  ;;  %v7931_v31 = vld [vmem:[%s8054_s9] sm:$0xff] }
 0xa16   : > { %4632 = vadd.xlane.f32.xlu1 %v4631_v25 }
 0xa18   : > { %4629 = vadd.xlane.f32.xlu0 %v4628_v44  ;;  %v3286_v44 = vstv %s3285_s2  ;;  %s4654_s2 = sadd.f32 1.0, %s4653_s17 }
 0xa93   : > { %v5300_v62 = vpop.xlane.xlu1 %5299 }
 0xa95   : > { %v5297_v8 = vpop.xlane.xlu0 %5296 }
 0xa96   : > { %v5301_v59 = vadd.f32 %v5300_v62, %v5297_v8 }
 0xa97   : > { %v3264_v28 = vpop.xlane.xlu1 %3263 }
 0xa98   : > { %v5302_v4 = vrot.slane %v5301_v59, 4 }
 0xa99   : > { %v3261_v38 = vpop.xlane.xlu0 %3260 }
 0xa9a   : > { %v5303_v45 = vadd.f32 %v5302_v4, %v5301_v59  ;;  %v3265_v7 = vadd.f32 %v3264_v28, %v3261_v38  ;;  %v3290_v4 = vstv %s3289_s1  ;;  %s5339_s1 = sadd.f32 1.0, %s5338_s11 }
 0xa9b   : > { %v3948_v24 = vpop.xlane.xlu1 %3947 }
 0xa9c   : > { %v5304_v52 = vrot.slane %v5303_v45, 2  ;;  %v3266_v34 = vrot.slane %v3265_v7, 4 }
 0xa9d   : > { %v3945_v12 = vpop.xlane.xlu0 %3944 }
 0xa9e   : > { %v5305_v3 = vadd.f32 %v5304_v52, %v5303_v45  ;;  %v3267_v2 = vadd.f32 %v3266_v34, %v3265_v7  ;;  %v3949_v40 = vadd.f32 %v3948_v24, %v3945_v12  ;;  %v3970_v34 = vstv %s3969_s27  ;;  %s5364_s27 = sshll.u32 %s7961_s3, 4  ;;  %s7997_s27 = int_to_ptr.vmem [resolvable:$true] %s5364_s27 }
 0xa9f   : > { %v4633_v0 = vpop.xlane.xlu1 %4632 }
 0xaa0   : > { %v5306_v54 = vrot.slane %v5305_v3, 1  ;;  %v3268_v51 = vrot.slane %v3267_v2, 2  ;;  %v3950_v13 = vrot.slane %v3949_v40, 4 }
 0xaa1   : > { %v4630_v53 = vpop.xlane.xlu0 %4629 }
 0xaa2   : > { %v5307_v16 = vadd.f32 %v5306_v54, %v5305_v3  ;;  %v3269_v50 = vadd.f32 %v3268_v51, %v3267_v2  ;;  %v3951_v18 = vadd.f32 %v3950_v13, %v3949_v40  ;;  %v4634_v41 = vadd.f32 %v4633_v0, %v4630_v53 }
 0xaa4   : > { %v3270_v39 = vrot.slane %v3269_v50, 1  ;;  %v3952_v9 = vrot.slane %v3951_v18, 2  ;;  %v4635_v33 = vrot.slane %v4634_v41, 4  ;;  %v5308_v29 = vmul.f32 0.00390625, %v5307_v16 }
 0xaa5   : > { %v4655_v16 = vstv %s4654_s2  ;;  %s6498_s2 = smov [#allocation11]  }
 0xaa6   : > { %v3271_v57 = vadd.f32 %v3270_v39, %v3269_v50  ;;  %v3953_v19 = vadd.f32 %v3952_v9, %v3951_v18  ;;  %v4636_v20 = vadd.f32 %v4635_v33, %v4634_v41  ;;  %v7889_v11 = vsub.f32 %v7849_v61, %v5308_v29 }
 0xaa7   : > { %v7891_v14 = vsub.f32 %v5293_v63, %v5308_v29  ;;  %v4659_v41 = vstv %s4658_s25  ;;  %s6424_s25 = sshll.u32 %s6498_s2, 4  ;;  %s6425_s25 = int_to_ptr.vmem [resolvable:$false] %s6424_s25 }
 0xaa8   : > { %v3272_v30 = vmul.f32 0.00390625, %v3271_v57  ;;  %v3954_v35 = vrot.slane %v3953_v19, 1  ;;  %v4637_v47 = vrot.slane %v4636_v20, 2  ;;  %v5312_v37 = vmul.f32 %v7889_v11, %v7889_v11  ;;  %s6426_s0 = scalar_lea.vmem %s6425_s25, 2048  ;;  %p6427_p2 = scmp.lt.s32.totalorder %s7997_s27, %s6425_s25 }
 0xaa9   : > { %v5311_v10 = vmul.f32 %v7891_v14, %v7891_v14 }
 0xaaa   : > { %v3273_v49 = vadd.f32 1e-06, %v3272_v30  ;;  %v3955_v23 = vadd.f32 %v3954_v35, %v3953_v19  ;;  %v4638_v32 = vadd.f32 %v4637_v47, %v4636_v20  ;;  %v5316_v61 = vsel %vm577_vm0, %v5312_v37, 0.0 }
 0xaab   : > { %5317 = vadd.xlane.f32.xlu1 %v5316_v61  ;;  %v5313_v46 = vsel %vm577_vm0, %v5311_v10, 0.0 }
 0xaac   : > { %6344 = vrsqrt.f32 %v3273_v49  ;;  %v3956_v43 = vmul.f32 0.00390625, %v3955_v23  ;;  %v4639_v56 = vrot.slane %v4638_v32, 1  ;;  %5314 = vadd.xlane.f32.xlu0 %v5313_v46 }
 0xaae   : > { %v3957_v63 = vadd.f32 1e-06, %v3956_v43  ;;  %v4640_v22 = vadd.f32 %v4639_v56, %v4638_v32 }
 0xab0   : > { %6346 = vrsqrt.f32 %v3957_v63  ;;  %v4641_v26 = vmul.f32 0.00390625, %v4640_v22  ;;  %v5340_v22 = vstv %s5339_s1 }
 0xab2   : > { %v4642_v1 = vadd.f32 1e-06, %v4641_v26 }
 0xab4   : > { %6348 = vrsqrt.f32 %v4642_v1 }
 0xab9   : > { %v6345_v5 = vpop.eup %6344 }
 0xaba   : > { %v3275_v58 = vmul.f32 %v6345_v5, %v7853_v60  ;;  %v3276_v17 = vmul.f32 %v6345_v5, %v7845_v36  ;;  %v5344_v5 = vstv %s5343_s19 }
 0xabc   : > { %v3277_v60 = vmul.f32 %v3275_v58, %v7918_v55  ;;  %v3278_v36 = vmul.f32 %v3276_v17, %v7923_v27 }
 0xabd   : > { %v6347_v25 = vpop.eup %6346 }
 0xabe   : > { %v3279_v62 = vadd.f32 %v3277_v60, %v7931_v31  ;;  %v3280_v8 = vadd.f32 %v3278_v36, %v7936_v21  ;;  %v3959_v59 = vmul.f32 %v6347_v25, %v7866_v6  ;;  %v3960_v28 = vmul.f32 %v6347_v25, %v7860_v42 }
 0xabf   : > { %v3974_v42 = vstv %s3973_s30  ;;  %s6420_s30 = scalar_lea.vmem %s7997_s27, 1024 }
 0xac0   : > { %v3287_v38 = vmul.f32 %v3286_v44, %v3279_v62  ;;  %v3288_v45 = vmul.f32 %v3286_v44, %v3280_v8  ;;  %v3961_v7 = vmul.f32 %v3959_v59, %v7918_v55  ;;  %v3962_v24 = vmul.f32 %v3960_v28, %v7923_v27  ;;  %p6421_p8 = scmp.ne.s32.totalorder %s7997_s27, %s6420_s30  ;;  %p6428_p3 = scmp.lt.s32.totalorder %s6426_s0, %s6420_s30 }
 0xac1   : > { %v6349_v52 = vpop.eup %6348 }
 0xac2   : > { %v3291_v12 = vadd.f32 %v3290_v4, %v3287_v38  ;;  %v3292_v3 = vadd.f32 %v3290_v4, %v3288_v45  ;;  %v3963_v2 = vadd.f32 %v3961_v7, %v7931_v31  ;;  %v3964_v6 = vadd.f32 %v3962_v24, %v7936_v21  ;;  %p6422_p13 = pnand %p6421_p8, %p8179_p11  ;;  %p6429_p4 = por %p6428_p3, %p6427_p2 }
 0xac3   : > { %v4644_v40 = vmul.f32 %v6349_v52, %v7878_v15  ;;  %v4645_v54 = vmul.f32 %v6349_v52, %v7872_v48 }
 0xac4   : > { %3293 = vst.msk [vmem:[%s7961_s3] sm:$0xff] %vm577_vm0, %v3291_v12  ;;  %3294 = vst.msk [vmem:[%s7961_s3 + $0x8] sm:$0xff] %vm577_vm0, %v3292_v3  ;;  %v3971_v51 = vmul.f32 %v3970_v34, %v3963_v2  ;;  %v3972_v13 = vmul.f32 %v3970_v34, %v3964_v6  ;;  %p6423_p1 = pneg %p6422_p13 }
 0xac5   : > { %v4646_v0 = vmul.f32 %v4644_v40, %v7918_v55  ;;  %v4647_v15 = vmul.f32 %v4645_v54, %v7923_v27 }
 0xac6   : > { %v3975_v48 = vadd.f32 %v3974_v42, %v3971_v51  ;;  %v3976_v53 = vadd.f32 %v3974_v42, %v3972_v13  ;;  %p6430_p9 = pnand %p6429_p4, %p6423_p1 }
 0xac7   : > { %v4648_v50 = vadd.f32 %v4646_v0, %v7931_v31  ;;  %v4649_v18 = vadd.f32 %v4647_v15, %v7936_v21 }
 0xac8   : > { %5611 = vst.msk [vmem:[%s7961_s3 + $0x10] sm:$0xff] %vm577_vm0, %v3975_v48  ;;  %5612 = vst.msk [vmem:[%s7961_s3 + $0x18] sm:$0xff] %vm577_vm0, %v3976_v53 }
 0xac9   : > { %v4656_v39 = vmul.f32 %v4655_v16, %v4648_v50  ;;  %v4657_v9 = vmul.f32 %v4655_v16, %v4649_v18 }
 0xacb   : > { %v4660_v33 = vadd.f32 %v4659_v41, %v4656_v39  ;;  %v4661_v29 = vadd.f32 %v4659_v41, %v4657_v9 }
 0xacd   : > { %5648 = vst.msk [vmem:[%s7961_s3 + $0x20] sm:$0xff] %vm577_vm0, %v4660_v33  ;;  %5649 = vst.msk [vmem:[%s7961_s3 + $0x28] sm:$0xff] %vm577_vm0, %v4661_v29 }
 0xb34   : > { %v5318_v57 = vpop.xlane.xlu1 %5317 }
 0xb35   : > { %v5315_v19 = vpop.xlane.xlu0 %5314 }
 0xb36   : > { %v5319_v20 = vadd.f32 %v5318_v57, %v5315_v19 }
 0xb38   : > { %v5320_v30 = vrot.slane %v5319_v20, 4 }
 0xb3a   : > { %v5321_v35 = vadd.f32 %v5320_v30, %v5319_v20 }
 0xb3c   : > { %v5322_v47 = vrot.slane %v5321_v35, 2 }
 0xb3e   : > { %v5323_v37 = vadd.f32 %v5322_v47, %v5321_v35 }
 0xb40   : > { %v5324_v10 = vrot.slane %v5323_v37, 1 }
 0xb42   : > { %v5325_v49 = vadd.f32 %v5324_v10, %v5323_v37 }
 0xb44   : > { %v5326_v23 = vmul.f32 0.00390625, %v5325_v49 }
 0xb46   : > { %v5327_v32 = vadd.f32 1e-06, %v5326_v23 }
 0xb48   : > { %6350 = vrsqrt.f32 %v5327_v32 }
 0xb55   : > { %v6351_v61 = vpop.eup %6350 }
 0xb56   : > { %v5329_v46 = vmul.f32 %v6351_v61, %v7891_v14  ;;  %v5330_v43 = vmul.f32 %v6351_v61, %v7889_v11 }
 0xb58   : > { %v5331_v56 = vmul.f32 %v5329_v46, %v7918_v55  ;;  %v5332_v63 = vmul.f32 %v5330_v43, %v7923_v27 }
 0xb5a   : > { %v5333_v26 = vadd.f32 %v5331_v56, %v7931_v31  ;;  %v5334_v1 = vadd.f32 %v5332_v63, %v7936_v21 }
 0xb5c   : > { %v5341_v14 = vmul.f32 %v5340_v22, %v5333_v26  ;;  %v5342_v58 = vmul.f32 %v5340_v22, %v5334_v1 }
 0xb5e   : > { %v5345_v11 = vadd.f32 %v5344_v5, %v5341_v14  ;;  %v5346_v55 = vadd.f32 %v5344_v5, %v5342_v58 }
 0xb60   : > { %5685 = vst.msk [vmem:[%s7961_s3 + $0x30] sm:$0xff] %vm577_vm0, %v5345_v11  ;;  %5686 = vst.msk [vmem:[%s7961_s3 + $0x38] sm:$0xff] %vm577_vm0, %v5346_v55 }
 0xb61   : > { %6433 = shalt.err (!%p6430_p9)
}
 0xb62   : > { %s6434_s16 = scalar_lea.hbm %s7995_s22, 1024  ;;  %s6438_s18 = scalar_lea.hbm %s8060_s15, 2048 }
 0xb63   : > { %p6435_p7 = scmp.ne.s32.totalorder %s7995_s22, %s6434_s16  ;;  %p6439_p6 = scmp.lt.s32.totalorder %s7995_s22, %s8060_s15 }
 0xb64   : > { %p6440_p12 = scmp.lt.s32.totalorder %s6438_s18, %s6434_s16 }
 0xb65   : > { %p6436_p0 = pnand %p6435_p7, %p8179_p11 }
 0xb66   : > { %p6441_p10 = por %p6440_p12, %p6439_p6 }
 0xb67   : > { %p6437_p5 = pneg %p6436_p0 }
 0xb69   : > { %p6442_p8 = pnand %p6441_p10, %p6437_p5 }
 0xb6b   : > { %6445 = shalt.err (!%p6442_p8)
}
 0xb6c   : > { %s6499_s19 = smov 128   ;;  %s6500_s24 = smov 8  }
 0xb6d   : > { %6238 = dma.vmem_to_hbm [thread:$0]  (%p8179_p11), %s7997_s27, 1024, %s7995_s22, %s8005_s14, %s6499_s19, %s6499_s19, %s6500_s24  }
 0xb6e PF: > { %s8180_s28 = sld [smem:[#allocation19_spill]]  ;;  %p6265_p13 = scmp.ge.s32.totalorder %s6492_s23, 2 }
 0xb6f   : > { %s5379_s17 = sand.u32 1, %s6480_s20  }
 0xb70   : > { %s5380_s30 = scalar_lea.sflag [#allocation4], %s5379_s17 }
 0xb74   : > { %p8181_p1 = scmp.ne.s32.totalorder %s8180_s28, 0 }
 0xb76   : > { %p6254_p2 = pnand %p6265_p13, %p8181_p1 }
 0xb78   : > { %p6255_p3 = pneg %p6254_p2 }
 0xb7a   : > { %6475 = dma.done.wait (%p6255_p3), %s5380_s30, 1024  }
 0xb7b   : > { %6477 = vsyncadd (%p6255_p3), %s5380_s30, 4294966272  ;;  %s8182_s23 = sld [smem:[#allocation17_spill]]  ;;  %s8185_s20 = smov %s6484_s21 }
 0xb7c   : > { %s8183_s2 = sld [smem:[#allocation16_spill]] }
 0xb7d   : > { %s8184_s22 = sld [smem:[#allocation18_spill]] }
 0xb81   : > { %p29_p4 = scmp.ge.s32.totalorder %s8182_s23, 4  }
 0xb82   : > { %s8186_s21 = smov %s8183_s2 }
 0xb83   :  { %31 = sbr.rel (!%p29_p4) target bundleno = 13 (0xd), region = 173 }
 0xb88   :  { %5385 = vsyncpa [#allocation4], 1 }
 0xb89   :  { %5387 = vsyncpa [#allocation4 + $0x1], 1 }
 0xb8a   :  { %5388 = vsyncpa [#allocation5], 1 }
 0xb8b   :  { %5390 = vsyncpa [#allocation5 + $0x1], 1 }
 0xb8c   :  { %5391 = vsyncpa [#allocation7], 1 }
 0xb8d   :  { %5392 = vsyncpa [#allocation10], 1 }

</bundles_post_ra>
